<compile_context>
chip_gen: v6e
topology: v6e:2x2x1
jax: 0.10.0
libtpu: 0.0.40
codegen_flags: <defaults>
</compile_context>

<pallas_src>
import jax
import jax.numpy as jnp
from jax import lax
from jax.experimental import pallas as pl
from jax.experimental.pallas import tpu as pltpu


TILE_N = 128   # batch tile size on the lane dimension
WPAD = 16      # conv2 output width (11) padded to 16 rows for sublane alignment


# ------------------------------ fused kernel --------------------------------

def fused_cnn_kernel(x_ref, c1w_ref, c1b_ref, c2w_ref, c2b_ref,
                     w1_ref, b1_ref, w2_ref, b2_ref, w3_ref, b3_ref,
                     w4_ref, b4_ref, o_ref, flat_ref):
    C1 = c1w_ref.shape[0]
    C2 = c2w_ref.shape[0]

    x = x_ref[...]                       # (4, 12, TILE_N): H, W, batch-on-lanes
    x_l = x[:, 0:11, :]                  # (4, 11, TILE_N)
    x_r = x[:, 1:12, :]

    # conv1: kernel (1, 2), VALID -> per-output-channel VPU FMAs + ReLU
    y1 = []
    for c in range(C1):
        y1.append(jnp.maximum(
            x_l * c1w_ref[c, 0] + x_r * c1w_ref[c, 1] + c1b_ref[c], 0.0))

    # conv2: kernel (2, 1), VALID -> VPU FMAs, written straight into the
    # flatten buffer in torch (c2, h, w) order, 16-row aligned per (c2, h).
    # Pad rows stay 0 and match zero columns of the padded fc1 weight.
    flat_ref[...] = jnp.zeros_like(flat_ref)
    for c2 in range(C2):
        for h in range(3):
            acc = y1[0][h] * c2w_ref[c2, 0] + y1[0][h + 1] * c2w_ref[c2, 1]
            for c1 in range(1, C1):
                acc = acc + y1[c1][h] * c2w_ref[c2, 2 * c1] \
                          + y1[c1][h + 1] * c2w_ref[c2, 2 * c1 + 1]
            r = (c2 * 3 + h) * WPAD
            flat_ref[r:r + 11, :] = jnp.maximum(acc + c2b_ref[c2], 0.0)

    # fc1 -> relu -> fc2 -> relu -> fc3 -> relu  (MXU; dropout == identity, eval)
    flat = flat_ref[...]                                     # (C2*3*16, TILE_N)
    h = jnp.dot(w1_ref[...], flat, preferred_element_type=jnp.float32)
    h = jnp.maximum(h + b1_ref[...], 0.0)
    h = jnp.dot(w2_ref[...], h, preferred_element_type=jnp.float32)
    h = jnp.maximum(h + b2_ref[...], 0.0)
    h = jnp.dot(w3_ref[...], h, preferred_element_type=jnp.float32)
    h = jnp.maximum(h + b3_ref[...], 0.0)                    # (l3, TILE_N)

    # fc4 (out_features = 1): VPU multiply + sublane reduce, lane-dense store.
    o_ref[...] = jnp.sum(h * w4_ref[...], axis=0, keepdims=True) + b4_ref[...]


# --------------------- one-time weight prep (hoisted) ------------------------

def prepare_params(params):
    """Done once per model, NOT per forward call."""
    C1 = params['conv1_w'].shape[0]
    C2 = params['conv2_w'].shape[0]
    l1 = params['fc1_w'].shape[0]
    # torch.flatten of (N, C2, 3, 11) indexes columns as c2*33 + h*11 + w.
    # The kernel's flat buffer stores (c2, h) chunks of 16 rows (11 real + 5 pad),
    # so scatter fc1 columns into that padded layout (pad columns = 0).
    fc1_w = params['fc1_w'].reshape(l1, C2, 3, 11)
    fc1_w = jnp.pad(fc1_w, ((0, 0), (0, 0), (0, 0), (0, WPAD - 11)))
    fc1_w = fc1_w.reshape(l1, C2 * 3 * WPAD)
    return {
        'c1w': params['conv1_w'].reshape(C1, 2),
        'c1b': params['conv1_b'],
        'c2w': params['conv2_w'][:, :, :, 0].reshape(C2, 2 * C1),
        'c2b': params['conv2_b'],
        'w1': fc1_w,                  'b1': params['fc1_b'].reshape(-1, 1),
        'w2': params['fc2_w'],        'b2': params['fc2_b'].reshape(-1, 1),
        'w3': params['fc3_w'],        'b3': params['fc3_b'].reshape(-1, 1),
        'w4': params['fc4_w'].reshape(-1, 1),
        'b4': params['fc4_b'].reshape(1, 1),
    }


# ------------------------------ forward pass ---------------------------------

@jax.jit
def configurable_cnn_forward(x, p):
    # x: (N, 1, 4, 12) float32 (NCHW, in_channels == 1)
    N = x.shape[0]
    C2 = p['c2b'].shape[0]

    xT = jnp.transpose(x[:, 0], (1, 2, 0))            # (4, 12, N): batch -> lanes
    n_pad = -N % TILE_N
    if n_pad:
        xT = jnp.pad(xT, ((0, 0), (0, 0), (0, n_pad)))
    n_tot = N + n_pad
    grid = (n_tot // TILE_N,)

    smem = pltpu.MemorySpace.SMEM
    full = lambda s: pl.BlockSpec(tuple(s), lambda i, s=s: (0,) * len(s))
    full_smem = lambda s: pl.BlockSpec(tuple(s), lambda i, s=s: (0,) * len(s),
                                       memory_space=smem)

    out = pl.pallas_call(
        fused_cnn_kernel,
        out_shape=jax.ShapeDtypeStruct((1, n_tot), jnp.float32),
        grid_spec=pltpu.PrefetchScalarGridSpec(
            num_scalar_prefetch=0,
            grid=grid,
            in_specs=[
                pl.BlockSpec((4, 12, TILE_N), lambda i: (0, 0, i)),   # x tile
                full_smem(p['c1w'].shape), full_smem(p['c1b'].shape),
                full_smem(p['c2w'].shape), full_smem(p['c2b'].shape),
                full(p['w1'].shape), full(p['b1'].shape),
                full(p['w2'].shape), full(p['b2'].shape),
                full(p['w3'].shape), full(p['b3'].shape),
                full(p['w4'].shape), full(p['b4'].shape),
            ],
            out_specs=pl.BlockSpec((1, TILE_N), lambda i: (0, i)),
            scratch_shapes=[pltpu.VMEM((C2 * 3 * WPAD, TILE_N), jnp.float32)],
        ),
        compiler_params=pltpu.CompilerParams(
            dimension_semantics=("parallel",)),
    )(xT, p['c1w'], p['c1b'], p['c2w'], p['c2b'],
      p['w1'], p['b1'], p['w2'], p['b2'], p['w3'], p['b3'],
      p['w4'], p['b4'])

    return out[0, :N].reshape(N, 1)


# ---------------- Pure-JAX (torch-semantics) reference for validation --------

def torch_style_reference(x, params):
    dn = ('NCHW', 'OIHW', 'NCHW')
    y = lax.conv_general_dilated(x, params['conv1_w'], (1, 1), 'VALID',
                                 dimension_numbers=dn)
    y = jnp.maximum(y + params['conv1_b'][None, :, None, None], 0.0)
    y = lax.conv_general_dilated(y, params['conv2_w'], (1, 1), 'VALID',
                                 dimension_numbers=dn)
    y = jnp.maximum(y + params['conv2_b'][None, :, None, None], 0.0)
    f = y.reshape(x.shape[0], -1)                     # torch flatten (C, H, W)
    h = jnp.maximum(f @ params['fc1_w'].T + params['fc1_b'], 0.0)
    h = jnp.maximum(h @ params['fc2_w'].T + params['fc2_b'], 0.0)
    h = jnp.maximum(h @ params['fc3_w'].T + params['fc3_b'], 0.0)
    return h @ params['fc4_w'].T + params['fc4_b']


# ---------------- Deterministic parameter init + driver ----------------------

def init_params(key, chnls1, chnls2, l1, l2, l3):
    def u(k, shape):
        return jax.random.uniform(k, shape, jnp.float32, -0.1, 0.1)
    ks = jax.random.split(key, 12)
    fc1_in = chnls2 * 3 * 11
    return {
        'conv1_w': u(ks[0], (chnls1, 1, 1, 2)),
        'conv1_b': u(ks[1], (chnls1,)),
        'conv2_w': u(ks[2], (chnls2, chnls1, 2, 1)),
        'conv2_b': u(ks[3], (chnls2,)),
        'fc1_w': u(ks[4], (l1, fc1_in)),
        'fc1_b': u(ks[5], (l1,)),
        'fc2_w': u(ks[6], (l2, l1)),
        'fc2_b': u(ks[7], (l2,)),
        'fc3_w': u(ks[8], (l3, l2)),
        'fc3_b': u(ks[9], (l3,)),
        'fc4_w': u(ks[10], (1, l3)),
        'fc4_b': u(ks[11], (1,)),
    }


if __name__ == "__main__":
    # Small config: chnls1=4, chnls2=8, l1=32, l2=32, l3=16 (d1..d4 unused in eval).
    chnls1, chnls2, l1, l2, l3 = 4, 8, 32, 32, 16
    N, H, W = 2, 4, 12

    key = jax.random.PRNGKey(0)
    k_x, k_p = jax.random.split(key)
    x = jax.random.normal(k_x, (N, 1, H, W), jnp.float32)
    params = init_params(k_p, chnls1, chnls2, l1, l2, l3)
    prepped = prepare_params(params)      # hoisted weight prep, done once

    out = jax.block_until_ready(configurable_cnn_forward(x, prepped))
    ref = jax.block_until_ready(torch_style_reference(x, params))

    assert out.shape == (N, 1), out.shape
    assert jnp.allclose(out, ref, rtol=1e-2, atol=1e-2), (out, ref)
    print("KERNEL_OK")
</pallas_src>

<mosaic_0001>
module attributes {stable_mosaic.version = 11 : i64} {
  func.func @fused_cnn_kernel(%arg0: i32, %arg1: memref<4x12x128xf32, #tpu.memory_space<vmem>>, %arg2: memref<4x2xf32, #tpu.memory_space<smem>>, %arg3: memref<4xf32, #tpu.memory_space<smem>>, %arg4: memref<8x8xf32, #tpu.memory_space<smem>>, %arg5: memref<8xf32, #tpu.memory_space<smem>>, %arg6: memref<32x384xf32, #tpu.memory_space<vmem>>, %arg7: memref<32x1xf32, #tpu.memory_space<vmem>>, %arg8: memref<32x32xf32, #tpu.memory_space<vmem>>, %arg9: memref<32x1xf32, #tpu.memory_space<vmem>>, %arg10: memref<16x32xf32, #tpu.memory_space<vmem>>, %arg11: memref<16x1xf32, #tpu.memory_space<vmem>>, %arg12: memref<16x1xf32, #tpu.memory_space<vmem>>, %arg13: memref<1x1xf32, #tpu.memory_space<vmem>>, %arg14: memref<1x128xf32, #tpu.memory_space<vmem>>, %arg15: memref<384x128xf32, #tpu.memory_space<vmem>>) attributes {dimension_semantics = [#tpu.dimension_semantics<parallel>], iteration_bounds = array<i64: 1>, scalar_prefetch = 0 : i64, scratch_operands = 1 : i64, tpu.core_type = #tpu.core_type<tc>, window_params = [{transform_indices = @transform_0, window_bounds = array<i64: 4, 12, 128>}, {transform_indices = @transform_1, window_bounds = array<i64: 4, 2>}, {transform_indices = @transform_2, window_bounds = array<i64: 4>}, {transform_indices = @transform_3, window_bounds = array<i64: 8, 8>}, {transform_indices = @transform_4, window_bounds = array<i64: 8>}, {pipeline_mode = #tpu.pipeline_mode<synchronous>, transform_indices = @transform_5, window_bounds = array<i64: 32, 384>}, {pipeline_mode = #tpu.pipeline_mode<synchronous>, transform_indices = @transform_6, window_bounds = array<i64: 32, 1>}, {pipeline_mode = #tpu.pipeline_mode<synchronous>, transform_indices = @transform_7, window_bounds = array<i64: 32, 32>}, {pipeline_mode = #tpu.pipeline_mode<synchronous>, transform_indices = @transform_8, window_bounds = array<i64: 32, 1>}, {pipeline_mode = #tpu.pipeline_mode<synchronous>, transform_indices = @transform_9, window_bounds = array<i64: 16, 32>}, {pipeline_mode = #tpu.pipeline_mode<synchronous>, transform_indices = @transform_10, window_bounds = array<i64: 16, 1>}, {pipeline_mode = #tpu.pipeline_mode<synchronous>, transform_indices = @transform_11, window_bounds = array<i64: 16, 1>}, {pipeline_mode = #tpu.pipeline_mode<synchronous>, transform_indices = @transform_12, window_bounds = array<i64: 1, 1>}, {transform_indices = @transform_13, window_bounds = array<i64: 1, 128>}]} {
    %c0 = arith.constant 0 : index
    %c0_0 = arith.constant 0 : index
    %c0_1 = arith.constant 0 : index
    %0 = vector.load %arg1[%c0, %c0_0, %c0_1] : memref<4x12x128xf32, #tpu.memory_space<vmem>>, vector<4x12x128xf32>
    %1 = vector.extract_strided_slice %0 {offsets = [0, 0, 0], sizes = [4, 11, 128], strides = [1, 1, 1]} : vector<4x12x128xf32> to vector<4x11x128xf32>
    %2 = vector.extract_strided_slice %0 {offsets = [0, 1, 0], sizes = [4, 11, 128], strides = [1, 1, 1]} : vector<4x12x128xf32> to vector<4x11x128xf32>
    %c0_2 = arith.constant 0 : index
    %c0_3 = arith.constant 0 : index
    %3 = memref.load %arg2[%c0_2, %c0_3] : memref<4x2xf32, #tpu.memory_space<smem>>
    %4 = vector.broadcast %3 : f32 to vector<4x11x128xf32>
    %5 = arith.mulf %1, %4 : vector<4x11x128xf32>
    %c0_4 = arith.constant 0 : index
    %c1 = arith.constant 1 : index
    %6 = memref.load %arg2[%c0_4, %c1] : memref<4x2xf32, #tpu.memory_space<smem>>
    %7 = vector.broadcast %6 : f32 to vector<4x11x128xf32>
    %8 = arith.mulf %2, %7 : vector<4x11x128xf32>
    %9 = arith.addf %5, %8 : vector<4x11x128xf32>
    %c0_5 = arith.constant 0 : index
    %10 = memref.load %arg3[%c0_5] : memref<4xf32, #tpu.memory_space<smem>>
    %11 = vector.broadcast %10 : f32 to vector<4x11x128xf32>
    %12 = arith.addf %9, %11 : vector<4x11x128xf32>
    %cst = arith.constant 0.000000e+00 : f32
    %13 = vector.broadcast %cst : f32 to vector<4x11x128xf32>
    %14 = arith.maximumf %12, %13 : vector<4x11x128xf32>
    %c1_6 = arith.constant 1 : index
    %c0_7 = arith.constant 0 : index
    %15 = memref.load %arg2[%c1_6, %c0_7] : memref<4x2xf32, #tpu.memory_space<smem>>
    %16 = vector.broadcast %15 : f32 to vector<4x11x128xf32>
    %17 = arith.mulf %1, %16 : vector<4x11x128xf32>
    %c1_8 = arith.constant 1 : index
    %c1_9 = arith.constant 1 : index
    %18 = memref.load %arg2[%c1_8, %c1_9] : memref<4x2xf32, #tpu.memory_space<smem>>
    %19 = vector.broadcast %18 : f32 to vector<4x11x128xf32>
    %20 = arith.mulf %2, %19 : vector<4x11x128xf32>
    %21 = arith.addf %17, %20 : vector<4x11x128xf32>
    %c1_10 = arith.constant 1 : index
    %22 = memref.load %arg3[%c1_10] : memref<4xf32, #tpu.memory_space<smem>>
    %23 = vector.broadcast %22 : f32 to vector<4x11x128xf32>
    %24 = arith.addf %21, %23 : vector<4x11x128xf32>
    %cst_11 = arith.constant 0.000000e+00 : f32
    %25 = vector.broadcast %cst_11 : f32 to vector<4x11x128xf32>
    %26 = arith.maximumf %24, %25 : vector<4x11x128xf32>
    %c2 = arith.constant 2 : index
    %c0_12 = arith.constant 0 : index
    %27 = memref.load %arg2[%c2, %c0_12] : memref<4x2xf32, #tpu.memory_space<smem>>
    %28 = vector.broadcast %27 : f32 to vector<4x11x128xf32>
    %29 = arith.mulf %1, %28 : vector<4x11x128xf32>
    %c2_13 = arith.constant 2 : index
    %c1_14 = arith.constant 1 : index
    %30 = memref.load %arg2[%c2_13, %c1_14] : memref<4x2xf32, #tpu.memory_space<smem>>
    %31 = vector.broadcast %30 : f32 to vector<4x11x128xf32>
    %32 = arith.mulf %2, %31 : vector<4x11x128xf32>
    %33 = arith.addf %29, %32 : vector<4x11x128xf32>
    %c2_15 = arith.constant 2 : index
    %34 = memref.load %arg3[%c2_15] : memref<4xf32, #tpu.memory_space<smem>>
    %35 = vector.broadcast %34 : f32 to vector<4x11x128xf32>
    %36 = arith.addf %33, %35 : vector<4x11x128xf32>
    %cst_16 = arith.constant 0.000000e+00 : f32
    %37 = vector.broadcast %cst_16 : f32 to vector<4x11x128xf32>
    %38 = arith.maximumf %36, %37 : vector<4x11x128xf32>
    %c3 = arith.constant 3 : index
    %c0_17 = arith.constant 0 : index
    %39 = memref.load %arg2[%c3, %c0_17] : memref<4x2xf32, #tpu.memory_space<smem>>
    %40 = vector.broadcast %39 : f32 to vector<4x11x128xf32>
    %41 = arith.mulf %1, %40 : vector<4x11x128xf32>
    %c3_18 = arith.constant 3 : index
    %c1_19 = arith.constant 1 : index
    %42 = memref.load %arg2[%c3_18, %c1_19] : memref<4x2xf32, #tpu.memory_space<smem>>
    %43 = vector.broadcast %42 : f32 to vector<4x11x128xf32>
    %44 = arith.mulf %2, %43 : vector<4x11x128xf32>
    %45 = arith.addf %41, %44 : vector<4x11x128xf32>
    %c3_20 = arith.constant 3 : index
    %46 = memref.load %arg3[%c3_20] : memref<4xf32, #tpu.memory_space<smem>>
    %47 = vector.broadcast %46 : f32 to vector<4x11x128xf32>
    %48 = arith.addf %45, %47 : vector<4x11x128xf32>
    %cst_21 = arith.constant 0.000000e+00 : f32
    %49 = vector.broadcast %cst_21 : f32 to vector<4x11x128xf32>
    %50 = arith.maximumf %48, %49 : vector<4x11x128xf32>
    %cst_22 = arith.constant 0.000000e+00 : f32
    %51 = vector.broadcast %cst_22 : f32 to vector<384x128xf32>
    %c0_23 = arith.constant 0 : index
    %c0_24 = arith.constant 0 : index
    %52 = vector.load %arg15[%c0_23, %c0_24] : memref<384x128xf32, #tpu.memory_space<vmem>>, vector<384x128xf32>
    tpu.vector_store %arg15[%c0_23, %c0_24], %51 {strides = array<i32>} : memref<384x128xf32, #tpu.memory_space<vmem>>, vector<384x128xf32>,
    %53 = vector.extract_strided_slice %14 {offsets = [0, 0, 0], sizes = [1, 11, 128], strides = [1, 1, 1]} : vector<4x11x128xf32> to vector<1x11x128xf32>
    %54 = vector.shape_cast %53 : vector<1x11x128xf32> to vector<11x128xf32>
    %c0_25 = arith.constant 0 : index
    %c0_26 = arith.constant 0 : index
    %55 = memref.load %arg4[%c0_25, %c0_26] : memref<8x8xf32, #tpu.memory_space<smem>>
    %56 = vector.broadcast %55 : f32 to vector<11x128xf32>
    %57 = arith.mulf %54, %56 : vector<11x128xf32>
    %58 = vector.extract_strided_slice %14 {offsets = [1, 0, 0], sizes = [1, 11, 128], strides = [1, 1, 1]} : vector<4x11x128xf32> to vector<1x11x128xf32>
    %59 = vector.shape_cast %58 : vector<1x11x128xf32> to vector<11x128xf32>
    %c0_27 = arith.constant 0 : index
    %c1_28 = arith.constant 1 : index
    %60 = memref.load %arg4[%c0_27, %c1_28] : memref<8x8xf32, #tpu.memory_space<smem>>
    %61 = vector.broadcast %60 : f32 to vector<11x128xf32>
    %62 = arith.mulf %59, %61 : vector<11x128xf32>
    %63 = arith.addf %57, %62 : vector<11x128xf32>
    %64 = vector.extract_strided_slice %26 {offsets = [0, 0, 0], sizes = [1, 11, 128], strides = [1, 1, 1]} : vector<4x11x128xf32> to vector<1x11x128xf32>
    %65 = vector.shape_cast %64 : vector<1x11x128xf32> to vector<11x128xf32>
    %c0_29 = arith.constant 0 : index
    %c2_30 = arith.constant 2 : index
    %66 = memref.load %arg4[%c0_29, %c2_30] : memref<8x8xf32, #tpu.memory_space<smem>>
    %67 = vector.broadcast %66 : f32 to vector<11x128xf32>
    %68 = arith.mulf %65, %67 : vector<11x128xf32>
    %69 = arith.addf %63, %68 : vector<11x128xf32>
    %70 = vector.extract_strided_slice %26 {offsets = [1, 0, 0], sizes = [1, 11, 128], strides = [1, 1, 1]} : vector<4x11x128xf32> to vector<1x11x128xf32>
    %71 = vector.shape_cast %70 : vector<1x11x128xf32> to vector<11x128xf32>
    %c0_31 = arith.constant 0 : index
    %c3_32 = arith.constant 3 : index
    %72 = memref.load %arg4[%c0_31, %c3_32] : memref<8x8xf32, #tpu.memory_space<smem>>
    %73 = vector.broadcast %72 : f32 to vector<11x128xf32>
    %74 = arith.mulf %71, %73 : vector<11x128xf32>
    %75 = arith.addf %69, %74 : vector<11x128xf32>
    %76 = vector.extract_strided_slice %38 {offsets = [0, 0, 0], sizes = [1, 11, 128], strides = [1, 1, 1]} : vector<4x11x128xf32> to vector<1x11x128xf32>
    %77 = vector.shape_cast %76 : vector<1x11x128xf32> to vector<11x128xf32>
    %c0_33 = arith.constant 0 : index
    %c4 = arith.constant 4 : index
    %78 = memref.load %arg4[%c0_33, %c4] : memref<8x8xf32, #tpu.memory_space<smem>>
    %79 = vector.broadcast %78 : f32 to vector<11x128xf32>
    %80 = arith.mulf %77, %79 : vector<11x128xf32>
    %81 = arith.addf %75, %80 : vector<11x128xf32>
    %82 = vector.extract_strided_slice %38 {offsets = [1, 0, 0], sizes = [1, 11, 128], strides = [1, 1, 1]} : vector<4x11x128xf32> to vector<1x11x128xf32>
    %83 = vector.shape_cast %82 : vector<1x11x128xf32> to vector<11x128xf32>
    %c0_34 = arith.constant 0 : index
    %c5 = arith.constant 5 : index
    %84 = memref.load %arg4[%c0_34, %c5] : memref<8x8xf32, #tpu.memory_space<smem>>
    %85 = vector.broadcast %84 : f32 to vector<11x128xf32>
    %86 = arith.mulf %83, %85 : vector<11x128xf32>
    %87 = arith.addf %81, %86 : vector<11x128xf32>
    %88 = vector.extract_strided_slice %50 {offsets = [0, 0, 0], sizes = [1, 11, 128], strides = [1, 1, 1]} : vector<4x11x128xf32> to vector<1x11x128xf32>
    %89 = vector.shape_cast %88 : vector<1x11x128xf32> to vector<11x128xf32>
    %c0_35 = arith.constant 0 : index
    %c6 = arith.constant 6 : index
    %90 = memref.load %arg4[%c0_35, %c6] : memref<8x8xf32, #tpu.memory_space<smem>>
    %91 = vector.broadcast %90 : f32 to vector<11x128xf32>
    %92 = arith.mulf %89, %91 : vector<11x128xf32>
    %93 = arith.addf %87, %92 : vector<11x128xf32>
    %94 = vector.extract_strided_slice %50 {offsets = [1, 0, 0], sizes = [1, 11, 128], strides = [1, 1, 1]} : vector<4x11x128xf32> to vector<1x11x128xf32>
    %95 = vector.shape_cast %94 : vector<1x11x128xf32> to vector<11x128xf32>
    %c0_36 = arith.constant 0 : index
    %c7 = arith.constant 7 : index
    %96 = memref.load %arg4[%c0_36, %c7] : memref<8x8xf32, #tpu.memory_space<smem>>
    %97 = vector.broadcast %96 : f32 to vector<11x128xf32>
    %98 = arith.mulf %95, %97 : vector<11x128xf32>
    %99 = arith.addf %93, %98 : vector<11x128xf32>
    %c0_37 = arith.constant 0 : index
    %100 = memref.load %arg5[%c0_37] : memref<8xf32, #tpu.memory_space<smem>>
    %101 = vector.broadcast %100 : f32 to vector<11x128xf32>
    %102 = arith.addf %99, %101 : vector<11x128xf32>
    %cst_38 = arith.constant 0.000000e+00 : f32
    %103 = vector.broadcast %cst_38 : f32 to vector<11x128xf32>
    %104 = arith.maximumf %102, %103 : vector<11x128xf32>
    %c0_39 = arith.constant 0 : index
    %c0_40 = arith.constant 0 : index
    %105 = vector.load %arg15[%c0_39, %c0_40] : memref<384x128xf32, #tpu.memory_space<vmem>>, vector<11x128xf32>
    tpu.vector_store %arg15[%c0_39, %c0_40], %104 {strides = array<i32>} : memref<384x128xf32, #tpu.memory_space<vmem>>, vector<11x128xf32>,
    %106 = vector.extract_strided_slice %14 {offsets = [1, 0, 0], sizes = [1, 11, 128], strides = [1, 1, 1]} : vector<4x11x128xf32> to vector<1x11x128xf32>
    %107 = vector.shape_cast %106 : vector<1x11x128xf32> to vector<11x128xf32>
    %c0_41 = arith.constant 0 : index
    %c0_42 = arith.constant 0 : index
    %108 = memref.load %arg4[%c0_41, %c0_42] : memref<8x8xf32, #tpu.memory_space<smem>>
    %109 = vector.broadcast %108 : f32 to vector<11x128xf32>
    %110 = arith.mulf %107, %109 : vector<11x128xf32>
    %111 = vector.extract_strided_slice %14 {offsets = [2, 0, 0], sizes = [1, 11, 128], strides = [1, 1, 1]} : vector<4x11x128xf32> to vector<1x11x128xf32>
    %112 = vector.shape_cast %111 : vector<1x11x128xf32> to vector<11x128xf32>
    %c0_43 = arith.constant 0 : index
    %c1_44 = arith.constant 1 : index
    %113 = memref.load %arg4[%c0_43, %c1_44] : memref<8x8xf32, #tpu.memory_space<smem>>
    %114 = vector.broadcast %113 : f32 to vector<11x128xf32>
    %115 = arith.mulf %112, %114 : vector<11x128xf32>
    %116 = arith.addf %110, %115 : vector<11x128xf32>
    %117 = vector.extract_strided_slice %26 {offsets = [1, 0, 0], sizes = [1, 11, 128], strides = [1, 1, 1]} : vector<4x11x128xf32> to vector<1x11x128xf32>
    %118 = vector.shape_cast %117 : vector<1x11x128xf32> to vector<11x128xf32>
    %c0_45 = arith.constant 0 : index
    %c2_46 = arith.constant 2 : index
    %119 = memref.load %arg4[%c0_45, %c2_46] : memref<8x8xf32, #tpu.memory_space<smem>>
    %120 = vector.broadcast %119 : f32 to vector<11x128xf32>
    %121 = arith.mulf %118, %120 : vector<11x128xf32>
    %122 = arith.addf %116, %121 : vector<11x128xf32>
    %123 = vector.extract_strided_slice %26 {offsets = [2, 0, 0], sizes = [1, 11, 128], strides = [1, 1, 1]} : vector<4x11x128xf32> to vector<1x11x128xf32>
    %124 = vector.shape_cast %123 : vector<1x11x128xf32> to vector<11x128xf32>
    %c0_47 = arith.constant 0 : index
    %c3_48 = arith.constant 3 : index
    %125 = memref.load %arg4[%c0_47, %c3_48] : memref<8x8xf32, #tpu.memory_space<smem>>
    %126 = vector.broadcast %125 : f32 to vector<11x128xf32>
    %127 = arith.mulf %124, %126 : vector<11x128xf32>
    %128 = arith.addf %122, %127 : vector<11x128xf32>
    %129 = vector.extract_strided_slice %38 {offsets = [1, 0, 0], sizes = [1, 11, 128], strides = [1, 1, 1]} : vector<4x11x128xf32> to vector<1x11x128xf32>
    %130 = vector.shape_cast %129 : vector<1x11x128xf32> to vector<11x128xf32>
    %c0_49 = arith.constant 0 : index
    %c4_50 = arith.constant 4 : index
    %131 = memref.load %arg4[%c0_49, %c4_50] : memref<8x8xf32, #tpu.memory_space<smem>>
    %132 = vector.broadcast %131 : f32 to vector<11x128xf32>
    %133 = arith.mulf %130, %132 : vector<11x128xf32>
    %134 = arith.addf %128, %133 : vector<11x128xf32>
    %135 = vector.extract_strided_slice %38 {offsets = [2, 0, 0], sizes = [1, 11, 128], strides = [1, 1, 1]} : vector<4x11x128xf32> to vector<1x11x128xf32>
    %136 = vector.shape_cast %135 : vector<1x11x128xf32> to vector<11x128xf32>
    %c0_51 = arith.constant 0 : index
    %c5_52 = arith.constant 5 : index
    %137 = memref.load %arg4[%c0_51, %c5_52] : memref<8x8xf32, #tpu.memory_space<smem>>
    %138 = vector.broadcast %137 : f32 to vector<11x128xf32>
    %139 = arith.mulf %136, %138 : vector<11x128xf32>
    %140 = arith.addf %134, %139 : vector<11x128xf32>
    %141 = vector.extract_strided_slice %50 {offsets = [1, 0, 0], sizes = [1, 11, 128], strides = [1, 1, 1]} : vector<4x11x128xf32> to vector<1x11x128xf32>
    %142 = vector.shape_cast %141 : vector<1x11x128xf32> to vector<11x128xf32>
    %c0_53 = arith.constant 0 : index
    %c6_54 = arith.constant 6 : index
    %143 = memref.load %arg4[%c0_53, %c6_54] : memref<8x8xf32, #tpu.memory_space<smem>>
    %144 = vector.broadcast %143 : f32 to vector<11x128xf32>
    %145 = arith.mulf %142, %144 : vector<11x128xf32>
    %146 = arith.addf %140, %145 : vector<11x128xf32>
    %147 = vector.extract_strided_slice %50 {offsets = [2, 0, 0], sizes = [1, 11, 128], strides = [1, 1, 1]} : vector<4x11x128xf32> to vector<1x11x128xf32>
    %148 = vector.shape_cast %147 : vector<1x11x128xf32> to vector<11x128xf32>
    %c0_55 = arith.constant 0 : index
    %c7_56 = arith.constant 7 : index
    %149 = memref.load %arg4[%c0_55, %c7_56] : memref<8x8xf32, #tpu.memory_space<smem>>
    %150 = vector.broadcast %149 : f32 to vector<11x128xf32>
    %151 = arith.mulf %148, %150 : vector<11x128xf32>
    %152 = arith.addf %146, %151 : vector<11x128xf32>
    %c0_57 = arith.constant 0 : index
    %153 = memref.load %arg5[%c0_57] : memref<8xf32, #tpu.memory_space<smem>>
    %154 = vector.broadcast %153 : f32 to vector<11x128xf32>
    %155 = arith.addf %152, %154 : vector<11x128xf32>
    %cst_58 = arith.constant 0.000000e+00 : f32
    %156 = vector.broadcast %cst_58 : f32 to vector<11x128xf32>
    %157 = arith.maximumf %155, %156 : vector<11x128xf32>
    %c16 = arith.constant 16 : index
    %c0_59 = arith.constant 0 : index
    %158 = vector.load %arg15[%c16, %c0_59] : memref<384x128xf32, #tpu.memory_space<vmem>>, vector<11x128xf32>
    tpu.vector_store %arg15[%c16, %c0_59], %157 {strides = array<i32>} : memref<384x128xf32, #tpu.memory_space<vmem>>, vector<11x128xf32>,
    %159 = vector.extract_strided_slice %14 {offsets = [2, 0, 0], sizes = [1, 11, 128], strides = [1, 1, 1]} : vector<4x11x128xf32> to vector<1x11x128xf32>
    %160 = vector.shape_cast %159 : vector<1x11x128xf32> to vector<11x128xf32>
    %c0_60 = arith.constant 0 : index
    %c0_61 = arith.constant 0 : index
    %161 = memref.load %arg4[%c0_60, %c0_61] : memref<8x8xf32, #tpu.memory_space<smem>>
    %162 = vector.broadcast %161 : f32 to vector<11x128xf32>
    %163 = arith.mulf %160, %162 : vector<11x128xf32>
    %164 = vector.extract_strided_slice %14 {offsets = [3, 0, 0], sizes = [1, 11, 128], strides = [1, 1, 1]} : vector<4x11x128xf32> to vector<1x11x128xf32>
    %165 = vector.shape_cast %164 : vector<1x11x128xf32> to vector<11x128xf32>
    %c0_62 = arith.constant 0 : index
    %c1_63 = arith.constant 1 : index
    %166 = memref.load %arg4[%c0_62, %c1_63] : memref<8x8xf32, #tpu.memory_space<smem>>
    %167 = vector.broadcast %166 : f32 to vector<11x128xf32>
    %168 = arith.mulf %165, %167 : vector<11x128xf32>
    %169 = arith.addf %163, %168 : vector<11x128xf32>
    %170 = vector.extract_strided_slice %26 {offsets = [2, 0, 0], sizes = [1, 11, 128], strides = [1, 1, 1]} : vector<4x11x128xf32> to vector<1x11x128xf32>
    %171 = vector.shape_cast %170 : vector<1x11x128xf32> to vector<11x128xf32>
    %c0_64 = arith.constant 0 : index
    %c2_65 = arith.constant 2 : index
    %172 = memref.load %arg4[%c0_64, %c2_65] : memref<8x8xf32, #tpu.memory_space<smem>>
    %173 = vector.broadcast %172 : f32 to vector<11x128xf32>
    %174 = arith.mulf %171, %173 : vector<11x128xf32>
    %175 = arith.addf %169, %174 : vector<11x128xf32>
    %176 = vector.extract_strided_slice %26 {offsets = [3, 0, 0], sizes = [1, 11, 128], strides = [1, 1, 1]} : vector<4x11x128xf32> to vector<1x11x128xf32>
    %177 = vector.shape_cast %176 : vector<1x11x128xf32> to vector<11x128xf32>
    %c0_66 = arith.constant 0 : index
    %c3_67 = arith.constant 3 : index
    %178 = memref.load %arg4[%c0_66, %c3_67] : memref<8x8xf32, #tpu.memory_space<smem>>
    %179 = vector.broadcast %178 : f32 to vector<11x128xf32>
    %180 = arith.mulf %177, %179 : vector<11x128xf32>
    %181 = arith.addf %175, %180 : vector<11x128xf32>
    %182 = vector.extract_strided_slice %38 {offsets = [2, 0, 0], sizes = [1, 11, 128], strides = [1, 1, 1]} : vector<4x11x128xf32> to vector<1x11x128xf32>
    %183 = vector.shape_cast %182 : vector<1x11x128xf32> to vector<11x128xf32>
    %c0_68 = arith.constant 0 : index
    %c4_69 = arith.constant 4 : index
    %184 = memref.load %arg4[%c0_68, %c4_69] : memref<8x8xf32, #tpu.memory_space<smem>>
    %185 = vector.broadcast %184 : f32 to vector<11x128xf32>
    %186 = arith.mulf %183, %185 : vector<11x128xf32>
    %187 = arith.addf %181, %186 : vector<11x128xf32>
    %188 = vector.extract_strided_slice %38 {offsets = [3, 0, 0], sizes = [1, 11, 128], strides = [1, 1, 1]} : vector<4x11x128xf32> to vector<1x11x128xf32>
    %189 = vector.shape_cast %188 : vector<1x11x128xf32> to vector<11x128xf32>
    %c0_70 = arith.constant 0 : index
    %c5_71 = arith.constant 5 : index
    %190 = memref.load %arg4[%c0_70, %c5_71] : memref<8x8xf32, #tpu.memory_space<smem>>
    %191 = vector.broadcast %190 : f32 to vector<11x128xf32>
    %192 = arith.mulf %189, %191 : vector<11x128xf32>
    %193 = arith.addf %187, %192 : vector<11x128xf32>
    %194 = vector.extract_strided_slice %50 {offsets = [2, 0, 0], sizes = [1, 11, 128], strides = [1, 1, 1]} : vector<4x11x128xf32> to vector<1x11x128xf32>
    %195 = vector.shape_cast %194 : vector<1x11x128xf32> to vector<11x128xf32>
    %c0_72 = arith.constant 0 : index
    %c6_73 = arith.constant 6 : index
    %196 = memref.load %arg4[%c0_72, %c6_73] : memref<8x8xf32, #tpu.memory_space<smem>>
    %197 = vector.broadcast %196 : f32 to vector<11x128xf32>
    %198 = arith.mulf %195, %197 : vector<11x128xf32>
    %199 = arith.addf %193, %198 : vector<11x128xf32>
    %200 = vector.extract_strided_slice %50 {offsets = [3, 0, 0], sizes = [1, 11, 128], strides = [1, 1, 1]} : vector<4x11x128xf32> to vector<1x11x128xf32>
    %201 = vector.shape_cast %200 : vector<1x11x128xf32> to vector<11x128xf32>
    %c0_74 = arith.constant 0 : index
    %c7_75 = arith.constant 7 : index
    %202 = memref.load %arg4[%c0_74, %c7_75] : memref<8x8xf32, #tpu.memory_space<smem>>
    %203 = vector.broadcast %202 : f32 to vector<11x128xf32>
    %204 = arith.mulf %201, %203 : vector<11x128xf32>
    %205 = arith.addf %199, %204 : vector<11x128xf32>
    %c0_76 = arith.constant 0 : index
    %206 = memref.load %arg5[%c0_76] : memref<8xf32, #tpu.memory_space<smem>>
    %207 = vector.broadcast %206 : f32 to vector<11x128xf32>
    %208 = arith.addf %205, %207 : vector<11x128xf32>
    %cst_77 = arith.constant 0.000000e+00 : f32
    %209 = vector.broadcast %cst_77 : f32 to vector<11x128xf32>
    %210 = arith.maximumf %208, %209 : vector<11x128xf32>
    %c32 = arith.constant 32 : index
    %c0_78 = arith.constant 0 : index
    %211 = vector.load %arg15[%c32, %c0_78] : memref<384x128xf32, #tpu.memory_space<vmem>>, vector<11x128xf32>
    tpu.vector_store %arg15[%c32, %c0_78], %210 {strides = array<i32>} : memref<384x128xf32, #tpu.memory_space<vmem>>, vector<11x128xf32>,
    %212 = vector.extract_strided_slice %14 {offsets = [0, 0, 0], sizes = [1, 11, 128], strides = [1, 1, 1]} : vector<4x11x128xf32> to vector<1x11x128xf32>
    %213 = vector.shape_cast %212 : vector<1x11x128xf32> to vector<11x128xf32>
    %c1_79 = arith.constant 1 : index
    %c0_80 = arith.constant 0 : index
    %214 = memref.load %arg4[%c1_79, %c0_80] : memref<8x8xf32, #tpu.memory_space<smem>>
    %215 = vector.broadcast %214 : f32 to vector<11x128xf32>
    %216 = arith.mulf %213, %215 : vector<11x128xf32>
    %217 = vector.extract_strided_slice %14 {offsets = [1, 0, 0], sizes = [1, 11, 128], strides = [1, 1, 1]} : vector<4x11x128xf32> to vector<1x11x128xf32>
    %218 = vector.shape_cast %217 : vector<1x11x128xf32> to vector<11x128xf32>
    %c1_81 = arith.constant 1 : index
    %c1_82 = arith.constant 1 : index
    %219 = memref.load %arg4[%c1_81, %c1_82] : memref<8x8xf32, #tpu.memory_space<smem>>
    %220 = vector.broadcast %219 : f32 to vector<11x128xf32>
    %221 = arith.mulf %218, %220 : vector<11x128xf32>
    %222 = arith.addf %216, %221 : vector<11x128xf32>
    %223 = vector.extract_strided_slice %26 {offsets = [0, 0, 0], sizes = [1, 11, 128], strides = [1, 1, 1]} : vector<4x11x128xf32> to vector<1x11x128xf32>
    %224 = vector.shape_cast %223 : vector<1x11x128xf32> to vector<11x128xf32>
    %c1_83 = arith.constant 1 : index
    %c2_84 = arith.constant 2 : index
    %225 = memref.load %arg4[%c1_83, %c2_84] : memref<8x8xf32, #tpu.memory_space<smem>>
    %226 = vector.broadcast %225 : f32 to vector<11x128xf32>
    %227 = arith.mulf %224, %226 : vector<11x128xf32>
    %228 = arith.addf %222, %227 : vector<11x128xf32>
    %229 = vector.extract_strided_slice %26 {offsets = [1, 0, 0], sizes = [1, 11, 128], strides = [1, 1, 1]} : vector<4x11x128xf32> to vector<1x11x128xf32>
    %230 = vector.shape_cast %229 : vector<1x11x128xf32> to vector<11x128xf32>
    %c1_85 = arith.constant 1 : index
    %c3_86 = arith.constant 3 : index
    %231 = memref.load %arg4[%c1_85, %c3_86] : memref<8x8xf32, #tpu.memory_space<smem>>
    %232 = vector.broadcast %231 : f32 to vector<11x128xf32>
    %233 = arith.mulf %230, %232 : vector<11x128xf32>
    %234 = arith.addf %228, %233 : vector<11x128xf32>
    %235 = vector.extract_strided_slice %38 {offsets = [0, 0, 0], sizes = [1, 11, 128], strides = [1, 1, 1]} : vector<4x11x128xf32> to vector<1x11x128xf32>
    %236 = vector.shape_cast %235 : vector<1x11x128xf32> to vector<11x128xf32>
    %c1_87 = arith.constant 1 : index
    %c4_88 = arith.constant 4 : index
    %237 = memref.load %arg4[%c1_87, %c4_88] : memref<8x8xf32, #tpu.memory_space<smem>>
    %238 = vector.broadcast %237 : f32 to vector<11x128xf32>
    %239 = arith.mulf %236, %238 : vector<11x128xf32>
    %240 = arith.addf %234, %239 : vector<11x128xf32>
    %241 = vector.extract_strided_slice %38 {offsets = [1, 0, 0], sizes = [1, 11, 128], strides = [1, 1, 1]} : vector<4x11x128xf32> to vector<1x11x128xf32>
    %242 = vector.shape_cast %241 : vector<1x11x128xf32> to vector<11x128xf32>
    %c1_89 = arith.constant 1 : index
    %c5_90 = arith.constant 5 : index
    %243 = memref.load %arg4[%c1_89, %c5_90] : memref<8x8xf32, #tpu.memory_space<smem>>
    %244 = vector.broadcast %243 : f32 to vector<11x128xf32>
    %245 = arith.mulf %242, %244 : vector<11x128xf32>
    %246 = arith.addf %240, %245 : vector<11x128xf32>
    %247 = vector.extract_strided_slice %50 {offsets = [0, 0, 0], sizes = [1, 11, 128], strides = [1, 1, 1]} : vector<4x11x128xf32> to vector<1x11x128xf32>
    %248 = vector.shape_cast %247 : vector<1x11x128xf32> to vector<11x128xf32>
    %c1_91 = arith.constant 1 : index
    %c6_92 = arith.constant 6 : index
    %249 = memref.load %arg4[%c1_91, %c6_92] : memref<8x8xf32, #tpu.memory_space<smem>>
    %250 = vector.broadcast %249 : f32 to vector<11x128xf32>
    %251 = arith.mulf %248, %250 : vector<11x128xf32>
    %252 = arith.addf %246, %251 : vector<11x128xf32>
    %253 = vector.extract_strided_slice %50 {offsets = [1, 0, 0], sizes = [1, 11, 128], strides = [1, 1, 1]} : vector<4x11x128xf32> to vector<1x11x128xf32>
    %254 = vector.shape_cast %253 : vector<1x11x128xf32> to vector<11x128xf32>
    %c1_93 = arith.constant 1 : index
    %c7_94 = arith.constant 7 : index
    %255 = memref.load %arg4[%c1_93, %c7_94] : memref<8x8xf32, #tpu.memory_space<smem>>
    %256 = vector.broadcast %255 : f32 to vector<11x128xf32>
    %257 = arith.mulf %254, %256 : vector<11x128xf32>
    %258 = arith.addf %252, %257 : vector<11x128xf32>
    %c1_95 = arith.constant 1 : index
    %259 = memref.load %arg5[%c1_95] : memref<8xf32, #tpu.memory_space<smem>>
    %260 = vector.broadcast %259 : f32 to vector<11x128xf32>
    %261 = arith.addf %258, %260 : vector<11x128xf32>
    %cst_96 = arith.constant 0.000000e+00 : f32
    %262 = vector.broadcast %cst_96 : f32 to vector<11x128xf32>
    %263 = arith.maximumf %261, %262 : vector<11x128xf32>
    %c48 = arith.constant 48 : index
    %c0_97 = arith.constant 0 : index
    %264 = vector.load %arg15[%c48, %c0_97] : memref<384x128xf32, #tpu.memory_space<vmem>>, vector<11x128xf32>
    tpu.vector_store %arg15[%c48, %c0_97], %263 {strides = array<i32>} : memref<384x128xf32, #tpu.memory_space<vmem>>, vector<11x128xf32>,
    %265 = vector.extract_strided_slice %14 {offsets = [1, 0, 0], sizes = [1, 11, 128], strides = [1, 1, 1]} : vector<4x11x128xf32> to vector<1x11x128xf32>
    %266 = vector.shape_cast %265 : vector<1x11x128xf32> to vector<11x128xf32>
    %c1_98 = arith.constant 1 : index
    %c0_99 = arith.constant 0 : index
    %267 = memref.load %arg4[%c1_98, %c0_99] : memref<8x8xf32, #tpu.memory_space<smem>>
    %268 = vector.broadcast %267 : f32 to vector<11x128xf32>
    %269 = arith.mulf %266, %268 : vector<11x128xf32>
    %270 = vector.extract_strided_slice %14 {offsets = [2, 0, 0], sizes = [1, 11, 128], strides = [1, 1, 1]} : vector<4x11x128xf32> to vector<1x11x128xf32>
    %271 = vector.shape_cast %270 : vector<1x11x128xf32> to vector<11x128xf32>
    %c1_100 = arith.constant 1 : index
    %c1_101 = arith.constant 1 : index
    %272 = memref.load %arg4[%c1_100, %c1_101] : memref<8x8xf32, #tpu.memory_space<smem>>
    %273 = vector.broadcast %272 : f32 to vector<11x128xf32>
    %274 = arith.mulf %271, %273 : vector<11x128xf32>
    %275 = arith.addf %269, %274 : vector<11x128xf32>
    %276 = vector.extract_strided_slice %26 {offsets = [1, 0, 0], sizes = [1, 11, 128], strides = [1, 1, 1]} : vector<4x11x128xf32> to vector<1x11x128xf32>
    %277 = vector.shape_cast %276 : vector<1x11x128xf32> to vector<11x128xf32>
    %c1_102 = arith.constant 1 : index
    %c2_103 = arith.constant 2 : index
    %278 = memref.load %arg4[%c1_102, %c2_103] : memref<8x8xf32, #tpu.memory_space<smem>>
    %279 = vector.broadcast %278 : f32 to vector<11x128xf32>
    %280 = arith.mulf %277, %279 : vector<11x128xf32>
    %281 = arith.addf %275, %280 : vector<11x128xf32>
    %282 = vector.extract_strided_slice %26 {offsets = [2, 0, 0], sizes = [1, 11, 128], strides = [1, 1, 1]} : vector<4x11x128xf32> to vector<1x11x128xf32>
    %283 = vector.shape_cast %282 : vector<1x11x128xf32> to vector<11x128xf32>
    %c1_104 = arith.constant 1 : index
    %c3_105 = arith.constant 3 : index
    %284 = memref.load %arg4[%c1_104, %c3_105] : memref<8x8xf32, #tpu.memory_space<smem>>
    %285 = vector.broadcast %284 : f32 to vector<11x128xf32>
    %286 = arith.mulf %283, %285 : vector<11x128xf32>
    %287 = arith.addf %281, %286 : vector<11x128xf32>
    %288 = vector.extract_strided_slice %38 {offsets = [1, 0, 0], sizes = [1, 11, 128], strides = [1, 1, 1]} : vector<4x11x128xf32> to vector<1x11x128xf32>
    %289 = vector.shape_cast %288 : vector<1x11x128xf32> to vector<11x128xf32>
    %c1_106 = arith.constant 1 : index
    %c4_107 = arith.constant 4 : index
    %290 = memref.load %arg4[%c1_106, %c4_107] : memref<8x8xf32, #tpu.memory_space<smem>>
    %291 = vector.broadcast %290 : f32 to vector<11x128xf32>
    %292 = arith.mulf %289, %291 : vector<11x128xf32>
    %293 = arith.addf %287, %292 : vector<11x128xf32>
    %294 = vector.extract_strided_slice %38 {offsets = [2, 0, 0], sizes = [1, 11, 128], strides = [1, 1, 1]} : vector<4x11x128xf32> to vector<1x11x128xf32>
    %295 = vector.shape_cast %294 : vector<1x11x128xf32> to vector<11x128xf32>
    %c1_108 = arith.constant 1 : index
    %c5_109 = arith.constant 5 : index
    %296 = memref.load %arg4[%c1_108, %c5_109] : memref<8x8xf32, #tpu.memory_space<smem>>
    %297 = vector.broadcast %296 : f32 to vector<11x128xf32>
    %298 = arith.mulf %295, %297 : vector<11x128xf32>
    %299 = arith.addf %293, %298 : vector<11x128xf32>
    %300 = vector.extract_strided_slice %50 {offsets = [1, 0, 0], sizes = [1, 11, 128], strides = [1, 1, 1]} : vector<4x11x128xf32> to vector<1x11x128xf32>
    %301 = vector.shape_cast %300 : vector<1x11x128xf32> to vector<11x128xf32>
    %c1_110 = arith.constant 1 : index
    %c6_111 = arith.constant 6 : index
    %302 = memref.load %arg4[%c1_110, %c6_111] : memref<8x8xf32, #tpu.memory_space<smem>>
    %303 = vector.broadcast %302 : f32 to vector<11x128xf32>
    %304 = arith.mulf %301, %303 : vector<11x128xf32>
    %305 = arith.addf %299, %304 : vector<11x128xf32>
    %306 = vector.extract_strided_slice %50 {offsets = [2, 0, 0], sizes = [1, 11, 128], strides = [1, 1, 1]} : vector<4x11x128xf32> to vector<1x11x128xf32>
    %307 = vector.shape_cast %306 : vector<1x11x128xf32> to vector<11x128xf32>
    %c1_112 = arith.constant 1 : index
    %c7_113 = arith.constant 7 : index
    %308 = memref.load %arg4[%c1_112, %c7_113] : memref<8x8xf32, #tpu.memory_space<smem>>
    %309 = vector.broadcast %308 : f32 to vector<11x128xf32>
    %310 = arith.mulf %307, %309 : vector<11x128xf32>
    %311 = arith.addf %305, %310 : vector<11x128xf32>
    %c1_114 = arith.constant 1 : index
    %312 = memref.load %arg5[%c1_114] : memref<8xf32, #tpu.memory_space<smem>>
    %313 = vector.broadcast %312 : f32 to vector<11x128xf32>
    %314 = arith.addf %311, %313 : vector<11x128xf32>
    %cst_115 = arith.constant 0.000000e+00 : f32
    %315 = vector.broadcast %cst_115 : f32 to vector<11x128xf32>
    %316 = arith.maximumf %314, %315 : vector<11x128xf32>
    %c64 = arith.constant 64 : index
    %c0_116 = arith.constant 0 : index
    %317 = vector.load %arg15[%c64, %c0_116] : memref<384x128xf32, #tpu.memory_space<vmem>>, vector<11x128xf32>
    tpu.vector_store %arg15[%c64, %c0_116], %316 {strides = array<i32>} : memref<384x128xf32, #tpu.memory_space<vmem>>, vector<11x128xf32>,
    %318 = vector.extract_strided_slice %14 {offsets = [2, 0, 0], sizes = [1, 11, 128], strides = [1, 1, 1]} : vector<4x11x128xf32> to vector<1x11x128xf32>
    %319 = vector.shape_cast %318 : vector<1x11x128xf32> to vector<11x128xf32>
    %c1_117 = arith.constant 1 : index
    %c0_118 = arith.constant 0 : index
    %320 = memref.load %arg4[%c1_117, %c0_118] : memref<8x8xf32, #tpu.memory_space<smem>>
    %321 = vector.broadcast %320 : f32 to vector<11x128xf32>
    %322 = arith.mulf %319, %321 : vector<11x128xf32>
    %323 = vector.extract_strided_slice %14 {offsets = [3, 0, 0], sizes = [1, 11, 128], strides = [1, 1, 1]} : vector<4x11x128xf32> to vector<1x11x128xf32>
    %324 = vector.shape_cast %323 : vector<1x11x128xf32> to vector<11x128xf32>
    %c1_119 = arith.constant 1 : index
    %c1_120 = arith.constant 1 : index
    %325 = memref.load %arg4[%c1_119, %c1_120] : memref<8x8xf32, #tpu.memory_space<smem>>
    %326 = vector.broadcast %325 : f32 to vector<11x128xf32>
    %327 = arith.mulf %324, %326 : vector<11x128xf32>
    %328 = arith.addf %322, %327 : vector<11x128xf32>
    %329 = vector.extract_strided_slice %26 {offsets = [2, 0, 0], sizes = [1, 11, 128], strides = [1, 1, 1]} : vector<4x11x128xf32> to vector<1x11x128xf32>
    %330 = vector.shape_cast %329 : vector<1x11x128xf32> to vector<11x128xf32>
    %c1_121 = arith.constant 1 : index
    %c2_122 = arith.constant 2 : index
    %331 = memref.load %arg4[%c1_121, %c2_122] : memref<8x8xf32, #tpu.memory_space<smem>>
    %332 = vector.broadcast %331 : f32 to vector<11x128xf32>
    %333 = arith.mulf %330, %332 : vector<11x128xf32>
    %334 = arith.addf %328, %333 : vector<11x128xf32>
    %335 = vector.extract_strided_slice %26 {offsets = [3, 0, 0], sizes = [1, 11, 128], strides = [1, 1, 1]} : vector<4x11x128xf32> to vector<1x11x128xf32>
    %336 = vector.shape_cast %335 : vector<1x11x128xf32> to vector<11x128xf32>
    %c1_123 = arith.constant 1 : index
    %c3_124 = arith.constant 3 : index
    %337 = memref.load %arg4[%c1_123, %c3_124] : memref<8x8xf32, #tpu.memory_space<smem>>
    %338 = vector.broadcast %337 : f32 to vector<11x128xf32>
    %339 = arith.mulf %336, %338 : vector<11x128xf32>
    %340 = arith.addf %334, %339 : vector<11x128xf32>
    %341 = vector.extract_strided_slice %38 {offsets = [2, 0, 0], sizes = [1, 11, 128], strides = [1, 1, 1]} : vector<4x11x128xf32> to vector<1x11x128xf32>
    %342 = vector.shape_cast %341 : vector<1x11x128xf32> to vector<11x128xf32>
    %c1_125 = arith.constant 1 : index
    %c4_126 = arith.constant 4 : index
    %343 = memref.load %arg4[%c1_125, %c4_126] : memref<8x8xf32, #tpu.memory_space<smem>>
    %344 = vector.broadcast %343 : f32 to vector<11x128xf32>
    %345 = arith.mulf %342, %344 : vector<11x128xf32>
    %346 = arith.addf %340, %345 : vector<11x128xf32>
    %347 = vector.extract_strided_slice %38 {offsets = [3, 0, 0], sizes = [1, 11, 128], strides = [1, 1, 1]} : vector<4x11x128xf32> to vector<1x11x128xf32>
    %348 = vector.shape_cast %347 : vector<1x11x128xf32> to vector<11x128xf32>
    %c1_127 = arith.constant 1 : index
    %c5_128 = arith.constant 5 : index
    %349 = memref.load %arg4[%c1_127, %c5_128] : memref<8x8xf32, #tpu.memory_space<smem>>
    %350 = vector.broadcast %349 : f32 to vector<11x128xf32>
    %351 = arith.mulf %348, %350 : vector<11x128xf32>
    %352 = arith.addf %346, %351 : vector<11x128xf32>
    %353 = vector.extract_strided_slice %50 {offsets = [2, 0, 0], sizes = [1, 11, 128], strides = [1, 1, 1]} : vector<4x11x128xf32> to vector<1x11x128xf32>
    %354 = vector.shape_cast %353 : vector<1x11x128xf32> to vector<11x128xf32>
    %c1_129 = arith.constant 1 : index
    %c6_130 = arith.constant 6 : index
    %355 = memref.load %arg4[%c1_129, %c6_130] : memref<8x8xf32, #tpu.memory_space<smem>>
    %356 = vector.broadcast %355 : f32 to vector<11x128xf32>
    %357 = arith.mulf %354, %356 : vector<11x128xf32>
    %358 = arith.addf %352, %357 : vector<11x128xf32>
    %359 = vector.extract_strided_slice %50 {offsets = [3, 0, 0], sizes = [1, 11, 128], strides = [1, 1, 1]} : vector<4x11x128xf32> to vector<1x11x128xf32>
    %360 = vector.shape_cast %359 : vector<1x11x128xf32> to vector<11x128xf32>
    %c1_131 = arith.constant 1 : index
    %c7_132 = arith.constant 7 : index
    %361 = memref.load %arg4[%c1_131, %c7_132] : memref<8x8xf32, #tpu.memory_space<smem>>
    %362 = vector.broadcast %361 : f32 to vector<11x128xf32>
    %363 = arith.mulf %360, %362 : vector<11x128xf32>
    %364 = arith.addf %358, %363 : vector<11x128xf32>
    %c1_133 = arith.constant 1 : index
    %365 = memref.load %arg5[%c1_133] : memref<8xf32, #tpu.memory_space<smem>>
    %366 = vector.broadcast %365 : f32 to vector<11x128xf32>
    %367 = arith.addf %364, %366 : vector<11x128xf32>
    %cst_134 = arith.constant 0.000000e+00 : f32
    %368 = vector.broadcast %cst_134 : f32 to vector<11x128xf32>
    %369 = arith.maximumf %367, %368 : vector<11x128xf32>
    %c80 = arith.constant 80 : index
    %c0_135 = arith.constant 0 : index
    %370 = vector.load %arg15[%c80, %c0_135] : memref<384x128xf32, #tpu.memory_space<vmem>>, vector<11x128xf32>
    tpu.vector_store %arg15[%c80, %c0_135], %369 {strides = array<i32>} : memref<384x128xf32, #tpu.memory_space<vmem>>, vector<11x128xf32>,
    %371 = vector.extract_strided_slice %14 {offsets = [0, 0, 0], sizes = [1, 11, 128], strides = [1, 1, 1]} : vector<4x11x128xf32> to vector<1x11x128xf32>
    %372 = vector.shape_cast %371 : vector<1x11x128xf32> to vector<11x128xf32>
    %c2_136 = arith.constant 2 : index
    %c0_137 = arith.constant 0 : index
    %373 = memref.load %arg4[%c2_136, %c0_137] : memref<8x8xf32, #tpu.memory_space<smem>>
    %374 = vector.broadcast %373 : f32 to vector<11x128xf32>
    %375 = arith.mulf %372, %374 : vector<11x128xf32>
    %376 = vector.extract_strided_slice %14 {offsets = [1, 0, 0], sizes = [1, 11, 128], strides = [1, 1, 1]} : vector<4x11x128xf32> to vector<1x11x128xf32>
    %377 = vector.shape_cast %376 : vector<1x11x128xf32> to vector<11x128xf32>
    %c2_138 = arith.constant 2 : index
    %c1_139 = arith.constant 1 : index
    %378 = memref.load %arg4[%c2_138, %c1_139] : memref<8x8xf32, #tpu.memory_space<smem>>
    %379 = vector.broadcast %378 : f32 to vector<11x128xf32>
    %380 = arith.mulf %377, %379 : vector<11x128xf32>
    %381 = arith.addf %375, %380 : vector<11x128xf32>
    %382 = vector.extract_strided_slice %26 {offsets = [0, 0, 0], sizes = [1, 11, 128], strides = [1, 1, 1]} : vector<4x11x128xf32> to vector<1x11x128xf32>
    %383 = vector.shape_cast %382 : vector<1x11x128xf32> to vector<11x128xf32>
    %c2_140 = arith.constant 2 : index
    %c2_141 = arith.constant 2 : index
    %384 = memref.load %arg4[%c2_140, %c2_141] : memref<8x8xf32, #tpu.memory_space<smem>>
    %385 = vector.broadcast %384 : f32 to vector<11x128xf32>
    %386 = arith.mulf %383, %385 : vector<11x128xf32>
    %387 = arith.addf %381, %386 : vector<11x128xf32>
    %388 = vector.extract_strided_slice %26 {offsets = [1, 0, 0], sizes = [1, 11, 128], strides = [1, 1, 1]} : vector<4x11x128xf32> to vector<1x11x128xf32>
    %389 = vector.shape_cast %388 : vector<1x11x128xf32> to vector<11x128xf32>
    %c2_142 = arith.constant 2 : index
    %c3_143 = arith.constant 3 : index
    %390 = memref.load %arg4[%c2_142, %c3_143] : memref<8x8xf32, #tpu.memory_space<smem>>
    %391 = vector.broadcast %390 : f32 to vector<11x128xf32>
    %392 = arith.mulf %389, %391 : vector<11x128xf32>
    %393 = arith.addf %387, %392 : vector<11x128xf32>
    %394 = vector.extract_strided_slice %38 {offsets = [0, 0, 0], sizes = [1, 11, 128], strides = [1, 1, 1]} : vector<4x11x128xf32> to vector<1x11x128xf32>
    %395 = vector.shape_cast %394 : vector<1x11x128xf32> to vector<11x128xf32>
    %c2_144 = arith.constant 2 : index
    %c4_145 = arith.constant 4 : index
    %396 = memref.load %arg4[%c2_144, %c4_145] : memref<8x8xf32, #tpu.memory_space<smem>>
    %397 = vector.broadcast %396 : f32 to vector<11x128xf32>
    %398 = arith.mulf %395, %397 : vector<11x128xf32>
    %399 = arith.addf %393, %398 : vector<11x128xf32>
    %400 = vector.extract_strided_slice %38 {offsets = [1, 0, 0], sizes = [1, 11, 128], strides = [1, 1, 1]} : vector<4x11x128xf32> to vector<1x11x128xf32>
    %401 = vector.shape_cast %400 : vector<1x11x128xf32> to vector<11x128xf32>
    %c2_146 = arith.constant 2 : index
    %c5_147 = arith.constant 5 : index
    %402 = memref.load %arg4[%c2_146, %c5_147] : memref<8x8xf32, #tpu.memory_space<smem>>
    %403 = vector.broadcast %402 : f32 to vector<11x128xf32>
    %404 = arith.mulf %401, %403 : vector<11x128xf32>
    %405 = arith.addf %399, %404 : vector<11x128xf32>
    %406 = vector.extract_strided_slice %50 {offsets = [0, 0, 0], sizes = [1, 11, 128], strides = [1, 1, 1]} : vector<4x11x128xf32> to vector<1x11x128xf32>
    %407 = vector.shape_cast %406 : vector<1x11x128xf32> to vector<11x128xf32>
    %c2_148 = arith.constant 2 : index
    %c6_149 = arith.constant 6 : index
    %408 = memref.load %arg4[%c2_148, %c6_149] : memref<8x8xf32, #tpu.memory_space<smem>>
    %409 = vector.broadcast %408 : f32 to vector<11x128xf32>
    %410 = arith.mulf %407, %409 : vector<11x128xf32>
    %411 = arith.addf %405, %410 : vector<11x128xf32>
    %412 = vector.extract_strided_slice %50 {offsets = [1, 0, 0], sizes = [1, 11, 128], strides = [1, 1, 1]} : vector<4x11x128xf32> to vector<1x11x128xf32>
    %413 = vector.shape_cast %412 : vector<1x11x128xf32> to vector<11x128xf32>
    %c2_150 = arith.constant 2 : index
    %c7_151 = arith.constant 7 : index
    %414 = memref.load %arg4[%c2_150, %c7_151] : memref<8x8xf32, #tpu.memory_space<smem>>
    %415 = vector.broadcast %414 : f32 to vector<11x128xf32>
    %416 = arith.mulf %413, %415 : vector<11x128xf32>
    %417 = arith.addf %411, %416 : vector<11x128xf32>
    %c2_152 = arith.constant 2 : index
    %418 = memref.load %arg5[%c2_152] : memref<8xf32, #tpu.memory_space<smem>>
    %419 = vector.broadcast %418 : f32 to vector<11x128xf32>
    %420 = arith.addf %417, %419 : vector<11x128xf32>
    %cst_153 = arith.constant 0.000000e+00 : f32
    %421 = vector.broadcast %cst_153 : f32 to vector<11x128xf32>
    %422 = arith.maximumf %420, %421 : vector<11x128xf32>
    %c96 = arith.constant 96 : index
    %c0_154 = arith.constant 0 : index
    %423 = vector.load %arg15[%c96, %c0_154] : memref<384x128xf32, #tpu.memory_space<vmem>>, vector<11x128xf32>
    tpu.vector_store %arg15[%c96, %c0_154], %422 {strides = array<i32>} : memref<384x128xf32, #tpu.memory_space<vmem>>, vector<11x128xf32>,
    %424 = vector.extract_strided_slice %14 {offsets = [1, 0, 0], sizes = [1, 11, 128], strides = [1, 1, 1]} : vector<4x11x128xf32> to vector<1x11x128xf32>
    %425 = vector.shape_cast %424 : vector<1x11x128xf32> to vector<11x128xf32>
    %c2_155 = arith.constant 2 : index
    %c0_156 = arith.constant 0 : index
    %426 = memref.load %arg4[%c2_155, %c0_156] : memref<8x8xf32, #tpu.memory_space<smem>>
    %427 = vector.broadcast %426 : f32 to vector<11x128xf32>
    %428 = arith.mulf %425, %427 : vector<11x128xf32>
    %429 = vector.extract_strided_slice %14 {offsets = [2, 0, 0], sizes = [1, 11, 128], strides = [1, 1, 1]} : vector<4x11x128xf32> to vector<1x11x128xf32>
    %430 = vector.shape_cast %429 : vector<1x11x128xf32> to vector<11x128xf32>
    %c2_157 = arith.constant 2 : index
    %c1_158 = arith.constant 1 : index
    %431 = memref.load %arg4[%c2_157, %c1_158] : memref<8x8xf32, #tpu.memory_space<smem>>
    %432 = vector.broadcast %431 : f32 to vector<11x128xf32>
    %433 = arith.mulf %430, %432 : vector<11x128xf32>
    %434 = arith.addf %428, %433 : vector<11x128xf32>
    %435 = vector.extract_strided_slice %26 {offsets = [1, 0, 0], sizes = [1, 11, 128], strides = [1, 1, 1]} : vector<4x11x128xf32> to vector<1x11x128xf32>
    %436 = vector.shape_cast %435 : vector<1x11x128xf32> to vector<11x128xf32>
    %c2_159 = arith.constant 2 : index
    %c2_160 = arith.constant 2 : index
    %437 = memref.load %arg4[%c2_159, %c2_160] : memref<8x8xf32, #tpu.memory_space<smem>>
    %438 = vector.broadcast %437 : f32 to vector<11x128xf32>
    %439 = arith.mulf %436, %438 : vector<11x128xf32>
    %440 = arith.addf %434, %439 : vector<11x128xf32>
    %441 = vector.extract_strided_slice %26 {offsets = [2, 0, 0], sizes = [1, 11, 128], strides = [1, 1, 1]} : vector<4x11x128xf32> to vector<1x11x128xf32>
    %442 = vector.shape_cast %441 : vector<1x11x128xf32> to vector<11x128xf32>
    %c2_161 = arith.constant 2 : index
    %c3_162 = arith.constant 3 : index
    %443 = memref.load %arg4[%c2_161, %c3_162] : memref<8x8xf32, #tpu.memory_space<smem>>
    %444 = vector.broadcast %443 : f32 to vector<11x128xf32>
    %445 = arith.mulf %442, %444 : vector<11x128xf32>
    %446 = arith.addf %440, %445 : vector<11x128xf32>
    %447 = vector.extract_strided_slice %38 {offsets = [1, 0, 0], sizes = [1, 11, 128], strides = [1, 1, 1]} : vector<4x11x128xf32> to vector<1x11x128xf32>
    %448 = vector.shape_cast %447 : vector<1x11x128xf32> to vector<11x128xf32>
    %c2_163 = arith.constant 2 : index
    %c4_164 = arith.constant 4 : index
    %449 = memref.load %arg4[%c2_163, %c4_164] : memref<8x8xf32, #tpu.memory_space<smem>>
    %450 = vector.broadcast %449 : f32 to vector<11x128xf32>
    %451 = arith.mulf %448, %450 : vector<11x128xf32>
    %452 = arith.addf %446, %451 : vector<11x128xf32>
    %453 = vector.extract_strided_slice %38 {offsets = [2, 0, 0], sizes = [1, 11, 128], strides = [1, 1, 1]} : vector<4x11x128xf32> to vector<1x11x128xf32>
    %454 = vector.shape_cast %453 : vector<1x11x128xf32> to vector<11x128xf32>
    %c2_165 = arith.constant 2 : index
    %c5_166 = arith.constant 5 : index
    %455 = memref.load %arg4[%c2_165, %c5_166] : memref<8x8xf32, #tpu.memory_space<smem>>
    %456 = vector.broadcast %455 : f32 to vector<11x128xf32>
    %457 = arith.mulf %454, %456 : vector<11x128xf32>
    %458 = arith.addf %452, %457 : vector<11x128xf32>
    %459 = vector.extract_strided_slice %50 {offsets = [1, 0, 0], sizes = [1, 11, 128], strides = [1, 1, 1]} : vector<4x11x128xf32> to vector<1x11x128xf32>
    %460 = vector.shape_cast %459 : vector<1x11x128xf32> to vector<11x128xf32>
    %c2_167 = arith.constant 2 : index
    %c6_168 = arith.constant 6 : index
    %461 = memref.load %arg4[%c2_167, %c6_168] : memref<8x8xf32, #tpu.memory_space<smem>>
    %462 = vector.broadcast %461 : f32 to vector<11x128xf32>
    %463 = arith.mulf %460, %462 : vector<11x128xf32>
    %464 = arith.addf %458, %463 : vector<11x128xf32>
    %465 = vector.extract_strided_slice %50 {offsets = [2, 0, 0], sizes = [1, 11, 128], strides = [1, 1, 1]} : vector<4x11x128xf32> to vector<1x11x128xf32>
    %466 = vector.shape_cast %465 : vector<1x11x128xf32> to vector<11x128xf32>
    %c2_169 = arith.constant 2 : index
    %c7_170 = arith.constant 7 : index
    %467 = memref.load %arg4[%c2_169, %c7_170] : memref<8x8xf32, #tpu.memory_space<smem>>
    %468 = vector.broadcast %467 : f32 to vector<11x128xf32>
    %469 = arith.mulf %466, %468 : vector<11x128xf32>
    %470 = arith.addf %464, %469 : vector<11x128xf32>
    %c2_171 = arith.constant 2 : index
    %471 = memref.load %arg5[%c2_171] : memref<8xf32, #tpu.memory_space<smem>>
    %472 = vector.broadcast %471 : f32 to vector<11x128xf32>
    %473 = arith.addf %470, %472 : vector<11x128xf32>
    %cst_172 = arith.constant 0.000000e+00 : f32
    %474 = vector.broadcast %cst_172 : f32 to vector<11x128xf32>
    %475 = arith.maximumf %473, %474 : vector<11x128xf32>
    %c112 = arith.constant 112 : index
    %c0_173 = arith.constant 0 : index
    %476 = vector.load %arg15[%c112, %c0_173] : memref<384x128xf32, #tpu.memory_space<vmem>>, vector<11x128xf32>
    tpu.vector_store %arg15[%c112, %c0_173], %475 {strides = array<i32>} : memref<384x128xf32, #tpu.memory_space<vmem>>, vector<11x128xf32>,
    %477 = vector.extract_strided_slice %14 {offsets = [2, 0, 0], sizes = [1, 11, 128], strides = [1, 1, 1]} : vector<4x11x128xf32> to vector<1x11x128xf32>
    %478 = vector.shape_cast %477 : vector<1x11x128xf32> to vector<11x128xf32>
    %c2_174 = arith.constant 2 : index
    %c0_175 = arith.constant 0 : index
    %479 = memref.load %arg4[%c2_174, %c0_175] : memref<8x8xf32, #tpu.memory_space<smem>>
    %480 = vector.broadcast %479 : f32 to vector<11x128xf32>
    %481 = arith.mulf %478, %480 : vector<11x128xf32>
    %482 = vector.extract_strided_slice %14 {offsets = [3, 0, 0], sizes = [1, 11, 128], strides = [1, 1, 1]} : vector<4x11x128xf32> to vector<1x11x128xf32>
    %483 = vector.shape_cast %482 : vector<1x11x128xf32> to vector<11x128xf32>
    %c2_176 = arith.constant 2 : index
    %c1_177 = arith.constant 1 : index
    %484 = memref.load %arg4[%c2_176, %c1_177] : memref<8x8xf32, #tpu.memory_space<smem>>
    %485 = vector.broadcast %484 : f32 to vector<11x128xf32>
    %486 = arith.mulf %483, %485 : vector<11x128xf32>
    %487 = arith.addf %481, %486 : vector<11x128xf32>
    %488 = vector.extract_strided_slice %26 {offsets = [2, 0, 0], sizes = [1, 11, 128], strides = [1, 1, 1]} : vector<4x11x128xf32> to vector<1x11x128xf32>
    %489 = vector.shape_cast %488 : vector<1x11x128xf32> to vector<11x128xf32>
    %c2_178 = arith.constant 2 : index
    %c2_179 = arith.constant 2 : index
    %490 = memref.load %arg4[%c2_178, %c2_179] : memref<8x8xf32, #tpu.memory_space<smem>>
    %491 = vector.broadcast %490 : f32 to vector<11x128xf32>
    %492 = arith.mulf %489, %491 : vector<11x128xf32>
    %493 = arith.addf %487, %492 : vector<11x128xf32>
    %494 = vector.extract_strided_slice %26 {offsets = [3, 0, 0], sizes = [1, 11, 128], strides = [1, 1, 1]} : vector<4x11x128xf32> to vector<1x11x128xf32>
    %495 = vector.shape_cast %494 : vector<1x11x128xf32> to vector<11x128xf32>
    %c2_180 = arith.constant 2 : index
    %c3_181 = arith.constant 3 : index
    %496 = memref.load %arg4[%c2_180, %c3_181] : memref<8x8xf32, #tpu.memory_space<smem>>
    %497 = vector.broadcast %496 : f32 to vector<11x128xf32>
    %498 = arith.mulf %495, %497 : vector<11x128xf32>
    %499 = arith.addf %493, %498 : vector<11x128xf32>
    %500 = vector.extract_strided_slice %38 {offsets = [2, 0, 0], sizes = [1, 11, 128], strides = [1, 1, 1]} : vector<4x11x128xf32> to vector<1x11x128xf32>
    %501 = vector.shape_cast %500 : vector<1x11x128xf32> to vector<11x128xf32>
    %c2_182 = arith.constant 2 : index
    %c4_183 = arith.constant 4 : index
    %502 = memref.load %arg4[%c2_182, %c4_183] : memref<8x8xf32, #tpu.memory_space<smem>>
    %503 = vector.broadcast %502 : f32 to vector<11x128xf32>
    %504 = arith.mulf %501, %503 : vector<11x128xf32>
    %505 = arith.addf %499, %504 : vector<11x128xf32>
    %506 = vector.extract_strided_slice %38 {offsets = [3, 0, 0], sizes = [1, 11, 128], strides = [1, 1, 1]} : vector<4x11x128xf32> to vector<1x11x128xf32>
    %507 = vector.shape_cast %506 : vector<1x11x128xf32> to vector<11x128xf32>
    %c2_184 = arith.constant 2 : index
    %c5_185 = arith.constant 5 : index
    %508 = memref.load %arg4[%c2_184, %c5_185] : memref<8x8xf32, #tpu.memory_space<smem>>
    %509 = vector.broadcast %508 : f32 to vector<11x128xf32>
    %510 = arith.mulf %507, %509 : vector<11x128xf32>
    %511 = arith.addf %505, %510 : vector<11x128xf32>
    %512 = vector.extract_strided_slice %50 {offsets = [2, 0, 0], sizes = [1, 11, 128], strides = [1, 1, 1]} : vector<4x11x128xf32> to vector<1x11x128xf32>
    %513 = vector.shape_cast %512 : vector<1x11x128xf32> to vector<11x128xf32>
    %c2_186 = arith.constant 2 : index
    %c6_187 = arith.constant 6 : index
    %514 = memref.load %arg4[%c2_186, %c6_187] : memref<8x8xf32, #tpu.memory_space<smem>>
    %515 = vector.broadcast %514 : f32 to vector<11x128xf32>
    %516 = arith.mulf %513, %515 : vector<11x128xf32>
    %517 = arith.addf %511, %516 : vector<11x128xf32>
    %518 = vector.extract_strided_slice %50 {offsets = [3, 0, 0], sizes = [1, 11, 128], strides = [1, 1, 1]} : vector<4x11x128xf32> to vector<1x11x128xf32>
    %519 = vector.shape_cast %518 : vector<1x11x128xf32> to vector<11x128xf32>
    %c2_188 = arith.constant 2 : index
    %c7_189 = arith.constant 7 : index
    %520 = memref.load %arg4[%c2_188, %c7_189] : memref<8x8xf32, #tpu.memory_space<smem>>
    %521 = vector.broadcast %520 : f32 to vector<11x128xf32>
    %522 = arith.mulf %519, %521 : vector<11x128xf32>
    %523 = arith.addf %517, %522 : vector<11x128xf32>
    %c2_190 = arith.constant 2 : index
    %524 = memref.load %arg5[%c2_190] : memref<8xf32, #tpu.memory_space<smem>>
    %525 = vector.broadcast %524 : f32 to vector<11x128xf32>
    %526 = arith.addf %523, %525 : vector<11x128xf32>
    %cst_191 = arith.constant 0.000000e+00 : f32
    %527 = vector.broadcast %cst_191 : f32 to vector<11x128xf32>
    %528 = arith.maximumf %526, %527 : vector<11x128xf32>
    %c128 = arith.constant 128 : index
    %c0_192 = arith.constant 0 : index
    %529 = vector.load %arg15[%c128, %c0_192] : memref<384x128xf32, #tpu.memory_space<vmem>>, vector<11x128xf32>
    tpu.vector_store %arg15[%c128, %c0_192], %528 {strides = array<i32>} : memref<384x128xf32, #tpu.memory_space<vmem>>, vector<11x128xf32>,
    %530 = vector.extract_strided_slice %14 {offsets = [0, 0, 0], sizes = [1, 11, 128], strides = [1, 1, 1]} : vector<4x11x128xf32> to vector<1x11x128xf32>
    %531 = vector.shape_cast %530 : vector<1x11x128xf32> to vector<11x128xf32>
    %c3_193 = arith.constant 3 : index
    %c0_194 = arith.constant 0 : index
    %532 = memref.load %arg4[%c3_193, %c0_194] : memref<8x8xf32, #tpu.memory_space<smem>>
    %533 = vector.broadcast %532 : f32 to vector<11x128xf32>
    %534 = arith.mulf %531, %533 : vector<11x128xf32>
    %535 = vector.extract_strided_slice %14 {offsets = [1, 0, 0], sizes = [1, 11, 128], strides = [1, 1, 1]} : vector<4x11x128xf32> to vector<1x11x128xf32>
    %536 = vector.shape_cast %535 : vector<1x11x128xf32> to vector<11x128xf32>
    %c3_195 = arith.constant 3 : index
    %c1_196 = arith.constant 1 : index
    %537 = memref.load %arg4[%c3_195, %c1_196] : memref<8x8xf32, #tpu.memory_space<smem>>
    %538 = vector.broadcast %537 : f32 to vector<11x128xf32>
    %539 = arith.mulf %536, %538 : vector<11x128xf32>
    %540 = arith.addf %534, %539 : vector<11x128xf32>
    %541 = vector.extract_strided_slice %26 {offsets = [0, 0, 0], sizes = [1, 11, 128], strides = [1, 1, 1]} : vector<4x11x128xf32> to vector<1x11x128xf32>
    %542 = vector.shape_cast %541 : vector<1x11x128xf32> to vector<11x128xf32>
    %c3_197 = arith.constant 3 : index
    %c2_198 = arith.constant 2 : index
    %543 = memref.load %arg4[%c3_197, %c2_198] : memref<8x8xf32, #tpu.memory_space<smem>>
    %544 = vector.broadcast %543 : f32 to vector<11x128xf32>
    %545 = arith.mulf %542, %544 : vector<11x128xf32>
    %546 = arith.addf %540, %545 : vector<11x128xf32>
    %547 = vector.extract_strided_slice %26 {offsets = [1, 0, 0], sizes = [1, 11, 128], strides = [1, 1, 1]} : vector<4x11x128xf32> to vector<1x11x128xf32>
    %548 = vector.shape_cast %547 : vector<1x11x128xf32> to vector<11x128xf32>
    %c3_199 = arith.constant 3 : index
    %c3_200 = arith.constant 3 : index
    %549 = memref.load %arg4[%c3_199, %c3_200] : memref<8x8xf32, #tpu.memory_space<smem>>
    %550 = vector.broadcast %549 : f32 to vector<11x128xf32>
    %551 = arith.mulf %548, %550 : vector<11x128xf32>
    %552 = arith.addf %546, %551 : vector<11x128xf32>
    %553 = vector.extract_strided_slice %38 {offsets = [0, 0, 0], sizes = [1, 11, 128], strides = [1, 1, 1]} : vector<4x11x128xf32> to vector<1x11x128xf32>
    %554 = vector.shape_cast %553 : vector<1x11x128xf32> to vector<11x128xf32>
    %c3_201 = arith.constant 3 : index
    %c4_202 = arith.constant 4 : index
    %555 = memref.load %arg4[%c3_201, %c4_202] : memref<8x8xf32, #tpu.memory_space<smem>>
    %556 = vector.broadcast %555 : f32 to vector<11x128xf32>
    %557 = arith.mulf %554, %556 : vector<11x128xf32>
    %558 = arith.addf %552, %557 : vector<11x128xf32>
    %559 = vector.extract_strided_slice %38 {offsets = [1, 0, 0], sizes = [1, 11, 128], strides = [1, 1, 1]} : vector<4x11x128xf32> to vector<1x11x128xf32>
    %560 = vector.shape_cast %559 : vector<1x11x128xf32> to vector<11x128xf32>
    %c3_203 = arith.constant 3 : index
    %c5_204 = arith.constant 5 : index
    %561 = memref.load %arg4[%c3_203, %c5_204] : memref<8x8xf32, #tpu.memory_space<smem>>
    %562 = vector.broadcast %561 : f32 to vector<11x128xf32>
    %563 = arith.mulf %560, %562 : vector<11x128xf32>
    %564 = arith.addf %558, %563 : vector<11x128xf32>
    %565 = vector.extract_strided_slice %50 {offsets = [0, 0, 0], sizes = [1, 11, 128], strides = [1, 1, 1]} : vector<4x11x128xf32> to vector<1x11x128xf32>
    %566 = vector.shape_cast %565 : vector<1x11x128xf32> to vector<11x128xf32>
    %c3_205 = arith.constant 3 : index
    %c6_206 = arith.constant 6 : index
    %567 = memref.load %arg4[%c3_205, %c6_206] : memref<8x8xf32, #tpu.memory_space<smem>>
    %568 = vector.broadcast %567 : f32 to vector<11x128xf32>
    %569 = arith.mulf %566, %568 : vector<11x128xf32>
    %570 = arith.addf %564, %569 : vector<11x128xf32>
    %571 = vector.extract_strided_slice %50 {offsets = [1, 0, 0], sizes = [1, 11, 128], strides = [1, 1, 1]} : vector<4x11x128xf32> to vector<1x11x128xf32>
    %572 = vector.shape_cast %571 : vector<1x11x128xf32> to vector<11x128xf32>
    %c3_207 = arith.constant 3 : index
    %c7_208 = arith.constant 7 : index
    %573 = memref.load %arg4[%c3_207, %c7_208] : memref<8x8xf32, #tpu.memory_space<smem>>
    %574 = vector.broadcast %573 : f32 to vector<11x128xf32>
    %575 = arith.mulf %572, %574 : vector<11x128xf32>
    %576 = arith.addf %570, %575 : vector<11x128xf32>
    %c3_209 = arith.constant 3 : index
    %577 = memref.load %arg5[%c3_209] : memref<8xf32, #tpu.memory_space<smem>>
    %578 = vector.broadcast %577 : f32 to vector<11x128xf32>
    %579 = arith.addf %576, %578 : vector<11x128xf32>
    %cst_210 = arith.constant 0.000000e+00 : f32
    %580 = vector.broadcast %cst_210 : f32 to vector<11x128xf32>
    %581 = arith.maximumf %579, %580 : vector<11x128xf32>
    %c144 = arith.constant 144 : index
    %c0_211 = arith.constant 0 : index
    %582 = vector.load %arg15[%c144, %c0_211] : memref<384x128xf32, #tpu.memory_space<vmem>>, vector<11x128xf32>
    tpu.vector_store %arg15[%c144, %c0_211], %581 {strides = array<i32>} : memref<384x128xf32, #tpu.memory_space<vmem>>, vector<11x128xf32>,
    %583 = vector.extract_strided_slice %14 {offsets = [1, 0, 0], sizes = [1, 11, 128], strides = [1, 1, 1]} : vector<4x11x128xf32> to vector<1x11x128xf32>
    %584 = vector.shape_cast %583 : vector<1x11x128xf32> to vector<11x128xf32>
    %c3_212 = arith.constant 3 : index
    %c0_213 = arith.constant 0 : index
    %585 = memref.load %arg4[%c3_212, %c0_213] : memref<8x8xf32, #tpu.memory_space<smem>>
    %586 = vector.broadcast %585 : f32 to vector<11x128xf32>
    %587 = arith.mulf %584, %586 : vector<11x128xf32>
    %588 = vector.extract_strided_slice %14 {offsets = [2, 0, 0], sizes = [1, 11, 128], strides = [1, 1, 1]} : vector<4x11x128xf32> to vector<1x11x128xf32>
    %589 = vector.shape_cast %588 : vector<1x11x128xf32> to vector<11x128xf32>
    %c3_214 = arith.constant 3 : index
    %c1_215 = arith.constant 1 : index
    %590 = memref.load %arg4[%c3_214, %c1_215] : memref<8x8xf32, #tpu.memory_space<smem>>
    %591 = vector.broadcast %590 : f32 to vector<11x128xf32>
    %592 = arith.mulf %589, %591 : vector<11x128xf32>
    %593 = arith.addf %587, %592 : vector<11x128xf32>
    %594 = vector.extract_strided_slice %26 {offsets = [1, 0, 0], sizes = [1, 11, 128], strides = [1, 1, 1]} : vector<4x11x128xf32> to vector<1x11x128xf32>
    %595 = vector.shape_cast %594 : vector<1x11x128xf32> to vector<11x128xf32>
    %c3_216 = arith.constant 3 : index
    %c2_217 = arith.constant 2 : index
    %596 = memref.load %arg4[%c3_216, %c2_217] : memref<8x8xf32, #tpu.memory_space<smem>>
    %597 = vector.broadcast %596 : f32 to vector<11x128xf32>
    %598 = arith.mulf %595, %597 : vector<11x128xf32>
    %599 = arith.addf %593, %598 : vector<11x128xf32>
    %600 = vector.extract_strided_slice %26 {offsets = [2, 0, 0], sizes = [1, 11, 128], strides = [1, 1, 1]} : vector<4x11x128xf32> to vector<1x11x128xf32>
    %601 = vector.shape_cast %600 : vector<1x11x128xf32> to vector<11x128xf32>
    %c3_218 = arith.constant 3 : index
    %c3_219 = arith.constant 3 : index
    %602 = memref.load %arg4[%c3_218, %c3_219] : memref<8x8xf32, #tpu.memory_space<smem>>
    %603 = vector.broadcast %602 : f32 to vector<11x128xf32>
    %604 = arith.mulf %601, %603 : vector<11x128xf32>
    %605 = arith.addf %599, %604 : vector<11x128xf32>
    %606 = vector.extract_strided_slice %38 {offsets = [1, 0, 0], sizes = [1, 11, 128], strides = [1, 1, 1]} : vector<4x11x128xf32> to vector<1x11x128xf32>
    %607 = vector.shape_cast %606 : vector<1x11x128xf32> to vector<11x128xf32>
    %c3_220 = arith.constant 3 : index
    %c4_221 = arith.constant 4 : index
    %608 = memref.load %arg4[%c3_220, %c4_221] : memref<8x8xf32, #tpu.memory_space<smem>>
    %609 = vector.broadcast %608 : f32 to vector<11x128xf32>
    %610 = arith.mulf %607, %609 : vector<11x128xf32>
    %611 = arith.addf %605, %610 : vector<11x128xf32>
    %612 = vector.extract_strided_slice %38 {offsets = [2, 0, 0], sizes = [1, 11, 128], strides = [1, 1, 1]} : vector<4x11x128xf32> to vector<1x11x128xf32>
    %613 = vector.shape_cast %612 : vector<1x11x128xf32> to vector<11x128xf32>
    %c3_222 = arith.constant 3 : index
    %c5_223 = arith.constant 5 : index
    %614 = memref.load %arg4[%c3_222, %c5_223] : memref<8x8xf32, #tpu.memory_space<smem>>
    %615 = vector.broadcast %614 : f32 to vector<11x128xf32>
    %616 = arith.mulf %613, %615 : vector<11x128xf32>
    %617 = arith.addf %611, %616 : vector<11x128xf32>
    %618 = vector.extract_strided_slice %50 {offsets = [1, 0, 0], sizes = [1, 11, 128], strides = [1, 1, 1]} : vector<4x11x128xf32> to vector<1x11x128xf32>
    %619 = vector.shape_cast %618 : vector<1x11x128xf32> to vector<11x128xf32>
    %c3_224 = arith.constant 3 : index
    %c6_225 = arith.constant 6 : index
    %620 = memref.load %arg4[%c3_224, %c6_225] : memref<8x8xf32, #tpu.memory_space<smem>>
    %621 = vector.broadcast %620 : f32 to vector<11x128xf32>
    %622 = arith.mulf %619, %621 : vector<11x128xf32>
    %623 = arith.addf %617, %622 : vector<11x128xf32>
    %624 = vector.extract_strided_slice %50 {offsets = [2, 0, 0], sizes = [1, 11, 128], strides = [1, 1, 1]} : vector<4x11x128xf32> to vector<1x11x128xf32>
    %625 = vector.shape_cast %624 : vector<1x11x128xf32> to vector<11x128xf32>
    %c3_226 = arith.constant 3 : index
    %c7_227 = arith.constant 7 : index
    %626 = memref.load %arg4[%c3_226, %c7_227] : memref<8x8xf32, #tpu.memory_space<smem>>
    %627 = vector.broadcast %626 : f32 to vector<11x128xf32>
    %628 = arith.mulf %625, %627 : vector<11x128xf32>
    %629 = arith.addf %623, %628 : vector<11x128xf32>
    %c3_228 = arith.constant 3 : index
    %630 = memref.load %arg5[%c3_228] : memref<8xf32, #tpu.memory_space<smem>>
    %631 = vector.broadcast %630 : f32 to vector<11x128xf32>
    %632 = arith.addf %629, %631 : vector<11x128xf32>
    %cst_229 = arith.constant 0.000000e+00 : f32
    %633 = vector.broadcast %cst_229 : f32 to vector<11x128xf32>
    %634 = arith.maximumf %632, %633 : vector<11x128xf32>
    %c160 = arith.constant 160 : index
    %c0_230 = arith.constant 0 : index
    %635 = vector.load %arg15[%c160, %c0_230] : memref<384x128xf32, #tpu.memory_space<vmem>>, vector<11x128xf32>
    tpu.vector_store %arg15[%c160, %c0_230], %634 {strides = array<i32>} : memref<384x128xf32, #tpu.memory_space<vmem>>, vector<11x128xf32>,
    %636 = vector.extract_strided_slice %14 {offsets = [2, 0, 0], sizes = [1, 11, 128], strides = [1, 1, 1]} : vector<4x11x128xf32> to vector<1x11x128xf32>
    %637 = vector.shape_cast %636 : vector<1x11x128xf32> to vector<11x128xf32>
    %c3_231 = arith.constant 3 : index
    %c0_232 = arith.constant 0 : index
    %638 = memref.load %arg4[%c3_231, %c0_232] : memref<8x8xf32, #tpu.memory_space<smem>>
    %639 = vector.broadcast %638 : f32 to vector<11x128xf32>
    %640 = arith.mulf %637, %639 : vector<11x128xf32>
    %641 = vector.extract_strided_slice %14 {offsets = [3, 0, 0], sizes = [1, 11, 128], strides = [1, 1, 1]} : vector<4x11x128xf32> to vector<1x11x128xf32>
    %642 = vector.shape_cast %641 : vector<1x11x128xf32> to vector<11x128xf32>
    %c3_233 = arith.constant 3 : index
    %c1_234 = arith.constant 1 : index
    %643 = memref.load %arg4[%c3_233, %c1_234] : memref<8x8xf32, #tpu.memory_space<smem>>
    %644 = vector.broadcast %643 : f32 to vector<11x128xf32>
    %645 = arith.mulf %642, %644 : vector<11x128xf32>
    %646 = arith.addf %640, %645 : vector<11x128xf32>
    %647 = vector.extract_strided_slice %26 {offsets = [2, 0, 0], sizes = [1, 11, 128], strides = [1, 1, 1]} : vector<4x11x128xf32> to vector<1x11x128xf32>
    %648 = vector.shape_cast %647 : vector<1x11x128xf32> to vector<11x128xf32>
    %c3_235 = arith.constant 3 : index
    %c2_236 = arith.constant 2 : index
    %649 = memref.load %arg4[%c3_235, %c2_236] : memref<8x8xf32, #tpu.memory_space<smem>>
    %650 = vector.broadcast %649 : f32 to vector<11x128xf32>
    %651 = arith.mulf %648, %650 : vector<11x128xf32>
    %652 = arith.addf %646, %651 : vector<11x128xf32>
    %653 = vector.extract_strided_slice %26 {offsets = [3, 0, 0], sizes = [1, 11, 128], strides = [1, 1, 1]} : vector<4x11x128xf32> to vector<1x11x128xf32>
    %654 = vector.shape_cast %653 : vector<1x11x128xf32> to vector<11x128xf32>
    %c3_237 = arith.constant 3 : index
    %c3_238 = arith.constant 3 : index
    %655 = memref.load %arg4[%c3_237, %c3_238] : memref<8x8xf32, #tpu.memory_space<smem>>
    %656 = vector.broadcast %655 : f32 to vector<11x128xf32>
    %657 = arith.mulf %654, %656 : vector<11x128xf32>
    %658 = arith.addf %652, %657 : vector<11x128xf32>
    %659 = vector.extract_strided_slice %38 {offsets = [2, 0, 0], sizes = [1, 11, 128], strides = [1, 1, 1]} : vector<4x11x128xf32> to vector<1x11x128xf32>
    %660 = vector.shape_cast %659 : vector<1x11x128xf32> to vector<11x128xf32>
    %c3_239 = arith.constant 3 : index
    %c4_240 = arith.constant 4 : index
    %661 = memref.load %arg4[%c3_239, %c4_240] : memref<8x8xf32, #tpu.memory_space<smem>>
    %662 = vector.broadcast %661 : f32 to vector<11x128xf32>
    %663 = arith.mulf %660, %662 : vector<11x128xf32>
    %664 = arith.addf %658, %663 : vector<11x128xf32>
    %665 = vector.extract_strided_slice %38 {offsets = [3, 0, 0], sizes = [1, 11, 128], strides = [1, 1, 1]} : vector<4x11x128xf32> to vector<1x11x128xf32>
    %666 = vector.shape_cast %665 : vector<1x11x128xf32> to vector<11x128xf32>
    %c3_241 = arith.constant 3 : index
    %c5_242 = arith.constant 5 : index
    %667 = memref.load %arg4[%c3_241, %c5_242] : memref<8x8xf32, #tpu.memory_space<smem>>
    %668 = vector.broadcast %667 : f32 to vector<11x128xf32>
    %669 = arith.mulf %666, %668 : vector<11x128xf32>
    %670 = arith.addf %664, %669 : vector<11x128xf32>
    %671 = vector.extract_strided_slice %50 {offsets = [2, 0, 0], sizes = [1, 11, 128], strides = [1, 1, 1]} : vector<4x11x128xf32> to vector<1x11x128xf32>
    %672 = vector.shape_cast %671 : vector<1x11x128xf32> to vector<11x128xf32>
    %c3_243 = arith.constant 3 : index
    %c6_244 = arith.constant 6 : index
    %673 = memref.load %arg4[%c3_243, %c6_244] : memref<8x8xf32, #tpu.memory_space<smem>>
    %674 = vector.broadcast %673 : f32 to vector<11x128xf32>
    %675 = arith.mulf %672, %674 : vector<11x128xf32>
    %676 = arith.addf %670, %675 : vector<11x128xf32>
    %677 = vector.extract_strided_slice %50 {offsets = [3, 0, 0], sizes = [1, 11, 128], strides = [1, 1, 1]} : vector<4x11x128xf32> to vector<1x11x128xf32>
    %678 = vector.shape_cast %677 : vector<1x11x128xf32> to vector<11x128xf32>
    %c3_245 = arith.constant 3 : index
    %c7_246 = arith.constant 7 : index
    %679 = memref.load %arg4[%c3_245, %c7_246] : memref<8x8xf32, #tpu.memory_space<smem>>
    %680 = vector.broadcast %679 : f32 to vector<11x128xf32>
    %681 = arith.mulf %678, %680 : vector<11x128xf32>
    %682 = arith.addf %676, %681 : vector<11x128xf32>
    %c3_247 = arith.constant 3 : index
    %683 = memref.load %arg5[%c3_247] : memref<8xf32, #tpu.memory_space<smem>>
    %684 = vector.broadcast %683 : f32 to vector<11x128xf32>
    %685 = arith.addf %682, %684 : vector<11x128xf32>
    %cst_248 = arith.constant 0.000000e+00 : f32
    %686 = vector.broadcast %cst_248 : f32 to vector<11x128xf32>
    %687 = arith.maximumf %685, %686 : vector<11x128xf32>
    %c176 = arith.constant 176 : index
    %c0_249 = arith.constant 0 : index
    %688 = vector.load %arg15[%c176, %c0_249] : memref<384x128xf32, #tpu.memory_space<vmem>>, vector<11x128xf32>
    tpu.vector_store %arg15[%c176, %c0_249], %687 {strides = array<i32>} : memref<384x128xf32, #tpu.memory_space<vmem>>, vector<11x128xf32>,
    %689 = vector.extract_strided_slice %14 {offsets = [0, 0, 0], sizes = [1, 11, 128], strides = [1, 1, 1]} : vector<4x11x128xf32> to vector<1x11x128xf32>
    %690 = vector.shape_cast %689 : vector<1x11x128xf32> to vector<11x128xf32>
    %c4_250 = arith.constant 4 : index
    %c0_251 = arith.constant 0 : index
    %691 = memref.load %arg4[%c4_250, %c0_251] : memref<8x8xf32, #tpu.memory_space<smem>>
    %692 = vector.broadcast %691 : f32 to vector<11x128xf32>
    %693 = arith.mulf %690, %692 : vector<11x128xf32>
    %694 = vector.extract_strided_slice %14 {offsets = [1, 0, 0], sizes = [1, 11, 128], strides = [1, 1, 1]} : vector<4x11x128xf32> to vector<1x11x128xf32>
    %695 = vector.shape_cast %694 : vector<1x11x128xf32> to vector<11x128xf32>
    %c4_252 = arith.constant 4 : index
    %c1_253 = arith.constant 1 : index
    %696 = memref.load %arg4[%c4_252, %c1_253] : memref<8x8xf32, #tpu.memory_space<smem>>
    %697 = vector.broadcast %696 : f32 to vector<11x128xf32>
    %698 = arith.mulf %695, %697 : vector<11x128xf32>
    %699 = arith.addf %693, %698 : vector<11x128xf32>
    %700 = vector.extract_strided_slice %26 {offsets = [0, 0, 0], sizes = [1, 11, 128], strides = [1, 1, 1]} : vector<4x11x128xf32> to vector<1x11x128xf32>
    %701 = vector.shape_cast %700 : vector<1x11x128xf32> to vector<11x128xf32>
    %c4_254 = arith.constant 4 : index
    %c2_255 = arith.constant 2 : index
    %702 = memref.load %arg4[%c4_254, %c2_255] : memref<8x8xf32, #tpu.memory_space<smem>>
    %703 = vector.broadcast %702 : f32 to vector<11x128xf32>
    %704 = arith.mulf %701, %703 : vector<11x128xf32>
    %705 = arith.addf %699, %704 : vector<11x128xf32>
    %706 = vector.extract_strided_slice %26 {offsets = [1, 0, 0], sizes = [1, 11, 128], strides = [1, 1, 1]} : vector<4x11x128xf32> to vector<1x11x128xf32>
    %707 = vector.shape_cast %706 : vector<1x11x128xf32> to vector<11x128xf32>
    %c4_256 = arith.constant 4 : index
    %c3_257 = arith.constant 3 : index
    %708 = memref.load %arg4[%c4_256, %c3_257] : memref<8x8xf32, #tpu.memory_space<smem>>
    %709 = vector.broadcast %708 : f32 to vector<11x128xf32>
    %710 = arith.mulf %707, %709 : vector<11x128xf32>
    %711 = arith.addf %705, %710 : vector<11x128xf32>
    %712 = vector.extract_strided_slice %38 {offsets = [0, 0, 0], sizes = [1, 11, 128], strides = [1, 1, 1]} : vector<4x11x128xf32> to vector<1x11x128xf32>
    %713 = vector.shape_cast %712 : vector<1x11x128xf32> to vector<11x128xf32>
    %c4_258 = arith.constant 4 : index
    %c4_259 = arith.constant 4 : index
    %714 = memref.load %arg4[%c4_258, %c4_259] : memref<8x8xf32, #tpu.memory_space<smem>>
    %715 = vector.broadcast %714 : f32 to vector<11x128xf32>
    %716 = arith.mulf %713, %715 : vector<11x128xf32>
    %717 = arith.addf %711, %716 : vector<11x128xf32>
    %718 = vector.extract_strided_slice %38 {offsets = [1, 0, 0], sizes = [1, 11, 128], strides = [1, 1, 1]} : vector<4x11x128xf32> to vector<1x11x128xf32>
    %719 = vector.shape_cast %718 : vector<1x11x128xf32> to vector<11x128xf32>
    %c4_260 = arith.constant 4 : index
    %c5_261 = arith.constant 5 : index
    %720 = memref.load %arg4[%c4_260, %c5_261] : memref<8x8xf32, #tpu.memory_space<smem>>
    %721 = vector.broadcast %720 : f32 to vector<11x128xf32>
    %722 = arith.mulf %719, %721 : vector<11x128xf32>
    %723 = arith.addf %717, %722 : vector<11x128xf32>
    %724 = vector.extract_strided_slice %50 {offsets = [0, 0, 0], sizes = [1, 11, 128], strides = [1, 1, 1]} : vector<4x11x128xf32> to vector<1x11x128xf32>
    %725 = vector.shape_cast %724 : vector<1x11x128xf32> to vector<11x128xf32>
    %c4_262 = arith.constant 4 : index
    %c6_263 = arith.constant 6 : index
    %726 = memref.load %arg4[%c4_262, %c6_263] : memref<8x8xf32, #tpu.memory_space<smem>>
    %727 = vector.broadcast %726 : f32 to vector<11x128xf32>
    %728 = arith.mulf %725, %727 : vector<11x128xf32>
    %729 = arith.addf %723, %728 : vector<11x128xf32>
    %730 = vector.extract_strided_slice %50 {offsets = [1, 0, 0], sizes = [1, 11, 128], strides = [1, 1, 1]} : vector<4x11x128xf32> to vector<1x11x128xf32>
    %731 = vector.shape_cast %730 : vector<1x11x128xf32> to vector<11x128xf32>
    %c4_264 = arith.constant 4 : index
    %c7_265 = arith.constant 7 : index
    %732 = memref.load %arg4[%c4_264, %c7_265] : memref<8x8xf32, #tpu.memory_space<smem>>
    %733 = vector.broadcast %732 : f32 to vector<11x128xf32>
    %734 = arith.mulf %731, %733 : vector<11x128xf32>
    %735 = arith.addf %729, %734 : vector<11x128xf32>
    %c4_266 = arith.constant 4 : index
    %736 = memref.load %arg5[%c4_266] : memref<8xf32, #tpu.memory_space<smem>>
    %737 = vector.broadcast %736 : f32 to vector<11x128xf32>
    %738 = arith.addf %735, %737 : vector<11x128xf32>
    %cst_267 = arith.constant 0.000000e+00 : f32
    %739 = vector.broadcast %cst_267 : f32 to vector<11x128xf32>
    %740 = arith.maximumf %738, %739 : vector<11x128xf32>
    %c192 = arith.constant 192 : index
    %c0_268 = arith.constant 0 : index
    %741 = vector.load %arg15[%c192, %c0_268] : memref<384x128xf32, #tpu.memory_space<vmem>>, vector<11x128xf32>
    tpu.vector_store %arg15[%c192, %c0_268], %740 {strides = array<i32>} : memref<384x128xf32, #tpu.memory_space<vmem>>, vector<11x128xf32>,
    %742 = vector.extract_strided_slice %14 {offsets = [1, 0, 0], sizes = [1, 11, 128], strides = [1, 1, 1]} : vector<4x11x128xf32> to vector<1x11x128xf32>
    %743 = vector.shape_cast %742 : vector<1x11x128xf32> to vector<11x128xf32>
    %c4_269 = arith.constant 4 : index
    %c0_270 = arith.constant 0 : index
    %744 = memref.load %arg4[%c4_269, %c0_270] : memref<8x8xf32, #tpu.memory_space<smem>>
    %745 = vector.broadcast %744 : f32 to vector<11x128xf32>
    %746 = arith.mulf %743, %745 : vector<11x128xf32>
    %747 = vector.extract_strided_slice %14 {offsets = [2, 0, 0], sizes = [1, 11, 128], strides = [1, 1, 1]} : vector<4x11x128xf32> to vector<1x11x128xf32>
    %748 = vector.shape_cast %747 : vector<1x11x128xf32> to vector<11x128xf32>
    %c4_271 = arith.constant 4 : index
    %c1_272 = arith.constant 1 : index
    %749 = memref.load %arg4[%c4_271, %c1_272] : memref<8x8xf32, #tpu.memory_space<smem>>
    %750 = vector.broadcast %749 : f32 to vector<11x128xf32>
    %751 = arith.mulf %748, %750 : vector<11x128xf32>
    %752 = arith.addf %746, %751 : vector<11x128xf32>
    %753 = vector.extract_strided_slice %26 {offsets = [1, 0, 0], sizes = [1, 11, 128], strides = [1, 1, 1]} : vector<4x11x128xf32> to vector<1x11x128xf32>
    %754 = vector.shape_cast %753 : vector<1x11x128xf32> to vector<11x128xf32>
    %c4_273 = arith.constant 4 : index
    %c2_274 = arith.constant 2 : index
    %755 = memref.load %arg4[%c4_273, %c2_274] : memref<8x8xf32, #tpu.memory_space<smem>>
    %756 = vector.broadcast %755 : f32 to vector<11x128xf32>
    %757 = arith.mulf %754, %756 : vector<11x128xf32>
    %758 = arith.addf %752, %757 : vector<11x128xf32>
    %759 = vector.extract_strided_slice %26 {offsets = [2, 0, 0], sizes = [1, 11, 128], strides = [1, 1, 1]} : vector<4x11x128xf32> to vector<1x11x128xf32>
    %760 = vector.shape_cast %759 : vector<1x11x128xf32> to vector<11x128xf32>
    %c4_275 = arith.constant 4 : index
    %c3_276 = arith.constant 3 : index
    %761 = memref.load %arg4[%c4_275, %c3_276] : memref<8x8xf32, #tpu.memory_space<smem>>
    %762 = vector.broadcast %761 : f32 to vector<11x128xf32>
    %763 = arith.mulf %760, %762 : vector<11x128xf32>
    %764 = arith.addf %758, %763 : vector<11x128xf32>
    %765 = vector.extract_strided_slice %38 {offsets = [1, 0, 0], sizes = [1, 11, 128], strides = [1, 1, 1]} : vector<4x11x128xf32> to vector<1x11x128xf32>
    %766 = vector.shape_cast %765 : vector<1x11x128xf32> to vector<11x128xf32>
    %c4_277 = arith.constant 4 : index
    %c4_278 = arith.constant 4 : index
    %767 = memref.load %arg4[%c4_277, %c4_278] : memref<8x8xf32, #tpu.memory_space<smem>>
    %768 = vector.broadcast %767 : f32 to vector<11x128xf32>
    %769 = arith.mulf %766, %768 : vector<11x128xf32>
    %770 = arith.addf %764, %769 : vector<11x128xf32>
    %771 = vector.extract_strided_slice %38 {offsets = [2, 0, 0], sizes = [1, 11, 128], strides = [1, 1, 1]} : vector<4x11x128xf32> to vector<1x11x128xf32>
    %772 = vector.shape_cast %771 : vector<1x11x128xf32> to vector<11x128xf32>
    %c4_279 = arith.constant 4 : index
    %c5_280 = arith.constant 5 : index
    %773 = memref.load %arg4[%c4_279, %c5_280] : memref<8x8xf32, #tpu.memory_space<smem>>
    %774 = vector.broadcast %773 : f32 to vector<11x128xf32>
    %775 = arith.mulf %772, %774 : vector<11x128xf32>
    %776 = arith.addf %770, %775 : vector<11x128xf32>
    %777 = vector.extract_strided_slice %50 {offsets = [1, 0, 0], sizes = [1, 11, 128], strides = [1, 1, 1]} : vector<4x11x128xf32> to vector<1x11x128xf32>
    %778 = vector.shape_cast %777 : vector<1x11x128xf32> to vector<11x128xf32>
    %c4_281 = arith.constant 4 : index
    %c6_282 = arith.constant 6 : index
    %779 = memref.load %arg4[%c4_281, %c6_282] : memref<8x8xf32, #tpu.memory_space<smem>>
    %780 = vector.broadcast %779 : f32 to vector<11x128xf32>
    %781 = arith.mulf %778, %780 : vector<11x128xf32>
    %782 = arith.addf %776, %781 : vector<11x128xf32>
    %783 = vector.extract_strided_slice %50 {offsets = [2, 0, 0], sizes = [1, 11, 128], strides = [1, 1, 1]} : vector<4x11x128xf32> to vector<1x11x128xf32>
    %784 = vector.shape_cast %783 : vector<1x11x128xf32> to vector<11x128xf32>
    %c4_283 = arith.constant 4 : index
    %c7_284 = arith.constant 7 : index
    %785 = memref.load %arg4[%c4_283, %c7_284] : memref<8x8xf32, #tpu.memory_space<smem>>
    %786 = vector.broadcast %785 : f32 to vector<11x128xf32>
    %787 = arith.mulf %784, %786 : vector<11x128xf32>
    %788 = arith.addf %782, %787 : vector<11x128xf32>
    %c4_285 = arith.constant 4 : index
    %789 = memref.load %arg5[%c4_285] : memref<8xf32, #tpu.memory_space<smem>>
    %790 = vector.broadcast %789 : f32 to vector<11x128xf32>
    %791 = arith.addf %788, %790 : vector<11x128xf32>
    %cst_286 = arith.constant 0.000000e+00 : f32
    %792 = vector.broadcast %cst_286 : f32 to vector<11x128xf32>
    %793 = arith.maximumf %791, %792 : vector<11x128xf32>
    %c208 = arith.constant 208 : index
    %c0_287 = arith.constant 0 : index
    %794 = vector.load %arg15[%c208, %c0_287] : memref<384x128xf32, #tpu.memory_space<vmem>>, vector<11x128xf32>
    tpu.vector_store %arg15[%c208, %c0_287], %793 {strides = array<i32>} : memref<384x128xf32, #tpu.memory_space<vmem>>, vector<11x128xf32>,
    %795 = vector.extract_strided_slice %14 {offsets = [2, 0, 0], sizes = [1, 11, 128], strides = [1, 1, 1]} : vector<4x11x128xf32> to vector<1x11x128xf32>
    %796 = vector.shape_cast %795 : vector<1x11x128xf32> to vector<11x128xf32>
    %c4_288 = arith.constant 4 : index
    %c0_289 = arith.constant 0 : index
    %797 = memref.load %arg4[%c4_288, %c0_289] : memref<8x8xf32, #tpu.memory_space<smem>>
    %798 = vector.broadcast %797 : f32 to vector<11x128xf32>
    %799 = arith.mulf %796, %798 : vector<11x128xf32>
    %800 = vector.extract_strided_slice %14 {offsets = [3, 0, 0], sizes = [1, 11, 128], strides = [1, 1, 1]} : vector<4x11x128xf32> to vector<1x11x128xf32>
    %801 = vector.shape_cast %800 : vector<1x11x128xf32> to vector<11x128xf32>
    %c4_290 = arith.constant 4 : index
    %c1_291 = arith.constant 1 : index
    %802 = memref.load %arg4[%c4_290, %c1_291] : memref<8x8xf32, #tpu.memory_space<smem>>
    %803 = vector.broadcast %802 : f32 to vector<11x128xf32>
    %804 = arith.mulf %801, %803 : vector<11x128xf32>
    %805 = arith.addf %799, %804 : vector<11x128xf32>
    %806 = vector.extract_strided_slice %26 {offsets = [2, 0, 0], sizes = [1, 11, 128], strides = [1, 1, 1]} : vector<4x11x128xf32> to vector<1x11x128xf32>
    %807 = vector.shape_cast %806 : vector<1x11x128xf32> to vector<11x128xf32>
    %c4_292 = arith.constant 4 : index
    %c2_293 = arith.constant 2 : index
    %808 = memref.load %arg4[%c4_292, %c2_293] : memref<8x8xf32, #tpu.memory_space<smem>>
    %809 = vector.broadcast %808 : f32 to vector<11x128xf32>
    %810 = arith.mulf %807, %809 : vector<11x128xf32>
    %811 = arith.addf %805, %810 : vector<11x128xf32>
    %812 = vector.extract_strided_slice %26 {offsets = [3, 0, 0], sizes = [1, 11, 128], strides = [1, 1, 1]} : vector<4x11x128xf32> to vector<1x11x128xf32>
    %813 = vector.shape_cast %812 : vector<1x11x128xf32> to vector<11x128xf32>
    %c4_294 = arith.constant 4 : index
    %c3_295 = arith.constant 3 : index
    %814 = memref.load %arg4[%c4_294, %c3_295] : memref<8x8xf32, #tpu.memory_space<smem>>
    %815 = vector.broadcast %814 : f32 to vector<11x128xf32>
    %816 = arith.mulf %813, %815 : vector<11x128xf32>
    %817 = arith.addf %811, %816 : vector<11x128xf32>
    %818 = vector.extract_strided_slice %38 {offsets = [2, 0, 0], sizes = [1, 11, 128], strides = [1, 1, 1]} : vector<4x11x128xf32> to vector<1x11x128xf32>
    %819 = vector.shape_cast %818 : vector<1x11x128xf32> to vector<11x128xf32>
    %c4_296 = arith.constant 4 : index
    %c4_297 = arith.constant 4 : index
    %820 = memref.load %arg4[%c4_296, %c4_297] : memref<8x8xf32, #tpu.memory_space<smem>>
    %821 = vector.broadcast %820 : f32 to vector<11x128xf32>
    %822 = arith.mulf %819, %821 : vector<11x128xf32>
    %823 = arith.addf %817, %822 : vector<11x128xf32>
    %824 = vector.extract_strided_slice %38 {offsets = [3, 0, 0], sizes = [1, 11, 128], strides = [1, 1, 1]} : vector<4x11x128xf32> to vector<1x11x128xf32>
    %825 = vector.shape_cast %824 : vector<1x11x128xf32> to vector<11x128xf32>
    %c4_298 = arith.constant 4 : index
    %c5_299 = arith.constant 5 : index
    %826 = memref.load %arg4[%c4_298, %c5_299] : memref<8x8xf32, #tpu.memory_space<smem>>
    %827 = vector.broadcast %826 : f32 to vector<11x128xf32>
    %828 = arith.mulf %825, %827 : vector<11x128xf32>
    %829 = arith.addf %823, %828 : vector<11x128xf32>
    %830 = vector.extract_strided_slice %50 {offsets = [2, 0, 0], sizes = [1, 11, 128], strides = [1, 1, 1]} : vector<4x11x128xf32> to vector<1x11x128xf32>
    %831 = vector.shape_cast %830 : vector<1x11x128xf32> to vector<11x128xf32>
    %c4_300 = arith.constant 4 : index
    %c6_301 = arith.constant 6 : index
    %832 = memref.load %arg4[%c4_300, %c6_301] : memref<8x8xf32, #tpu.memory_space<smem>>
    %833 = vector.broadcast %832 : f32 to vector<11x128xf32>
    %834 = arith.mulf %831, %833 : vector<11x128xf32>
    %835 = arith.addf %829, %834 : vector<11x128xf32>
    %836 = vector.extract_strided_slice %50 {offsets = [3, 0, 0], sizes = [1, 11, 128], strides = [1, 1, 1]} : vector<4x11x128xf32> to vector<1x11x128xf32>
    %837 = vector.shape_cast %836 : vector<1x11x128xf32> to vector<11x128xf32>
    %c4_302 = arith.constant 4 : index
    %c7_303 = arith.constant 7 : index
    %838 = memref.load %arg4[%c4_302, %c7_303] : memref<8x8xf32, #tpu.memory_space<smem>>
    %839 = vector.broadcast %838 : f32 to vector<11x128xf32>
    %840 = arith.mulf %837, %839 : vector<11x128xf32>
    %841 = arith.addf %835, %840 : vector<11x128xf32>
    %c4_304 = arith.constant 4 : index
    %842 = memref.load %arg5[%c4_304] : memref<8xf32, #tpu.memory_space<smem>>
    %843 = vector.broadcast %842 : f32 to vector<11x128xf32>
    %844 = arith.addf %841, %843 : vector<11x128xf32>
    %cst_305 = arith.constant 0.000000e+00 : f32
    %845 = vector.broadcast %cst_305 : f32 to vector<11x128xf32>
    %846 = arith.maximumf %844, %845 : vector<11x128xf32>
    %c224 = arith.constant 224 : index
    %c0_306 = arith.constant 0 : index
    %847 = vector.load %arg15[%c224, %c0_306] : memref<384x128xf32, #tpu.memory_space<vmem>>, vector<11x128xf32>
    tpu.vector_store %arg15[%c224, %c0_306], %846 {strides = array<i32>} : memref<384x128xf32, #tpu.memory_space<vmem>>, vector<11x128xf32>,
    %848 = vector.extract_strided_slice %14 {offsets = [0, 0, 0], sizes = [1, 11, 128], strides = [1, 1, 1]} : vector<4x11x128xf32> to vector<1x11x128xf32>
    %849 = vector.shape_cast %848 : vector<1x11x128xf32> to vector<11x128xf32>
    %c5_307 = arith.constant 5 : index
    %c0_308 = arith.constant 0 : index
    %850 = memref.load %arg4[%c5_307, %c0_308] : memref<8x8xf32, #tpu.memory_space<smem>>
    %851 = vector.broadcast %850 : f32 to vector<11x128xf32>
    %852 = arith.mulf %849, %851 : vector<11x128xf32>
    %853 = vector.extract_strided_slice %14 {offsets = [1, 0, 0], sizes = [1, 11, 128], strides = [1, 1, 1]} : vector<4x11x128xf32> to vector<1x11x128xf32>
    %854 = vector.shape_cast %853 : vector<1x11x128xf32> to vector<11x128xf32>
    %c5_309 = arith.constant 5 : index
    %c1_310 = arith.constant 1 : index
    %855 = memref.load %arg4[%c5_309, %c1_310] : memref<8x8xf32, #tpu.memory_space<smem>>
    %856 = vector.broadcast %855 : f32 to vector<11x128xf32>
    %857 = arith.mulf %854, %856 : vector<11x128xf32>
    %858 = arith.addf %852, %857 : vector<11x128xf32>
    %859 = vector.extract_strided_slice %26 {offsets = [0, 0, 0], sizes = [1, 11, 128], strides = [1, 1, 1]} : vector<4x11x128xf32> to vector<1x11x128xf32>
    %860 = vector.shape_cast %859 : vector<1x11x128xf32> to vector<11x128xf32>
    %c5_311 = arith.constant 5 : index
    %c2_312 = arith.constant 2 : index
    %861 = memref.load %arg4[%c5_311, %c2_312] : memref<8x8xf32, #tpu.memory_space<smem>>
    %862 = vector.broadcast %861 : f32 to vector<11x128xf32>
    %863 = arith.mulf %860, %862 : vector<11x128xf32>
    %864 = arith.addf %858, %863 : vector<11x128xf32>
    %865 = vector.extract_strided_slice %26 {offsets = [1, 0, 0], sizes = [1, 11, 128], strides = [1, 1, 1]} : vector<4x11x128xf32> to vector<1x11x128xf32>
    %866 = vector.shape_cast %865 : vector<1x11x128xf32> to vector<11x128xf32>
    %c5_313 = arith.constant 5 : index
    %c3_314 = arith.constant 3 : index
    %867 = memref.load %arg4[%c5_313, %c3_314] : memref<8x8xf32, #tpu.memory_space<smem>>
    %868 = vector.broadcast %867 : f32 to vector<11x128xf32>
    %869 = arith.mulf %866, %868 : vector<11x128xf32>
    %870 = arith.addf %864, %869 : vector<11x128xf32>
    %871 = vector.extract_strided_slice %38 {offsets = [0, 0, 0], sizes = [1, 11, 128], strides = [1, 1, 1]} : vector<4x11x128xf32> to vector<1x11x128xf32>
    %872 = vector.shape_cast %871 : vector<1x11x128xf32> to vector<11x128xf32>
    %c5_315 = arith.constant 5 : index
    %c4_316 = arith.constant 4 : index
    %873 = memref.load %arg4[%c5_315, %c4_316] : memref<8x8xf32, #tpu.memory_space<smem>>
    %874 = vector.broadcast %873 : f32 to vector<11x128xf32>
    %875 = arith.mulf %872, %874 : vector<11x128xf32>
    %876 = arith.addf %870, %875 : vector<11x128xf32>
    %877 = vector.extract_strided_slice %38 {offsets = [1, 0, 0], sizes = [1, 11, 128], strides = [1, 1, 1]} : vector<4x11x128xf32> to vector<1x11x128xf32>
    %878 = vector.shape_cast %877 : vector<1x11x128xf32> to vector<11x128xf32>
    %c5_317 = arith.constant 5 : index
    %c5_318 = arith.constant 5 : index
    %879 = memref.load %arg4[%c5_317, %c5_318] : memref<8x8xf32, #tpu.memory_space<smem>>
    %880 = vector.broadcast %879 : f32 to vector<11x128xf32>
    %881 = arith.mulf %878, %880 : vector<11x128xf32>
    %882 = arith.addf %876, %881 : vector<11x128xf32>
    %883 = vector.extract_strided_slice %50 {offsets = [0, 0, 0], sizes = [1, 11, 128], strides = [1, 1, 1]} : vector<4x11x128xf32> to vector<1x11x128xf32>
    %884 = vector.shape_cast %883 : vector<1x11x128xf32> to vector<11x128xf32>
    %c5_319 = arith.constant 5 : index
    %c6_320 = arith.constant 6 : index
    %885 = memref.load %arg4[%c5_319, %c6_320] : memref<8x8xf32, #tpu.memory_space<smem>>
    %886 = vector.broadcast %885 : f32 to vector<11x128xf32>
    %887 = arith.mulf %884, %886 : vector<11x128xf32>
    %888 = arith.addf %882, %887 : vector<11x128xf32>
    %889 = vector.extract_strided_slice %50 {offsets = [1, 0, 0], sizes = [1, 11, 128], strides = [1, 1, 1]} : vector<4x11x128xf32> to vector<1x11x128xf32>
    %890 = vector.shape_cast %889 : vector<1x11x128xf32> to vector<11x128xf32>
    %c5_321 = arith.constant 5 : index
    %c7_322 = arith.constant 7 : index
    %891 = memref.load %arg4[%c5_321, %c7_322] : memref<8x8xf32, #tpu.memory_space<smem>>
    %892 = vector.broadcast %891 : f32 to vector<11x128xf32>
    %893 = arith.mulf %890, %892 : vector<11x128xf32>
    %894 = arith.addf %888, %893 : vector<11x128xf32>
    %c5_323 = arith.constant 5 : index
    %895 = memref.load %arg5[%c5_323] : memref<8xf32, #tpu.memory_space<smem>>
    %896 = vector.broadcast %895 : f32 to vector<11x128xf32>
    %897 = arith.addf %894, %896 : vector<11x128xf32>
    %cst_324 = arith.constant 0.000000e+00 : f32
    %898 = vector.broadcast %cst_324 : f32 to vector<11x128xf32>
    %899 = arith.maximumf %897, %898 : vector<11x128xf32>
    %c240 = arith.constant 240 : index
    %c0_325 = arith.constant 0 : index
    %900 = vector.load %arg15[%c240, %c0_325] : memref<384x128xf32, #tpu.memory_space<vmem>>, vector<11x128xf32>
    tpu.vector_store %arg15[%c240, %c0_325], %899 {strides = array<i32>} : memref<384x128xf32, #tpu.memory_space<vmem>>, vector<11x128xf32>,
    %901 = vector.extract_strided_slice %14 {offsets = [1, 0, 0], sizes = [1, 11, 128], strides = [1, 1, 1]} : vector<4x11x128xf32> to vector<1x11x128xf32>
    %902 = vector.shape_cast %901 : vector<1x11x128xf32> to vector<11x128xf32>
    %c5_326 = arith.constant 5 : index
    %c0_327 = arith.constant 0 : index
    %903 = memref.load %arg4[%c5_326, %c0_327] : memref<8x8xf32, #tpu.memory_space<smem>>
    %904 = vector.broadcast %903 : f32 to vector<11x128xf32>
    %905 = arith.mulf %902, %904 : vector<11x128xf32>
    %906 = vector.extract_strided_slice %14 {offsets = [2, 0, 0], sizes = [1, 11, 128], strides = [1, 1, 1]} : vector<4x11x128xf32> to vector<1x11x128xf32>
    %907 = vector.shape_cast %906 : vector<1x11x128xf32> to vector<11x128xf32>
    %c5_328 = arith.constant 5 : index
    %c1_329 = arith.constant 1 : index
    %908 = memref.load %arg4[%c5_328, %c1_329] : memref<8x8xf32, #tpu.memory_space<smem>>
    %909 = vector.broadcast %908 : f32 to vector<11x128xf32>
    %910 = arith.mulf %907, %909 : vector<11x128xf32>
    %911 = arith.addf %905, %910 : vector<11x128xf32>
    %912 = vector.extract_strided_slice %26 {offsets = [1, 0, 0], sizes = [1, 11, 128], strides = [1, 1, 1]} : vector<4x11x128xf32> to vector<1x11x128xf32>
    %913 = vector.shape_cast %912 : vector<1x11x128xf32> to vector<11x128xf32>
    %c5_330 = arith.constant 5 : index
    %c2_331 = arith.constant 2 : index
    %914 = memref.load %arg4[%c5_330, %c2_331] : memref<8x8xf32, #tpu.memory_space<smem>>
    %915 = vector.broadcast %914 : f32 to vector<11x128xf32>
    %916 = arith.mulf %913, %915 : vector<11x128xf32>
    %917 = arith.addf %911, %916 : vector<11x128xf32>
    %918 = vector.extract_strided_slice %26 {offsets = [2, 0, 0], sizes = [1, 11, 128], strides = [1, 1, 1]} : vector<4x11x128xf32> to vector<1x11x128xf32>
    %919 = vector.shape_cast %918 : vector<1x11x128xf32> to vector<11x128xf32>
    %c5_332 = arith.constant 5 : index
    %c3_333 = arith.constant 3 : index
    %920 = memref.load %arg4[%c5_332, %c3_333] : memref<8x8xf32, #tpu.memory_space<smem>>
    %921 = vector.broadcast %920 : f32 to vector<11x128xf32>
    %922 = arith.mulf %919, %921 : vector<11x128xf32>
    %923 = arith.addf %917, %922 : vector<11x128xf32>
    %924 = vector.extract_strided_slice %38 {offsets = [1, 0, 0], sizes = [1, 11, 128], strides = [1, 1, 1]} : vector<4x11x128xf32> to vector<1x11x128xf32>
    %925 = vector.shape_cast %924 : vector<1x11x128xf32> to vector<11x128xf32>
    %c5_334 = arith.constant 5 : index
    %c4_335 = arith.constant 4 : index
    %926 = memref.load %arg4[%c5_334, %c4_335] : memref<8x8xf32, #tpu.memory_space<smem>>
    %927 = vector.broadcast %926 : f32 to vector<11x128xf32>
    %928 = arith.mulf %925, %927 : vector<11x128xf32>
    %929 = arith.addf %923, %928 : vector<11x128xf32>
    %930 = vector.extract_strided_slice %38 {offsets = [2, 0, 0], sizes = [1, 11, 128], strides = [1, 1, 1]} : vector<4x11x128xf32> to vector<1x11x128xf32>
    %931 = vector.shape_cast %930 : vector<1x11x128xf32> to vector<11x128xf32>
    %c5_336 = arith.constant 5 : index
    %c5_337 = arith.constant 5 : index
    %932 = memref.load %arg4[%c5_336, %c5_337] : memref<8x8xf32, #tpu.memory_space<smem>>
    %933 = vector.broadcast %932 : f32 to vector<11x128xf32>
    %934 = arith.mulf %931, %933 : vector<11x128xf32>
    %935 = arith.addf %929, %934 : vector<11x128xf32>
    %936 = vector.extract_strided_slice %50 {offsets = [1, 0, 0], sizes = [1, 11, 128], strides = [1, 1, 1]} : vector<4x11x128xf32> to vector<1x11x128xf32>
    %937 = vector.shape_cast %936 : vector<1x11x128xf32> to vector<11x128xf32>
    %c5_338 = arith.constant 5 : index
    %c6_339 = arith.constant 6 : index
    %938 = memref.load %arg4[%c5_338, %c6_339] : memref<8x8xf32, #tpu.memory_space<smem>>
    %939 = vector.broadcast %938 : f32 to vector<11x128xf32>
    %940 = arith.mulf %937, %939 : vector<11x128xf32>
    %941 = arith.addf %935, %940 : vector<11x128xf32>
    %942 = vector.extract_strided_slice %50 {offsets = [2, 0, 0], sizes = [1, 11, 128], strides = [1, 1, 1]} : vector<4x11x128xf32> to vector<1x11x128xf32>
    %943 = vector.shape_cast %942 : vector<1x11x128xf32> to vector<11x128xf32>
    %c5_340 = arith.constant 5 : index
    %c7_341 = arith.constant 7 : index
    %944 = memref.load %arg4[%c5_340, %c7_341] : memref<8x8xf32, #tpu.memory_space<smem>>
    %945 = vector.broadcast %944 : f32 to vector<11x128xf32>
    %946 = arith.mulf %943, %945 : vector<11x128xf32>
    %947 = arith.addf %941, %946 : vector<11x128xf32>
    %c5_342 = arith.constant 5 : index
    %948 = memref.load %arg5[%c5_342] : memref<8xf32, #tpu.memory_space<smem>>
    %949 = vector.broadcast %948 : f32 to vector<11x128xf32>
    %950 = arith.addf %947, %949 : vector<11x128xf32>
    %cst_343 = arith.constant 0.000000e+00 : f32
    %951 = vector.broadcast %cst_343 : f32 to vector<11x128xf32>
    %952 = arith.maximumf %950, %951 : vector<11x128xf32>
    %c256 = arith.constant 256 : index
    %c0_344 = arith.constant 0 : index
    %953 = vector.load %arg15[%c256, %c0_344] : memref<384x128xf32, #tpu.memory_space<vmem>>, vector<11x128xf32>
    tpu.vector_store %arg15[%c256, %c0_344], %952 {strides = array<i32>} : memref<384x128xf32, #tpu.memory_space<vmem>>, vector<11x128xf32>,
    %954 = vector.extract_strided_slice %14 {offsets = [2, 0, 0], sizes = [1, 11, 128], strides = [1, 1, 1]} : vector<4x11x128xf32> to vector<1x11x128xf32>
    %955 = vector.shape_cast %954 : vector<1x11x128xf32> to vector<11x128xf32>
    %c5_345 = arith.constant 5 : index
    %c0_346 = arith.constant 0 : index
    %956 = memref.load %arg4[%c5_345, %c0_346] : memref<8x8xf32, #tpu.memory_space<smem>>
    %957 = vector.broadcast %956 : f32 to vector<11x128xf32>
    %958 = arith.mulf %955, %957 : vector<11x128xf32>
    %959 = vector.extract_strided_slice %14 {offsets = [3, 0, 0], sizes = [1, 11, 128], strides = [1, 1, 1]} : vector<4x11x128xf32> to vector<1x11x128xf32>
    %960 = vector.shape_cast %959 : vector<1x11x128xf32> to vector<11x128xf32>
    %c5_347 = arith.constant 5 : index
    %c1_348 = arith.constant 1 : index
    %961 = memref.load %arg4[%c5_347, %c1_348] : memref<8x8xf32, #tpu.memory_space<smem>>
    %962 = vector.broadcast %961 : f32 to vector<11x128xf32>
    %963 = arith.mulf %960, %962 : vector<11x128xf32>
    %964 = arith.addf %958, %963 : vector<11x128xf32>
    %965 = vector.extract_strided_slice %26 {offsets = [2, 0, 0], sizes = [1, 11, 128], strides = [1, 1, 1]} : vector<4x11x128xf32> to vector<1x11x128xf32>
    %966 = vector.shape_cast %965 : vector<1x11x128xf32> to vector<11x128xf32>
    %c5_349 = arith.constant 5 : index
    %c2_350 = arith.constant 2 : index
    %967 = memref.load %arg4[%c5_349, %c2_350] : memref<8x8xf32, #tpu.memory_space<smem>>
    %968 = vector.broadcast %967 : f32 to vector<11x128xf32>
    %969 = arith.mulf %966, %968 : vector<11x128xf32>
    %970 = arith.addf %964, %969 : vector<11x128xf32>
    %971 = vector.extract_strided_slice %26 {offsets = [3, 0, 0], sizes = [1, 11, 128], strides = [1, 1, 1]} : vector<4x11x128xf32> to vector<1x11x128xf32>
    %972 = vector.shape_cast %971 : vector<1x11x128xf32> to vector<11x128xf32>
    %c5_351 = arith.constant 5 : index
    %c3_352 = arith.constant 3 : index
    %973 = memref.load %arg4[%c5_351, %c3_352] : memref<8x8xf32, #tpu.memory_space<smem>>
    %974 = vector.broadcast %973 : f32 to vector<11x128xf32>
    %975 = arith.mulf %972, %974 : vector<11x128xf32>
    %976 = arith.addf %970, %975 : vector<11x128xf32>
    %977 = vector.extract_strided_slice %38 {offsets = [2, 0, 0], sizes = [1, 11, 128], strides = [1, 1, 1]} : vector<4x11x128xf32> to vector<1x11x128xf32>
    %978 = vector.shape_cast %977 : vector<1x11x128xf32> to vector<11x128xf32>
    %c5_353 = arith.constant 5 : index
    %c4_354 = arith.constant 4 : index
    %979 = memref.load %arg4[%c5_353, %c4_354] : memref<8x8xf32, #tpu.memory_space<smem>>
    %980 = vector.broadcast %979 : f32 to vector<11x128xf32>
    %981 = arith.mulf %978, %980 : vector<11x128xf32>
    %982 = arith.addf %976, %981 : vector<11x128xf32>
    %983 = vector.extract_strided_slice %38 {offsets = [3, 0, 0], sizes = [1, 11, 128], strides = [1, 1, 1]} : vector<4x11x128xf32> to vector<1x11x128xf32>
    %984 = vector.shape_cast %983 : vector<1x11x128xf32> to vector<11x128xf32>
    %c5_355 = arith.constant 5 : index
    %c5_356 = arith.constant 5 : index
    %985 = memref.load %arg4[%c5_355, %c5_356] : memref<8x8xf32, #tpu.memory_space<smem>>
    %986 = vector.broadcast %985 : f32 to vector<11x128xf32>
    %987 = arith.mulf %984, %986 : vector<11x128xf32>
    %988 = arith.addf %982, %987 : vector<11x128xf32>
    %989 = vector.extract_strided_slice %50 {offsets = [2, 0, 0], sizes = [1, 11, 128], strides = [1, 1, 1]} : vector<4x11x128xf32> to vector<1x11x128xf32>
    %990 = vector.shape_cast %989 : vector<1x11x128xf32> to vector<11x128xf32>
    %c5_357 = arith.constant 5 : index
    %c6_358 = arith.constant 6 : index
    %991 = memref.load %arg4[%c5_357, %c6_358] : memref<8x8xf32, #tpu.memory_space<smem>>
    %992 = vector.broadcast %991 : f32 to vector<11x128xf32>
    %993 = arith.mulf %990, %992 : vector<11x128xf32>
    %994 = arith.addf %988, %993 : vector<11x128xf32>
    %995 = vector.extract_strided_slice %50 {offsets = [3, 0, 0], sizes = [1, 11, 128], strides = [1, 1, 1]} : vector<4x11x128xf32> to vector<1x11x128xf32>
    %996 = vector.shape_cast %995 : vector<1x11x128xf32> to vector<11x128xf32>
    %c5_359 = arith.constant 5 : index
    %c7_360 = arith.constant 7 : index
    %997 = memref.load %arg4[%c5_359, %c7_360] : memref<8x8xf32, #tpu.memory_space<smem>>
    %998 = vector.broadcast %997 : f32 to vector<11x128xf32>
    %999 = arith.mulf %996, %998 : vector<11x128xf32>
    %1000 = arith.addf %994, %999 : vector<11x128xf32>
    %c5_361 = arith.constant 5 : index
    %1001 = memref.load %arg5[%c5_361] : memref<8xf32, #tpu.memory_space<smem>>
    %1002 = vector.broadcast %1001 : f32 to vector<11x128xf32>
    %1003 = arith.addf %1000, %1002 : vector<11x128xf32>
    %cst_362 = arith.constant 0.000000e+00 : f32
    %1004 = vector.broadcast %cst_362 : f32 to vector<11x128xf32>
    %1005 = arith.maximumf %1003, %1004 : vector<11x128xf32>
    %c272 = arith.constant 272 : index
    %c0_363 = arith.constant 0 : index
    %1006 = vector.load %arg15[%c272, %c0_363] : memref<384x128xf32, #tpu.memory_space<vmem>>, vector<11x128xf32>
    tpu.vector_store %arg15[%c272, %c0_363], %1005 {strides = array<i32>} : memref<384x128xf32, #tpu.memory_space<vmem>>, vector<11x128xf32>,
    %1007 = vector.extract_strided_slice %14 {offsets = [0, 0, 0], sizes = [1, 11, 128], strides = [1, 1, 1]} : vector<4x11x128xf32> to vector<1x11x128xf32>
    %1008 = vector.shape_cast %1007 : vector<1x11x128xf32> to vector<11x128xf32>
    %c6_364 = arith.constant 6 : index
    %c0_365 = arith.constant 0 : index
    %1009 = memref.load %arg4[%c6_364, %c0_365] : memref<8x8xf32, #tpu.memory_space<smem>>
    %1010 = vector.broadcast %1009 : f32 to vector<11x128xf32>
    %1011 = arith.mulf %1008, %1010 : vector<11x128xf32>
    %1012 = vector.extract_strided_slice %14 {offsets = [1, 0, 0], sizes = [1, 11, 128], strides = [1, 1, 1]} : vector<4x11x128xf32> to vector<1x11x128xf32>
    %1013 = vector.shape_cast %1012 : vector<1x11x128xf32> to vector<11x128xf32>
    %c6_366 = arith.constant 6 : index
    %c1_367 = arith.constant 1 : index
    %1014 = memref.load %arg4[%c6_366, %c1_367] : memref<8x8xf32, #tpu.memory_space<smem>>
    %1015 = vector.broadcast %1014 : f32 to vector<11x128xf32>
    %1016 = arith.mulf %1013, %1015 : vector<11x128xf32>
    %1017 = arith.addf %1011, %1016 : vector<11x128xf32>
    %1018 = vector.extract_strided_slice %26 {offsets = [0, 0, 0], sizes = [1, 11, 128], strides = [1, 1, 1]} : vector<4x11x128xf32> to vector<1x11x128xf32>
    %1019 = vector.shape_cast %1018 : vector<1x11x128xf32> to vector<11x128xf32>
    %c6_368 = arith.constant 6 : index
    %c2_369 = arith.constant 2 : index
    %1020 = memref.load %arg4[%c6_368, %c2_369] : memref<8x8xf32, #tpu.memory_space<smem>>
    %1021 = vector.broadcast %1020 : f32 to vector<11x128xf32>
    %1022 = arith.mulf %1019, %1021 : vector<11x128xf32>
    %1023 = arith.addf %1017, %1022 : vector<11x128xf32>
    %1024 = vector.extract_strided_slice %26 {offsets = [1, 0, 0], sizes = [1, 11, 128], strides = [1, 1, 1]} : vector<4x11x128xf32> to vector<1x11x128xf32>
    %1025 = vector.shape_cast %1024 : vector<1x11x128xf32> to vector<11x128xf32>
    %c6_370 = arith.constant 6 : index
    %c3_371 = arith.constant 3 : index
    %1026 = memref.load %arg4[%c6_370, %c3_371] : memref<8x8xf32, #tpu.memory_space<smem>>
    %1027 = vector.broadcast %1026 : f32 to vector<11x128xf32>
    %1028 = arith.mulf %1025, %1027 : vector<11x128xf32>
    %1029 = arith.addf %1023, %1028 : vector<11x128xf32>
    %1030 = vector.extract_strided_slice %38 {offsets = [0, 0, 0], sizes = [1, 11, 128], strides = [1, 1, 1]} : vector<4x11x128xf32> to vector<1x11x128xf32>
    %1031 = vector.shape_cast %1030 : vector<1x11x128xf32> to vector<11x128xf32>
    %c6_372 = arith.constant 6 : index
    %c4_373 = arith.constant 4 : index
    %1032 = memref.load %arg4[%c6_372, %c4_373] : memref<8x8xf32, #tpu.memory_space<smem>>
    %1033 = vector.broadcast %1032 : f32 to vector<11x128xf32>
    %1034 = arith.mulf %1031, %1033 : vector<11x128xf32>
    %1035 = arith.addf %1029, %1034 : vector<11x128xf32>
    %1036 = vector.extract_strided_slice %38 {offsets = [1, 0, 0], sizes = [1, 11, 128], strides = [1, 1, 1]} : vector<4x11x128xf32> to vector<1x11x128xf32>
    %1037 = vector.shape_cast %1036 : vector<1x11x128xf32> to vector<11x128xf32>
    %c6_374 = arith.constant 6 : index
    %c5_375 = arith.constant 5 : index
    %1038 = memref.load %arg4[%c6_374, %c5_375] : memref<8x8xf32, #tpu.memory_space<smem>>
    %1039 = vector.broadcast %1038 : f32 to vector<11x128xf32>
    %1040 = arith.mulf %1037, %1039 : vector<11x128xf32>
    %1041 = arith.addf %1035, %1040 : vector<11x128xf32>
    %1042 = vector.extract_strided_slice %50 {offsets = [0, 0, 0], sizes = [1, 11, 128], strides = [1, 1, 1]} : vector<4x11x128xf32> to vector<1x11x128xf32>
    %1043 = vector.shape_cast %1042 : vector<1x11x128xf32> to vector<11x128xf32>
    %c6_376 = arith.constant 6 : index
    %c6_377 = arith.constant 6 : index
    %1044 = memref.load %arg4[%c6_376, %c6_377] : memref<8x8xf32, #tpu.memory_space<smem>>
    %1045 = vector.broadcast %1044 : f32 to vector<11x128xf32>
    %1046 = arith.mulf %1043, %1045 : vector<11x128xf32>
    %1047 = arith.addf %1041, %1046 : vector<11x128xf32>
    %1048 = vector.extract_strided_slice %50 {offsets = [1, 0, 0], sizes = [1, 11, 128], strides = [1, 1, 1]} : vector<4x11x128xf32> to vector<1x11x128xf32>
    %1049 = vector.shape_cast %1048 : vector<1x11x128xf32> to vector<11x128xf32>
    %c6_378 = arith.constant 6 : index
    %c7_379 = arith.constant 7 : index
    %1050 = memref.load %arg4[%c6_378, %c7_379] : memref<8x8xf32, #tpu.memory_space<smem>>
    %1051 = vector.broadcast %1050 : f32 to vector<11x128xf32>
    %1052 = arith.mulf %1049, %1051 : vector<11x128xf32>
    %1053 = arith.addf %1047, %1052 : vector<11x128xf32>
    %c6_380 = arith.constant 6 : index
    %1054 = memref.load %arg5[%c6_380] : memref<8xf32, #tpu.memory_space<smem>>
    %1055 = vector.broadcast %1054 : f32 to vector<11x128xf32>
    %1056 = arith.addf %1053, %1055 : vector<11x128xf32>
    %cst_381 = arith.constant 0.000000e+00 : f32
    %1057 = vector.broadcast %cst_381 : f32 to vector<11x128xf32>
    %1058 = arith.maximumf %1056, %1057 : vector<11x128xf32>
    %c288 = arith.constant 288 : index
    %c0_382 = arith.constant 0 : index
    %1059 = vector.load %arg15[%c288, %c0_382] : memref<384x128xf32, #tpu.memory_space<vmem>>, vector<11x128xf32>
    tpu.vector_store %arg15[%c288, %c0_382], %1058 {strides = array<i32>} : memref<384x128xf32, #tpu.memory_space<vmem>>, vector<11x128xf32>,
    %1060 = vector.extract_strided_slice %14 {offsets = [1, 0, 0], sizes = [1, 11, 128], strides = [1, 1, 1]} : vector<4x11x128xf32> to vector<1x11x128xf32>
    %1061 = vector.shape_cast %1060 : vector<1x11x128xf32> to vector<11x128xf32>
    %c6_383 = arith.constant 6 : index
    %c0_384 = arith.constant 0 : index
    %1062 = memref.load %arg4[%c6_383, %c0_384] : memref<8x8xf32, #tpu.memory_space<smem>>
    %1063 = vector.broadcast %1062 : f32 to vector<11x128xf32>
    %1064 = arith.mulf %1061, %1063 : vector<11x128xf32>
    %1065 = vector.extract_strided_slice %14 {offsets = [2, 0, 0], sizes = [1, 11, 128], strides = [1, 1, 1]} : vector<4x11x128xf32> to vector<1x11x128xf32>
    %1066 = vector.shape_cast %1065 : vector<1x11x128xf32> to vector<11x128xf32>
    %c6_385 = arith.constant 6 : index
    %c1_386 = arith.constant 1 : index
    %1067 = memref.load %arg4[%c6_385, %c1_386] : memref<8x8xf32, #tpu.memory_space<smem>>
    %1068 = vector.broadcast %1067 : f32 to vector<11x128xf32>
    %1069 = arith.mulf %1066, %1068 : vector<11x128xf32>
    %1070 = arith.addf %1064, %1069 : vector<11x128xf32>
    %1071 = vector.extract_strided_slice %26 {offsets = [1, 0, 0], sizes = [1, 11, 128], strides = [1, 1, 1]} : vector<4x11x128xf32> to vector<1x11x128xf32>
    %1072 = vector.shape_cast %1071 : vector<1x11x128xf32> to vector<11x128xf32>
    %c6_387 = arith.constant 6 : index
    %c2_388 = arith.constant 2 : index
    %1073 = memref.load %arg4[%c6_387, %c2_388] : memref<8x8xf32, #tpu.memory_space<smem>>
    %1074 = vector.broadcast %1073 : f32 to vector<11x128xf32>
    %1075 = arith.mulf %1072, %1074 : vector<11x128xf32>
    %1076 = arith.addf %1070, %1075 : vector<11x128xf32>
    %1077 = vector.extract_strided_slice %26 {offsets = [2, 0, 0], sizes = [1, 11, 128], strides = [1, 1, 1]} : vector<4x11x128xf32> to vector<1x11x128xf32>
    %1078 = vector.shape_cast %1077 : vector<1x11x128xf32> to vector<11x128xf32>
    %c6_389 = arith.constant 6 : index
    %c3_390 = arith.constant 3 : index
    %1079 = memref.load %arg4[%c6_389, %c3_390] : memref<8x8xf32, #tpu.memory_space<smem>>
    %1080 = vector.broadcast %1079 : f32 to vector<11x128xf32>
    %1081 = arith.mulf %1078, %1080 : vector<11x128xf32>
    %1082 = arith.addf %1076, %1081 : vector<11x128xf32>
    %1083 = vector.extract_strided_slice %38 {offsets = [1, 0, 0], sizes = [1, 11, 128], strides = [1, 1, 1]} : vector<4x11x128xf32> to vector<1x11x128xf32>
    %1084 = vector.shape_cast %1083 : vector<1x11x128xf32> to vector<11x128xf32>
    %c6_391 = arith.constant 6 : index
    %c4_392 = arith.constant 4 : index
    %1085 = memref.load %arg4[%c6_391, %c4_392] : memref<8x8xf32, #tpu.memory_space<smem>>
    %1086 = vector.broadcast %1085 : f32 to vector<11x128xf32>
    %1087 = arith.mulf %1084, %1086 : vector<11x128xf32>
    %1088 = arith.addf %1082, %1087 : vector<11x128xf32>
    %1089 = vector.extract_strided_slice %38 {offsets = [2, 0, 0], sizes = [1, 11, 128], strides = [1, 1, 1]} : vector<4x11x128xf32> to vector<1x11x128xf32>
    %1090 = vector.shape_cast %1089 : vector<1x11x128xf32> to vector<11x128xf32>
    %c6_393 = arith.constant 6 : index
    %c5_394 = arith.constant 5 : index
    %1091 = memref.load %arg4[%c6_393, %c5_394] : memref<8x8xf32, #tpu.memory_space<smem>>
    %1092 = vector.broadcast %1091 : f32 to vector<11x128xf32>
    %1093 = arith.mulf %1090, %1092 : vector<11x128xf32>
    %1094 = arith.addf %1088, %1093 : vector<11x128xf32>
    %1095 = vector.extract_strided_slice %50 {offsets = [1, 0, 0], sizes = [1, 11, 128], strides = [1, 1, 1]} : vector<4x11x128xf32> to vector<1x11x128xf32>
    %1096 = vector.shape_cast %1095 : vector<1x11x128xf32> to vector<11x128xf32>
    %c6_395 = arith.constant 6 : index
    %c6_396 = arith.constant 6 : index
    %1097 = memref.load %arg4[%c6_395, %c6_396] : memref<8x8xf32, #tpu.memory_space<smem>>
    %1098 = vector.broadcast %1097 : f32 to vector<11x128xf32>
    %1099 = arith.mulf %1096, %1098 : vector<11x128xf32>
    %1100 = arith.addf %1094, %1099 : vector<11x128xf32>
    %1101 = vector.extract_strided_slice %50 {offsets = [2, 0, 0], sizes = [1, 11, 128], strides = [1, 1, 1]} : vector<4x11x128xf32> to vector<1x11x128xf32>
    %1102 = vector.shape_cast %1101 : vector<1x11x128xf32> to vector<11x128xf32>
    %c6_397 = arith.constant 6 : index
    %c7_398 = arith.constant 7 : index
    %1103 = memref.load %arg4[%c6_397, %c7_398] : memref<8x8xf32, #tpu.memory_space<smem>>
    %1104 = vector.broadcast %1103 : f32 to vector<11x128xf32>
    %1105 = arith.mulf %1102, %1104 : vector<11x128xf32>
    %1106 = arith.addf %1100, %1105 : vector<11x128xf32>
    %c6_399 = arith.constant 6 : index
    %1107 = memref.load %arg5[%c6_399] : memref<8xf32, #tpu.memory_space<smem>>
    %1108 = vector.broadcast %1107 : f32 to vector<11x128xf32>
    %1109 = arith.addf %1106, %1108 : vector<11x128xf32>
    %cst_400 = arith.constant 0.000000e+00 : f32
    %1110 = vector.broadcast %cst_400 : f32 to vector<11x128xf32>
    %1111 = arith.maximumf %1109, %1110 : vector<11x128xf32>
    %c304 = arith.constant 304 : index
    %c0_401 = arith.constant 0 : index
    %1112 = vector.load %arg15[%c304, %c0_401] : memref<384x128xf32, #tpu.memory_space<vmem>>, vector<11x128xf32>
    tpu.vector_store %arg15[%c304, %c0_401], %1111 {strides = array<i32>} : memref<384x128xf32, #tpu.memory_space<vmem>>, vector<11x128xf32>,
    %1113 = vector.extract_strided_slice %14 {offsets = [2, 0, 0], sizes = [1, 11, 128], strides = [1, 1, 1]} : vector<4x11x128xf32> to vector<1x11x128xf32>
    %1114 = vector.shape_cast %1113 : vector<1x11x128xf32> to vector<11x128xf32>
    %c6_402 = arith.constant 6 : index
    %c0_403 = arith.constant 0 : index
    %1115 = memref.load %arg4[%c6_402, %c0_403] : memref<8x8xf32, #tpu.memory_space<smem>>
    %1116 = vector.broadcast %1115 : f32 to vector<11x128xf32>
    %1117 = arith.mulf %1114, %1116 : vector<11x128xf32>
    %1118 = vector.extract_strided_slice %14 {offsets = [3, 0, 0], sizes = [1, 11, 128], strides = [1, 1, 1]} : vector<4x11x128xf32> to vector<1x11x128xf32>
    %1119 = vector.shape_cast %1118 : vector<1x11x128xf32> to vector<11x128xf32>
    %c6_404 = arith.constant 6 : index
    %c1_405 = arith.constant 1 : index
    %1120 = memref.load %arg4[%c6_404, %c1_405] : memref<8x8xf32, #tpu.memory_space<smem>>
    %1121 = vector.broadcast %1120 : f32 to vector<11x128xf32>
    %1122 = arith.mulf %1119, %1121 : vector<11x128xf32>
    %1123 = arith.addf %1117, %1122 : vector<11x128xf32>
    %1124 = vector.extract_strided_slice %26 {offsets = [2, 0, 0], sizes = [1, 11, 128], strides = [1, 1, 1]} : vector<4x11x128xf32> to vector<1x11x128xf32>
    %1125 = vector.shape_cast %1124 : vector<1x11x128xf32> to vector<11x128xf32>
    %c6_406 = arith.constant 6 : index
    %c2_407 = arith.constant 2 : index
    %1126 = memref.load %arg4[%c6_406, %c2_407] : memref<8x8xf32, #tpu.memory_space<smem>>
    %1127 = vector.broadcast %1126 : f32 to vector<11x128xf32>
    %1128 = arith.mulf %1125, %1127 : vector<11x128xf32>
    %1129 = arith.addf %1123, %1128 : vector<11x128xf32>
    %1130 = vector.extract_strided_slice %26 {offsets = [3, 0, 0], sizes = [1, 11, 128], strides = [1, 1, 1]} : vector<4x11x128xf32> to vector<1x11x128xf32>
    %1131 = vector.shape_cast %1130 : vector<1x11x128xf32> to vector<11x128xf32>
    %c6_408 = arith.constant 6 : index
    %c3_409 = arith.constant 3 : index
    %1132 = memref.load %arg4[%c6_408, %c3_409] : memref<8x8xf32, #tpu.memory_space<smem>>
    %1133 = vector.broadcast %1132 : f32 to vector<11x128xf32>
    %1134 = arith.mulf %1131, %1133 : vector<11x128xf32>
    %1135 = arith.addf %1129, %1134 : vector<11x128xf32>
    %1136 = vector.extract_strided_slice %38 {offsets = [2, 0, 0], sizes = [1, 11, 128], strides = [1, 1, 1]} : vector<4x11x128xf32> to vector<1x11x128xf32>
    %1137 = vector.shape_cast %1136 : vector<1x11x128xf32> to vector<11x128xf32>
    %c6_410 = arith.constant 6 : index
    %c4_411 = arith.constant 4 : index
    %1138 = memref.load %arg4[%c6_410, %c4_411] : memref<8x8xf32, #tpu.memory_space<smem>>
    %1139 = vector.broadcast %1138 : f32 to vector<11x128xf32>
    %1140 = arith.mulf %1137, %1139 : vector<11x128xf32>
    %1141 = arith.addf %1135, %1140 : vector<11x128xf32>
    %1142 = vector.extract_strided_slice %38 {offsets = [3, 0, 0], sizes = [1, 11, 128], strides = [1, 1, 1]} : vector<4x11x128xf32> to vector<1x11x128xf32>
    %1143 = vector.shape_cast %1142 : vector<1x11x128xf32> to vector<11x128xf32>
    %c6_412 = arith.constant 6 : index
    %c5_413 = arith.constant 5 : index
    %1144 = memref.load %arg4[%c6_412, %c5_413] : memref<8x8xf32, #tpu.memory_space<smem>>
    %1145 = vector.broadcast %1144 : f32 to vector<11x128xf32>
    %1146 = arith.mulf %1143, %1145 : vector<11x128xf32>
    %1147 = arith.addf %1141, %1146 : vector<11x128xf32>
    %1148 = vector.extract_strided_slice %50 {offsets = [2, 0, 0], sizes = [1, 11, 128], strides = [1, 1, 1]} : vector<4x11x128xf32> to vector<1x11x128xf32>
    %1149 = vector.shape_cast %1148 : vector<1x11x128xf32> to vector<11x128xf32>
    %c6_414 = arith.constant 6 : index
    %c6_415 = arith.constant 6 : index
    %1150 = memref.load %arg4[%c6_414, %c6_415] : memref<8x8xf32, #tpu.memory_space<smem>>
    %1151 = vector.broadcast %1150 : f32 to vector<11x128xf32>
    %1152 = arith.mulf %1149, %1151 : vector<11x128xf32>
    %1153 = arith.addf %1147, %1152 : vector<11x128xf32>
    %1154 = vector.extract_strided_slice %50 {offsets = [3, 0, 0], sizes = [1, 11, 128], strides = [1, 1, 1]} : vector<4x11x128xf32> to vector<1x11x128xf32>
    %1155 = vector.shape_cast %1154 : vector<1x11x128xf32> to vector<11x128xf32>
    %c6_416 = arith.constant 6 : index
    %c7_417 = arith.constant 7 : index
    %1156 = memref.load %arg4[%c6_416, %c7_417] : memref<8x8xf32, #tpu.memory_space<smem>>
    %1157 = vector.broadcast %1156 : f32 to vector<11x128xf32>
    %1158 = arith.mulf %1155, %1157 : vector<11x128xf32>
    %1159 = arith.addf %1153, %1158 : vector<11x128xf32>
    %c6_418 = arith.constant 6 : index
    %1160 = memref.load %arg5[%c6_418] : memref<8xf32, #tpu.memory_space<smem>>
    %1161 = vector.broadcast %1160 : f32 to vector<11x128xf32>
    %1162 = arith.addf %1159, %1161 : vector<11x128xf32>
    %cst_419 = arith.constant 0.000000e+00 : f32
    %1163 = vector.broadcast %cst_419 : f32 to vector<11x128xf32>
    %1164 = arith.maximumf %1162, %1163 : vector<11x128xf32>
    %c320 = arith.constant 320 : index
    %c0_420 = arith.constant 0 : index
    %1165 = vector.load %arg15[%c320, %c0_420] : memref<384x128xf32, #tpu.memory_space<vmem>>, vector<11x128xf32>
    tpu.vector_store %arg15[%c320, %c0_420], %1164 {strides = array<i32>} : memref<384x128xf32, #tpu.memory_space<vmem>>, vector<11x128xf32>,
    %1166 = vector.extract_strided_slice %14 {offsets = [0, 0, 0], sizes = [1, 11, 128], strides = [1, 1, 1]} : vector<4x11x128xf32> to vector<1x11x128xf32>
    %1167 = vector.shape_cast %1166 : vector<1x11x128xf32> to vector<11x128xf32>
    %c7_421 = arith.constant 7 : index
    %c0_422 = arith.constant 0 : index
    %1168 = memref.load %arg4[%c7_421, %c0_422] : memref<8x8xf32, #tpu.memory_space<smem>>
    %1169 = vector.broadcast %1168 : f32 to vector<11x128xf32>
    %1170 = arith.mulf %1167, %1169 : vector<11x128xf32>
    %1171 = vector.extract_strided_slice %14 {offsets = [1, 0, 0], sizes = [1, 11, 128], strides = [1, 1, 1]} : vector<4x11x128xf32> to vector<1x11x128xf32>
    %1172 = vector.shape_cast %1171 : vector<1x11x128xf32> to vector<11x128xf32>
    %c7_423 = arith.constant 7 : index
    %c1_424 = arith.constant 1 : index
    %1173 = memref.load %arg4[%c7_423, %c1_424] : memref<8x8xf32, #tpu.memory_space<smem>>
    %1174 = vector.broadcast %1173 : f32 to vector<11x128xf32>
    %1175 = arith.mulf %1172, %1174 : vector<11x128xf32>
    %1176 = arith.addf %1170, %1175 : vector<11x128xf32>
    %1177 = vector.extract_strided_slice %26 {offsets = [0, 0, 0], sizes = [1, 11, 128], strides = [1, 1, 1]} : vector<4x11x128xf32> to vector<1x11x128xf32>
    %1178 = vector.shape_cast %1177 : vector<1x11x128xf32> to vector<11x128xf32>
    %c7_425 = arith.constant 7 : index
    %c2_426 = arith.constant 2 : index
    %1179 = memref.load %arg4[%c7_425, %c2_426] : memref<8x8xf32, #tpu.memory_space<smem>>
    %1180 = vector.broadcast %1179 : f32 to vector<11x128xf32>
    %1181 = arith.mulf %1178, %1180 : vector<11x128xf32>
    %1182 = arith.addf %1176, %1181 : vector<11x128xf32>
    %1183 = vector.extract_strided_slice %26 {offsets = [1, 0, 0], sizes = [1, 11, 128], strides = [1, 1, 1]} : vector<4x11x128xf32> to vector<1x11x128xf32>
    %1184 = vector.shape_cast %1183 : vector<1x11x128xf32> to vector<11x128xf32>
    %c7_427 = arith.constant 7 : index
    %c3_428 = arith.constant 3 : index
    %1185 = memref.load %arg4[%c7_427, %c3_428] : memref<8x8xf32, #tpu.memory_space<smem>>
    %1186 = vector.broadcast %1185 : f32 to vector<11x128xf32>
    %1187 = arith.mulf %1184, %1186 : vector<11x128xf32>
    %1188 = arith.addf %1182, %1187 : vector<11x128xf32>
    %1189 = vector.extract_strided_slice %38 {offsets = [0, 0, 0], sizes = [1, 11, 128], strides = [1, 1, 1]} : vector<4x11x128xf32> to vector<1x11x128xf32>
    %1190 = vector.shape_cast %1189 : vector<1x11x128xf32> to vector<11x128xf32>
    %c7_429 = arith.constant 7 : index
    %c4_430 = arith.constant 4 : index
    %1191 = memref.load %arg4[%c7_429, %c4_430] : memref<8x8xf32, #tpu.memory_space<smem>>
    %1192 = vector.broadcast %1191 : f32 to vector<11x128xf32>
    %1193 = arith.mulf %1190, %1192 : vector<11x128xf32>
    %1194 = arith.addf %1188, %1193 : vector<11x128xf32>
    %1195 = vector.extract_strided_slice %38 {offsets = [1, 0, 0], sizes = [1, 11, 128], strides = [1, 1, 1]} : vector<4x11x128xf32> to vector<1x11x128xf32>
    %1196 = vector.shape_cast %1195 : vector<1x11x128xf32> to vector<11x128xf32>
    %c7_431 = arith.constant 7 : index
    %c5_432 = arith.constant 5 : index
    %1197 = memref.load %arg4[%c7_431, %c5_432] : memref<8x8xf32, #tpu.memory_space<smem>>
    %1198 = vector.broadcast %1197 : f32 to vector<11x128xf32>
    %1199 = arith.mulf %1196, %1198 : vector<11x128xf32>
    %1200 = arith.addf %1194, %1199 : vector<11x128xf32>
    %1201 = vector.extract_strided_slice %50 {offsets = [0, 0, 0], sizes = [1, 11, 128], strides = [1, 1, 1]} : vector<4x11x128xf32> to vector<1x11x128xf32>
    %1202 = vector.shape_cast %1201 : vector<1x11x128xf32> to vector<11x128xf32>
    %c7_433 = arith.constant 7 : index
    %c6_434 = arith.constant 6 : index
    %1203 = memref.load %arg4[%c7_433, %c6_434] : memref<8x8xf32, #tpu.memory_space<smem>>
    %1204 = vector.broadcast %1203 : f32 to vector<11x128xf32>
    %1205 = arith.mulf %1202, %1204 : vector<11x128xf32>
    %1206 = arith.addf %1200, %1205 : vector<11x128xf32>
    %1207 = vector.extract_strided_slice %50 {offsets = [1, 0, 0], sizes = [1, 11, 128], strides = [1, 1, 1]} : vector<4x11x128xf32> to vector<1x11x128xf32>
    %1208 = vector.shape_cast %1207 : vector<1x11x128xf32> to vector<11x128xf32>
    %c7_435 = arith.constant 7 : index
    %c7_436 = arith.constant 7 : index
    %1209 = memref.load %arg4[%c7_435, %c7_436] : memref<8x8xf32, #tpu.memory_space<smem>>
    %1210 = vector.broadcast %1209 : f32 to vector<11x128xf32>
    %1211 = arith.mulf %1208, %1210 : vector<11x128xf32>
    %1212 = arith.addf %1206, %1211 : vector<11x128xf32>
    %c7_437 = arith.constant 7 : index
    %1213 = memref.load %arg5[%c7_437] : memref<8xf32, #tpu.memory_space<smem>>
    %1214 = vector.broadcast %1213 : f32 to vector<11x128xf32>
    %1215 = arith.addf %1212, %1214 : vector<11x128xf32>
    %cst_438 = arith.constant 0.000000e+00 : f32
    %1216 = vector.broadcast %cst_438 : f32 to vector<11x128xf32>
    %1217 = arith.maximumf %1215, %1216 : vector<11x128xf32>
    %c336 = arith.constant 336 : index
    %c0_439 = arith.constant 0 : index
    %1218 = vector.load %arg15[%c336, %c0_439] : memref<384x128xf32, #tpu.memory_space<vmem>>, vector<11x128xf32>
    tpu.vector_store %arg15[%c336, %c0_439], %1217 {strides = array<i32>} : memref<384x128xf32, #tpu.memory_space<vmem>>, vector<11x128xf32>,
    %1219 = vector.extract_strided_slice %14 {offsets = [1, 0, 0], sizes = [1, 11, 128], strides = [1, 1, 1]} : vector<4x11x128xf32> to vector<1x11x128xf32>
    %1220 = vector.shape_cast %1219 : vector<1x11x128xf32> to vector<11x128xf32>
    %c7_440 = arith.constant 7 : index
    %c0_441 = arith.constant 0 : index
    %1221 = memref.load %arg4[%c7_440, %c0_441] : memref<8x8xf32, #tpu.memory_space<smem>>
    %1222 = vector.broadcast %1221 : f32 to vector<11x128xf32>
    %1223 = arith.mulf %1220, %1222 : vector<11x128xf32>
    %1224 = vector.extract_strided_slice %14 {offsets = [2, 0, 0], sizes = [1, 11, 128], strides = [1, 1, 1]} : vector<4x11x128xf32> to vector<1x11x128xf32>
    %1225 = vector.shape_cast %1224 : vector<1x11x128xf32> to vector<11x128xf32>
    %c7_442 = arith.constant 7 : index
    %c1_443 = arith.constant 1 : index
    %1226 = memref.load %arg4[%c7_442, %c1_443] : memref<8x8xf32, #tpu.memory_space<smem>>
    %1227 = vector.broadcast %1226 : f32 to vector<11x128xf32>
    %1228 = arith.mulf %1225, %1227 : vector<11x128xf32>
    %1229 = arith.addf %1223, %1228 : vector<11x128xf32>
    %1230 = vector.extract_strided_slice %26 {offsets = [1, 0, 0], sizes = [1, 11, 128], strides = [1, 1, 1]} : vector<4x11x128xf32> to vector<1x11x128xf32>
    %1231 = vector.shape_cast %1230 : vector<1x11x128xf32> to vector<11x128xf32>
    %c7_444 = arith.constant 7 : index
    %c2_445 = arith.constant 2 : index
    %1232 = memref.load %arg4[%c7_444, %c2_445] : memref<8x8xf32, #tpu.memory_space<smem>>
    %1233 = vector.broadcast %1232 : f32 to vector<11x128xf32>
    %1234 = arith.mulf %1231, %1233 : vector<11x128xf32>
    %1235 = arith.addf %1229, %1234 : vector<11x128xf32>
    %1236 = vector.extract_strided_slice %26 {offsets = [2, 0, 0], sizes = [1, 11, 128], strides = [1, 1, 1]} : vector<4x11x128xf32> to vector<1x11x128xf32>
    %1237 = vector.shape_cast %1236 : vector<1x11x128xf32> to vector<11x128xf32>
    %c7_446 = arith.constant 7 : index
    %c3_447 = arith.constant 3 : index
    %1238 = memref.load %arg4[%c7_446, %c3_447] : memref<8x8xf32, #tpu.memory_space<smem>>
    %1239 = vector.broadcast %1238 : f32 to vector<11x128xf32>
    %1240 = arith.mulf %1237, %1239 : vector<11x128xf32>
    %1241 = arith.addf %1235, %1240 : vector<11x128xf32>
    %1242 = vector.extract_strided_slice %38 {offsets = [1, 0, 0], sizes = [1, 11, 128], strides = [1, 1, 1]} : vector<4x11x128xf32> to vector<1x11x128xf32>
    %1243 = vector.shape_cast %1242 : vector<1x11x128xf32> to vector<11x128xf32>
    %c7_448 = arith.constant 7 : index
    %c4_449 = arith.constant 4 : index
    %1244 = memref.load %arg4[%c7_448, %c4_449] : memref<8x8xf32, #tpu.memory_space<smem>>
    %1245 = vector.broadcast %1244 : f32 to vector<11x128xf32>
    %1246 = arith.mulf %1243, %1245 : vector<11x128xf32>
    %1247 = arith.addf %1241, %1246 : vector<11x128xf32>
    %1248 = vector.extract_strided_slice %38 {offsets = [2, 0, 0], sizes = [1, 11, 128], strides = [1, 1, 1]} : vector<4x11x128xf32> to vector<1x11x128xf32>
    %1249 = vector.shape_cast %1248 : vector<1x11x128xf32> to vector<11x128xf32>
    %c7_450 = arith.constant 7 : index
    %c5_451 = arith.constant 5 : index
    %1250 = memref.load %arg4[%c7_450, %c5_451] : memref<8x8xf32, #tpu.memory_space<smem>>
    %1251 = vector.broadcast %1250 : f32 to vector<11x128xf32>
    %1252 = arith.mulf %1249, %1251 : vector<11x128xf32>
    %1253 = arith.addf %1247, %1252 : vector<11x128xf32>
    %1254 = vector.extract_strided_slice %50 {offsets = [1, 0, 0], sizes = [1, 11, 128], strides = [1, 1, 1]} : vector<4x11x128xf32> to vector<1x11x128xf32>
    %1255 = vector.shape_cast %1254 : vector<1x11x128xf32> to vector<11x128xf32>
    %c7_452 = arith.constant 7 : index
    %c6_453 = arith.constant 6 : index
    %1256 = memref.load %arg4[%c7_452, %c6_453] : memref<8x8xf32, #tpu.memory_space<smem>>
    %1257 = vector.broadcast %1256 : f32 to vector<11x128xf32>
    %1258 = arith.mulf %1255, %1257 : vector<11x128xf32>
    %1259 = arith.addf %1253, %1258 : vector<11x128xf32>
    %1260 = vector.extract_strided_slice %50 {offsets = [2, 0, 0], sizes = [1, 11, 128], strides = [1, 1, 1]} : vector<4x11x128xf32> to vector<1x11x128xf32>
    %1261 = vector.shape_cast %1260 : vector<1x11x128xf32> to vector<11x128xf32>
    %c7_454 = arith.constant 7 : index
    %c7_455 = arith.constant 7 : index
    %1262 = memref.load %arg4[%c7_454, %c7_455] : memref<8x8xf32, #tpu.memory_space<smem>>
    %1263 = vector.broadcast %1262 : f32 to vector<11x128xf32>
    %1264 = arith.mulf %1261, %1263 : vector<11x128xf32>
    %1265 = arith.addf %1259, %1264 : vector<11x128xf32>
    %c7_456 = arith.constant 7 : index
    %1266 = memref.load %arg5[%c7_456] : memref<8xf32, #tpu.memory_space<smem>>
    %1267 = vector.broadcast %1266 : f32 to vector<11x128xf32>
    %1268 = arith.addf %1265, %1267 : vector<11x128xf32>
    %cst_457 = arith.constant 0.000000e+00 : f32
    %1269 = vector.broadcast %cst_457 : f32 to vector<11x128xf32>
    %1270 = arith.maximumf %1268, %1269 : vector<11x128xf32>
    %c352 = arith.constant 352 : index
    %c0_458 = arith.constant 0 : index
    %1271 = vector.load %arg15[%c352, %c0_458] : memref<384x128xf32, #tpu.memory_space<vmem>>, vector<11x128xf32>
    tpu.vector_store %arg15[%c352, %c0_458], %1270 {strides = array<i32>} : memref<384x128xf32, #tpu.memory_space<vmem>>, vector<11x128xf32>,
    %1272 = vector.extract_strided_slice %14 {offsets = [2, 0, 0], sizes = [1, 11, 128], strides = [1, 1, 1]} : vector<4x11x128xf32> to vector<1x11x128xf32>
    %1273 = vector.shape_cast %1272 : vector<1x11x128xf32> to vector<11x128xf32>
    %c7_459 = arith.constant 7 : index
    %c0_460 = arith.constant 0 : index
    %1274 = memref.load %arg4[%c7_459, %c0_460] : memref<8x8xf32, #tpu.memory_space<smem>>
    %1275 = vector.broadcast %1274 : f32 to vector<11x128xf32>
    %1276 = arith.mulf %1273, %1275 : vector<11x128xf32>
    %1277 = vector.extract_strided_slice %14 {offsets = [3, 0, 0], sizes = [1, 11, 128], strides = [1, 1, 1]} : vector<4x11x128xf32> to vector<1x11x128xf32>
    %1278 = vector.shape_cast %1277 : vector<1x11x128xf32> to vector<11x128xf32>
    %c7_461 = arith.constant 7 : index
    %c1_462 = arith.constant 1 : index
    %1279 = memref.load %arg4[%c7_461, %c1_462] : memref<8x8xf32, #tpu.memory_space<smem>>
    %1280 = vector.broadcast %1279 : f32 to vector<11x128xf32>
    %1281 = arith.mulf %1278, %1280 : vector<11x128xf32>
    %1282 = arith.addf %1276, %1281 : vector<11x128xf32>
    %1283 = vector.extract_strided_slice %26 {offsets = [2, 0, 0], sizes = [1, 11, 128], strides = [1, 1, 1]} : vector<4x11x128xf32> to vector<1x11x128xf32>
    %1284 = vector.shape_cast %1283 : vector<1x11x128xf32> to vector<11x128xf32>
    %c7_463 = arith.constant 7 : index
    %c2_464 = arith.constant 2 : index
    %1285 = memref.load %arg4[%c7_463, %c2_464] : memref<8x8xf32, #tpu.memory_space<smem>>
    %1286 = vector.broadcast %1285 : f32 to vector<11x128xf32>
    %1287 = arith.mulf %1284, %1286 : vector<11x128xf32>
    %1288 = arith.addf %1282, %1287 : vector<11x128xf32>
    %1289 = vector.extract_strided_slice %26 {offsets = [3, 0, 0], sizes = [1, 11, 128], strides = [1, 1, 1]} : vector<4x11x128xf32> to vector<1x11x128xf32>
    %1290 = vector.shape_cast %1289 : vector<1x11x128xf32> to vector<11x128xf32>
    %c7_465 = arith.constant 7 : index
    %c3_466 = arith.constant 3 : index
    %1291 = memref.load %arg4[%c7_465, %c3_466] : memref<8x8xf32, #tpu.memory_space<smem>>
    %1292 = vector.broadcast %1291 : f32 to vector<11x128xf32>
    %1293 = arith.mulf %1290, %1292 : vector<11x128xf32>
    %1294 = arith.addf %1288, %1293 : vector<11x128xf32>
    %1295 = vector.extract_strided_slice %38 {offsets = [2, 0, 0], sizes = [1, 11, 128], strides = [1, 1, 1]} : vector<4x11x128xf32> to vector<1x11x128xf32>
    %1296 = vector.shape_cast %1295 : vector<1x11x128xf32> to vector<11x128xf32>
    %c7_467 = arith.constant 7 : index
    %c4_468 = arith.constant 4 : index
    %1297 = memref.load %arg4[%c7_467, %c4_468] : memref<8x8xf32, #tpu.memory_space<smem>>
    %1298 = vector.broadcast %1297 : f32 to vector<11x128xf32>
    %1299 = arith.mulf %1296, %1298 : vector<11x128xf32>
    %1300 = arith.addf %1294, %1299 : vector<11x128xf32>
    %1301 = vector.extract_strided_slice %38 {offsets = [3, 0, 0], sizes = [1, 11, 128], strides = [1, 1, 1]} : vector<4x11x128xf32> to vector<1x11x128xf32>
    %1302 = vector.shape_cast %1301 : vector<1x11x128xf32> to vector<11x128xf32>
    %c7_469 = arith.constant 7 : index
    %c5_470 = arith.constant 5 : index
    %1303 = memref.load %arg4[%c7_469, %c5_470] : memref<8x8xf32, #tpu.memory_space<smem>>
    %1304 = vector.broadcast %1303 : f32 to vector<11x128xf32>
    %1305 = arith.mulf %1302, %1304 : vector<11x128xf32>
    %1306 = arith.addf %1300, %1305 : vector<11x128xf32>
    %1307 = vector.extract_strided_slice %50 {offsets = [2, 0, 0], sizes = [1, 11, 128], strides = [1, 1, 1]} : vector<4x11x128xf32> to vector<1x11x128xf32>
    %1308 = vector.shape_cast %1307 : vector<1x11x128xf32> to vector<11x128xf32>
    %c7_471 = arith.constant 7 : index
    %c6_472 = arith.constant 6 : index
    %1309 = memref.load %arg4[%c7_471, %c6_472] : memref<8x8xf32, #tpu.memory_space<smem>>
    %1310 = vector.broadcast %1309 : f32 to vector<11x128xf32>
    %1311 = arith.mulf %1308, %1310 : vector<11x128xf32>
    %1312 = arith.addf %1306, %1311 : vector<11x128xf32>
    %1313 = vector.extract_strided_slice %50 {offsets = [3, 0, 0], sizes = [1, 11, 128], strides = [1, 1, 1]} : vector<4x11x128xf32> to vector<1x11x128xf32>
    %1314 = vector.shape_cast %1313 : vector<1x11x128xf32> to vector<11x128xf32>
    %c7_473 = arith.constant 7 : index
    %c7_474 = arith.constant 7 : index
    %1315 = memref.load %arg4[%c7_473, %c7_474] : memref<8x8xf32, #tpu.memory_space<smem>>
    %1316 = vector.broadcast %1315 : f32 to vector<11x128xf32>
    %1317 = arith.mulf %1314, %1316 : vector<11x128xf32>
    %1318 = arith.addf %1312, %1317 : vector<11x128xf32>
    %c7_475 = arith.constant 7 : index
    %1319 = memref.load %arg5[%c7_475] : memref<8xf32, #tpu.memory_space<smem>>
    %1320 = vector.broadcast %1319 : f32 to vector<11x128xf32>
    %1321 = arith.addf %1318, %1320 : vector<11x128xf32>
    %cst_476 = arith.constant 0.000000e+00 : f32
    %1322 = vector.broadcast %cst_476 : f32 to vector<11x128xf32>
    %1323 = arith.maximumf %1321, %1322 : vector<11x128xf32>
    %c368 = arith.constant 368 : index
    %c0_477 = arith.constant 0 : index
    %1324 = vector.load %arg15[%c368, %c0_477] : memref<384x128xf32, #tpu.memory_space<vmem>>, vector<11x128xf32>
    tpu.vector_store %arg15[%c368, %c0_477], %1323 {strides = array<i32>} : memref<384x128xf32, #tpu.memory_space<vmem>>, vector<11x128xf32>,
    %c0_478 = arith.constant 0 : index
    %c0_479 = arith.constant 0 : index
    %1325 = vector.load %arg15[%c0_478, %c0_479] : memref<384x128xf32, #tpu.memory_space<vmem>>, vector<384x128xf32>
    %c0_480 = arith.constant 0 : index
    %c0_481 = arith.constant 0 : index
    %1326 = vector.load %arg6[%c0_480, %c0_481] : memref<32x384xf32, #tpu.memory_space<vmem>>, vector<32x384xf32>
    %cst_482 = arith.constant dense<0.000000e+00> : vector<32x128xf32>
    %1327 = tpu.matmul %1326, %1325, %cst_482 {dimension_numbers = #tpu.dot_dimension_numbers<[1], [0], [0], [1], [0, 0, 1, 1], [], []>} : vector<32x384xf32>, vector<384x128xf32>, vector<32x128xf32> -> vector<32x128xf32>
    %c0_483 = arith.constant 0 : index
    %c0_484 = arith.constant 0 : index
    %1328 = vector.load %arg7[%c0_483, %c0_484] : memref<32x1xf32, #tpu.memory_space<vmem>>, vector<32x1xf32>
    %1329 = vector.broadcast %1328 : vector<32x1xf32> to vector<32x128xf32>
    %1330 = arith.addf %1327, %1329 : vector<32x128xf32>
    %cst_485 = arith.constant 0.000000e+00 : f32
    %1331 = vector.broadcast %cst_485 : f32 to vector<32x128xf32>
    %1332 = arith.maximumf %1330, %1331 : vector<32x128xf32>
    %c0_486 = arith.constant 0 : index
    %c0_487 = arith.constant 0 : index
    %1333 = vector.load %arg8[%c0_486, %c0_487] : memref<32x32xf32, #tpu.memory_space<vmem>>, vector<32x32xf32>
    %cst_488 = arith.constant dense<0.000000e+00> : vector<32x128xf32>
    %1334 = tpu.matmul %1333, %1332, %cst_488 {dimension_numbers = #tpu.dot_dimension_numbers<[1], [0], [0], [1], [0, 0, 1, 1], [], []>} : vector<32x32xf32>, vector<32x128xf32>, vector<32x128xf32> -> vector<32x128xf32>
    %c0_489 = arith.constant 0 : index
    %c0_490 = arith.constant 0 : index
    %1335 = vector.load %arg9[%c0_489, %c0_490] : memref<32x1xf32, #tpu.memory_space<vmem>>, vector<32x1xf32>
    %1336 = vector.broadcast %1335 : vector<32x1xf32> to vector<32x128xf32>
    %1337 = arith.addf %1334, %1336 : vector<32x128xf32>
    %cst_491 = arith.constant 0.000000e+00 : f32
    %1338 = vector.broadcast %cst_491 : f32 to vector<32x128xf32>
    %1339 = arith.maximumf %1337, %1338 : vector<32x128xf32>
    %c0_492 = arith.constant 0 : index
    %c0_493 = arith.constant 0 : index
    %1340 = vector.load %arg10[%c0_492, %c0_493] : memref<16x32xf32, #tpu.memory_space<vmem>>, vector<16x32xf32>
    %cst_494 = arith.constant dense<0.000000e+00> : vector<16x128xf32>
    %1341 = tpu.matmul %1340, %1339, %cst_494 {dimension_numbers = #tpu.dot_dimension_numbers<[1], [0], [0], [1], [0, 0, 1, 1], [], []>} : vector<16x32xf32>, vector<32x128xf32>, vector<16x128xf32> -> vector<16x128xf32>
    %c0_495 = arith.constant 0 : index
    %c0_496 = arith.constant 0 : index
    %1342 = vector.load %arg11[%c0_495, %c0_496] : memref<16x1xf32, #tpu.memory_space<vmem>>, vector<16x1xf32>
    %1343 = vector.broadcast %1342 : vector<16x1xf32> to vector<16x128xf32>
    %1344 = arith.addf %1341, %1343 : vector<16x128xf32>
    %cst_497 = arith.constant 0.000000e+00 : f32
    %1345 = vector.broadcast %cst_497 : f32 to vector<16x128xf32>
    %1346 = arith.maximumf %1344, %1345 : vector<16x128xf32>
    %c0_498 = arith.constant 0 : index
    %c0_499 = arith.constant 0 : index
    %1347 = vector.load %arg12[%c0_498, %c0_499] : memref<16x1xf32, #tpu.memory_space<vmem>>, vector<16x1xf32>
    %1348 = vector.broadcast %1347 : vector<16x1xf32> to vector<16x128xf32>
    %1349 = arith.mulf %1346, %1348 : vector<16x128xf32>
    %cst_500 = arith.constant dense<0.000000e+00> : vector<128xf32>
    %1350 = vector.multi_reduction <add>, %1349, %cst_500 [0] : vector<16x128xf32> to vector<128xf32>
    %1351 = vector.shape_cast %1350 : vector<128xf32> to vector<1x128xf32>
    %c0_501 = arith.constant 0 : index
    %c0_502 = arith.constant 0 : index
    %1352 = vector.load %arg13[%c0_501, %c0_502] : memref<1x1xf32, #tpu.memory_space<vmem>>, vector<1x1xf32>
    %1353 = vector.broadcast %1352 : vector<1x1xf32> to vector<1x128xf32>
    %1354 = arith.addf %1351, %1353 : vector<1x128xf32>
    %c0_503 = arith.constant 0 : index
    %c0_504 = arith.constant 0 : index
    %1355 = vector.load %arg14[%c0_503, %c0_504] : memref<1x128xf32, #tpu.memory_space<vmem>>, vector<1x128xf32>
    tpu.vector_store %arg14[%c0_503, %c0_504], %1354 {strides = array<i32>} : memref<1x128xf32, #tpu.memory_space<vmem>>, vector<1x128xf32>,
    return
  }
  func.func @transform_0(%arg0: i32) -> (i32, i32, i32) {
    %c0_i32 = arith.constant 0 : i32
    %c0_i32_0 = arith.constant 0 : i32
    %c0_i32_1 = arith.constant 0 : i32
    return %c0_i32, %c0_i32_0, %arg0 : i32, i32, i32
  }
  func.func @transform_1(%arg0: i32) -> (i32, i32) {
    %c0_i32 = arith.constant 0 : i32
    %c0_i32_0 = arith.constant 0 : i32
    %c0_i32_1 = arith.constant 0 : i32
    return %c0_i32, %c0_i32_0 : i32, i32
  }
  func.func @transform_2(%arg0: i32) -> i32 {
    %c0_i32 = arith.constant 0 : i32
    %c0_i32_0 = arith.constant 0 : i32
    return %c0_i32 : i32
  }
  func.func @transform_3(%arg0: i32) -> (i32, i32) {
    %c0_i32 = arith.constant 0 : i32
    %c0_i32_0 = arith.constant 0 : i32
    %c0_i32_1 = arith.constant 0 : i32
    return %c0_i32, %c0_i32_0 : i32, i32
  }
  func.func @transform_4(%arg0: i32) -> i32 {
    %c0_i32 = arith.constant 0 : i32
    %c0_i32_0 = arith.constant 0 : i32
    return %c0_i32 : i32
  }
  func.func @transform_5(%arg0: i32) -> (i32, i32) {
    %c0_i32 = arith.constant 0 : i32
    %c0_i32_0 = arith.constant 0 : i32
    %c0_i32_1 = arith.constant 0 : i32
    return %c0_i32, %c0_i32_0 : i32, i32
  }
  func.func @transform_6(%arg0: i32) -> (i32, i32) {
    %c0_i32 = arith.constant 0 : i32
    %c0_i32_0 = arith.constant 0 : i32
    %c0_i32_1 = arith.constant 0 : i32
    return %c0_i32, %c0_i32_0 : i32, i32
  }
  func.func @transform_7(%arg0: i32) -> (i32, i32) {
    %c0_i32 = arith.constant 0 : i32
    %c0_i32_0 = arith.constant 0 : i32
    %c0_i32_1 = arith.constant 0 : i32
    return %c0_i32, %c0_i32_0 : i32, i32
  }
  func.func @transform_8(%arg0: i32) -> (i32, i32) {
    %c0_i32 = arith.constant 0 : i32
    %c0_i32_0 = arith.constant 0 : i32
    %c0_i32_1 = arith.constant 0 : i32
    return %c0_i32, %c0_i32_0 : i32, i32
  }
  func.func @transform_9(%arg0: i32) -> (i32, i32) {
    %c0_i32 = arith.constant 0 : i32
    %c0_i32_0 = arith.constant 0 : i32
    %c0_i32_1 = arith.constant 0 : i32
    return %c0_i32, %c0_i32_0 : i32, i32
  }
  func.func @transform_10(%arg0: i32) -> (i32, i32) {
    %c0_i32 = arith.constant 0 : i32
    %c0_i32_0 = arith.constant 0 : i32
    %c0_i32_1 = arith.constant 0 : i32
    return %c0_i32, %c0_i32_0 : i32, i32
  }
  func.func @transform_11(%arg0: i32) -> (i32, i32) {
    %c0_i32 = arith.constant 0 : i32
    %c0_i32_0 = arith.constant 0 : i32
    %c0_i32_1 = arith.constant 0 : i32
    return %c0_i32, %c0_i32_0 : i32, i32
  }
  func.func @transform_12(%arg0: i32) -> (i32, i32) {
    %c0_i32 = arith.constant 0 : i32
    %c0_i32_0 = arith.constant 0 : i32
    %c0_i32_1 = arith.constant 0 : i32
    return %c0_i32, %c0_i32_0 : i32, i32
  }
  func.func @transform_13(%arg0: i32) -> (i32, i32) {
    %c0_i32 = arith.constant 0 : i32
    %c0_i32_0 = arith.constant 0 : i32
    return %c0_i32, %arg0 : i32, i32
  }
}

</mosaic_0001>

<bundles_post_ra>
// kernel: configurable_cnn_forward.1
= control target key start
LH: loop header
LB: loop body
LE: loop exit
PB: predicated region body
PF: predicated region fallthrough
CT: control target
= control target key end

     0   :  { %s4526_s0 = inlined_call_operand.vmem [shape: f32[4,12,128], index: 0, kind: input, shape index: {}]   ;;  %s4527_s1 = inlined_call_operand.vmem [shape: f32[4,2], index: 1, kind: input, shape index: {}]   ;;  %s4528_s2 = inlined_call_operand.vmem [shape: f32[4], index: 2, kind: input, shape index: {}]   ;;  %s4529_s3 = inlined_call_operand.vmem [shape: f32[8,8], index: 3, kind: input, shape index: {}]   ;;  %s4530_s4 = inlined_call_operand.vmem [shape: f32[8], index: 4, kind: input, shape index: {}]   ;;  %s4531_s5 = inlined_call_operand.vmem [shape: f32[32,384], index: 5, kind: input, shape index: {}]   ;;  %s4532_s6 = inlined_call_operand.vmem [shape: f32[32,1], index: 6, kind: input, shape index: {}]   ;;  %s4533_s7 = inlined_call_operand.vmem [shape: f32[32,32], index: 7, kind: input, shape index: {}]   ;;  %s4534_s8 = inlined_call_operand.vmem [shape: f32[32,1], index: 8, kind: input, shape index: {}]   ;;  %s4535_s9 = inlined_call_operand.vmem [shape: f32[16,32], index: 9, kind: input, shape index: {}]   ;;  %s4536_s10 = inlined_call_operand.vmem [shape: f32[16,1], index: 10, kind: input, shape index: {}]   ;;  %s4537_s11 = inlined_call_operand.vmem [shape: f32[16,1], index: 11, kind: input, shape index: {}]   ;;  %s4538_s12 = inlined_call_operand.<no memory space> [shape: f32[1,1], index: 12, kind: input, shape index: {}]   ;;  %s4539_s13 = inlined_call_operand.vmem [shape: f32[1,128], index: 13, kind: output, shape index: {}]  }
   0x1   :  { %v18_v0 = vstv %s4538_s12 }
   0x2   :  { %19 = vst [vmem:[#allocation3] sm:$0x1] %v18_v0 }
   0x3   :  { %20 = vsyncpa [#allocation5], 0 }
   0x4   :  { %21 = vsyncpa [#allocation7], 0  ;;  %s41_s29 = sshll.u32 %s4528_s2, 4  ;;  %s42_s29 = int_to_ptr.vmem [resolvable:$true] %s41_s29 }
   0x5   :  { %22 = vsyncpa [#allocation10], 0  ;;  %s31_s15 = sshll.u32 %s4527_s1, 4  ;;  %s2643_s16 = scalar_lea.vmem %s42_s29, 16  ;;  %s32_s15 = int_to_ptr.vmem [resolvable:$true] %s31_s15 }
   0x6   :  { %p2644_p0 = scmp.ne.s32.totalorder %s42_s29, %s2643_s16  ;;  %p2648_p1 = scmp.lt.s32.totalorder %s42_s29, %s42_s29 }
   0x7   :  { %p2649_p2 = scmp.lt.s32.totalorder %s2643_s16, %s2643_s16 }
   0x9   :  { %p2650_p3 = por %p2649_p2, %p2648_p1 }
   0xb   :  { %p2651_p4 = pnand %p2650_p3, %p2644_p0 }
   0xd   :  { %2654 = shalt.err (!%p2651_p4)
}
   0xe   :  { %s2697_s12 = smov [#allocation6]   ;;  %s2655_s17 = scalar_lea.vmem %s32_s15, 64 }
   0xf   :  { %44 = dma.vmem_to_smem %s42_s29, 16, %s2697_s12, [#allocation7]  }
  0x10   :  { %p2656_p5 = scmp.ne.s32.totalorder %s32_s15, %s2655_s17  ;;  %p2660_p6 = scmp.lt.s32.totalorder %s32_s15, %s32_s15 }
  0x11   :  { %p2661_p7 = scmp.lt.s32.totalorder %s2655_s17, %s2655_s17 }
  0x13   :  { %p2662_p8 = por %p2661_p7, %p2660_p6 }
  0x15   :  { %p2663_p9 = pnand %p2662_p8, %p2656_p5 }
  0x17   :  { %2666 = shalt.err (!%p2663_p9)
}
  0x18   :  { %s2698_s2 = smov [#allocation4]   ;;  %s51_s19 = sshll.u32 %s4529_s3, 4  ;;  %s52_s19 = int_to_ptr.vmem [resolvable:$true] %s51_s19 }
  0x19   :  { %34 = dma.vmem_to_smem %s32_s15, 64, %s2698_s2, [#allocation5]  }
  0x1a   :  { %s61_s22 = sshll.u32 %s4530_s4, 4  ;;  %s2667_s23 = scalar_lea.vmem %s52_s19, 128  ;;  %s62_s22 = int_to_ptr.vmem [resolvable:$true] %s61_s22 }
  0x1b   :  { %p2668_p10 = scmp.ne.s32.totalorder %s52_s19, %s2667_s23  ;;  %p2672_p11 = scmp.lt.s32.totalorder %s52_s19, %s52_s19 }
  0x1c   :  { %p2673_p12 = scmp.lt.s32.totalorder %s2667_s23, %s2667_s23 }
  0x1e   :  { %p2674_p13 = por %p2673_p12, %p2672_p11 }
  0x20   :  { %p2675_p0 = pnand %p2674_p13, %p2668_p10 }
  0x22   :  { %2678 = shalt.err (!%p2675_p0)
}
  0x23   :  { %s2699_s24 = smov [#allocation8]   ;;  %s2679_s25 = scalar_lea.vmem %s62_s22, 16 }
  0x24   :  { %54 = dma.vmem_to_smem %s52_s19, 128, %s2699_s24, [#allocation7]  }
  0x25   :  { %p2680_p1 = scmp.ne.s32.totalorder %s62_s22, %s2679_s25  ;;  %p2684_p2 = scmp.lt.s32.totalorder %s62_s22, %s62_s22 }
  0x26   :  { %p2685_p3 = scmp.lt.s32.totalorder %s2679_s25, %s2679_s25 }
  0x28   :  { %p2686_p4 = por %p2685_p3, %p2684_p2 }
  0x2a   :  { %p2687_p5 = pnand %p2686_p4, %p2680_p1 }
  0x2c   :  { %2690 = shalt.err (!%p2687_p5)
}
  0x2d   :  { %s2700_s3 = smov [#allocation9]  }
  0x2e   :  { %64 = dma.vmem_to_smem %s62_s22, 16, %s2700_s3, [#allocation10]  }
  0x2f   :  { %2691 = dma.done.wait [#allocation5], 64  }
  0x30   :  { %2692 = vsyncadd [#allocation5], 4294967232 }
  0x31   :  { %2693 = dma.done.wait [#allocation7], 144  }
  0x32   :  { %2694 = vsyncadd [#allocation7], 4294967152 }
  0x33   :  { %2695 = dma.done.wait [#allocation10], 16  }
  0x34   :  { %2696 = vsyncadd [#allocation10], 4294967280 }
  0x35   :  { %93 = sfence }
  0x36   :  { %s2788_s4 = sld [smem:[#allocation4]]  ;;  %v2701_v1 = vmov 0.0   ;;  %v2795_v2 = vld [vmem:[%s4526_s0 + $0x8] sm:$0xf]  ;;  %v2800_v3 = vld [vmem:[%s4526_s0 + $0x10] sm:$0xff]  ;;  %v2810_v5 = vld [vmem:[%s4526_s0 + $0x20] sm:$0xff] }
  0x37   :  { %s2790_s26 = sld [smem:[#allocation4 + $0x1]]  ;;  %430 = vst [vmem:[#allocation2 + $0x140] sm:$0xff] %v2701_v1  ;;  %400 = vst [vmem:[#allocation2 + $0xd0] sm:$0xff] %v2701_v1  ;;  %v2805_v4 = vld [vmem:[%s4526_s0 + $0x18] sm:$0xf]  ;;  %vm130_vm0 = vcmask 1046528  }
  0x38   :  { %402 = vst [vmem:[#allocation2 + $0x48] sm:$0xff] %v2701_v1  ;;  %404 = vst [vmem:[#allocation2 + $0x128] sm:$0xff] %v2701_v1  ;;  %s159_s27 = sld [smem:[#allocation6]]  ;;  %v2818_v7 = vld [vmem:[%s4526_s0 + $0x28] sm:$0xf]  ;;  %v2848_v19 = vld [vmem:[%s4526_s0] sm:$0xff] }
  0x39   :  { %406 = vst [vmem:[#allocation2 + $0x178] sm:$0xff] %v2701_v1  ;;  %408 = vst [vmem:[#allocation2 + $0x110] sm:$0xff] %v2701_v1  ;;  %s2269_s28 = sld [smem:[#allocation4 + $0x80]]  ;;  %vm2029_vm1 = vcmask 261120  }
  0x3a   :  { %410 = vst [vmem:[#allocation2 + $0x118] sm:$0xff] %v2701_v1  ;;  %412 = vst [vmem:[#allocation2 + $0x100] sm:$0xff] %v2701_v1  ;;  %s2270_s29 = sld [smem:[#allocation4 + $0x81]] }
  0x3b   :  { %414 = vst [vmem:[#allocation2 + $0xd8] sm:$0xff] %v2701_v1  ;;  %416 = vst [vmem:[#allocation2 + $0x130] sm:$0xff] %v2701_v1  ;;  %s2861_s22 = sld [smem:[#allocation6 + $0x1]] }
  0x3c   :  { %418 = vst [vmem:[#allocation2 + $0x120] sm:$0xff] %v2701_v1  ;;  %420 = vst [vmem:[#allocation2 + $0xa8] sm:$0xff] %v2701_v1  ;;  %v2813_v6 = vstv %s2788_s4  ;;  %s2867_s23 = sld [smem:[#allocation4 + $0x100]] }
  0x3d   :  { %422 = vst [vmem:[#allocation2 + $0x168] sm:$0xff] %v2701_v1  ;;  %424 = vst [vmem:[#allocation2 + $0xf8] sm:$0xff] %v2701_v1  ;;  %v105_v8 = vmul.f32 %v2813_v6, %v2795_v2  ;;  %v106_v9 = vmul.f32 %v2813_v6, %v2800_v3  ;;  %v107_v10 = vmul.f32 %v2813_v6, %v2805_v4  ;;  %v2831_v13 = vstv %s2790_s26  ;;  %s2900_s24 = sld [smem:[#allocation4 + $0x101]] }
  0x3e   :  { %426 = vst [vmem:[#allocation2 + $0x88] sm:$0xff] %v2701_v1  ;;  %428 = vst [vmem:[#allocation2 + $0x170] sm:$0xff] %v2701_v1  ;;  %v108_v11 = vmul.f32 %v2813_v6, %v2810_v5  ;;  %v109_v12 = vmul.f32 %v2813_v6, %v2818_v7  ;;  %v2833_v14 = vstv %s159_s27  ;;  %v2837_v15 = vmul.f32 %v2831_v13, %v2795_v2  ;;  %s2909_s25 = sld [smem:[#allocation6 + $0x2]] }
  0x3f   :  { %432 = vst [vmem:[#allocation2 + $0xc8] sm:$0xff] %v2701_v1  ;;  %434 = vst [vmem:[#allocation2 + $0x38] sm:$0xff] %v2701_v1  ;;  %v116_v16 = vmul.f32 %v2831_v13, %v2800_v3  ;;  %v117_v17 = vmul.f32 %v2831_v13, %v2805_v4  ;;  %v118_v18 = vmul.f32 %v2831_v13, %v2810_v5  ;;  %v2852_v21 = vstv %s2269_s28  ;;  %s2921_s3 = sld [smem:[#allocation4 + $0x180]] }
  0x40   :  { %436 = vst [vmem:[#allocation2 + $0x18] sm:$0xff] %v2701_v1  ;;  %438 = vst [vmem:[#allocation2 + $0x8] sm:$0xff] %v2701_v1  ;;  %v119_v20 = vmul.f32 %v2831_v13, %v2818_v7  ;;  %v2854_v22 = vstv %s2270_s29  ;;  %v2858_v23 = vmul.f32 %v2813_v6, %v2848_v19  ;;  %v132_v24 = vrot.slane %v2837_v15, 1  ;;  %s2928_s4 = sld [smem:[#allocation4 + $0x181]] }
  0x41   :  { %440 = vst [vmem:[#allocation2 + $0x78] sm:$0xff] %v2701_v1  ;;  %442 = vst [vmem:[#allocation2 + $0x68] sm:$0xff] %v2701_v1  ;;  %v134_v25 = vrot.slane %v116_v16, 1  ;;  %v135_v26 = vrot.slane %v117_v17, 1  ;;  %v137_v27 = vrot.slane %v118_v18, 1  ;;  %v180_v29 = vmul.f32 %v2852_v21, %v2795_v2  ;;  %s2951_s26 = sld [smem:[#allocation6 + $0x3]] }
  0x42   :  { %444 = vst [vmem:[#allocation2 + $0x30] sm:$0xff] %v2701_v1  ;;  %446 = vst [vmem:[#allocation2 + $0x150] sm:$0xff] %v2701_v1  ;;  %v138_v28 = vrot.slane %v119_v20, 1  ;;  %v181_v30 = vmul.f32 %v2852_v21, %v2800_v3  ;;  %v2871_v31 = vmul.f32 %v2831_v13, %v2848_v19  ;;  %v152_v33 = vadd.f32 %v132_v24, %v105_v8  ;;  %s2964_s27 = sld [smem:[#allocation8 + $0x280]] }
  0x43   :  { %v136_v32 = vsel %vm130_vm0, %v134_v25, %v135_v26  ;;  %v154_v34 = vadd.f32 %v135_v26, %v107_v10  ;;  %v182_v35 = vmul.f32 %v2852_v21, %v2805_v4  ;;  %v183_v39 = vmul.f32 %v2852_v21, %v2810_v5  ;;  %s2974_s28 = sld [smem:[#allocation8 + $0x281]] }
  0x44   :  { %v139_v36 = vsel %vm130_vm0, %v137_v27, %v138_v28  ;;  %v153_v37 = vadd.f32 %v136_v32, %v106_v9  ;;  %v156_v38 = vadd.f32 %v138_v28, %v109_v12  ;;  %v162_v41 = vadd.f32 %v2833_v14, %v152_v33  ;;  %s2982_s29 = sld [smem:[#allocation8 + $0x282]] }
  0x45   :  { %v155_v40 = vadd.f32 %v139_v36, %v108_v11  ;;  %v164_v42 = vadd.f32 %v2833_v14, %v154_v34  ;;  %v2885_v43 = vmul.f32 %v2854_v22, %v2795_v2  ;;  %v191_v46 = vmul.f32 %v2854_v22, %v2800_v3  ;;  %s2987_s30 = sld [smem:[#allocation8 + $0x283]] }
  0x46   :  { %v163_v44 = vadd.f32 %v2833_v14, %v153_v37  ;;  %v166_v45 = vadd.f32 %v2833_v14, %v156_v38  ;;  %v192_v47 = vmul.f32 %v2854_v22, %v2805_v4  ;;  %v2894_v49 = vmax.f32 %v162_v41, 0.0  ;;  %s2997_s14 = sld [smem:[#allocation8 + $0x284]] }
  0x47   :  { %v165_v48 = vadd.f32 %v2833_v14, %v155_v40  ;;  %v184_v50 = vmul.f32 %v2852_v21, %v2818_v7  ;;  %v193_v51 = vmul.f32 %v2854_v22, %v2810_v5  ;;  %v2904_v53 = vmax.f32 %v164_v42, 0.0  ;;  %s3001_s15 = sld [smem:[#allocation8 + $0x285]] }
  0x48   :  { %4698 = vst [vmem:[#allocation14_spill] sm:$0xff] %v2894_v49  ;;  %v2902_v52 = vmax.f32 %v163_v44, 0.0  ;;  %v194_v54 = vmul.f32 %v2854_v22, %v2818_v7  ;;  %v4549_v55 = vrot.slane %v2885_v43, 1  ;;  %v2911_v56 = vmax.f32 %v166_v45, 0.0  ;;  %s3006_s16 = sld [smem:[#allocation8 + $0x286]] }
  0x49   :  { %4700 = vst [vmem:[#allocation16_spill] sm:$0xff] %v2904_v53  ;;  %v208_v57 = vrot.slane %v191_v46, 1  ;;  %v209_v58 = vrot.slane %v192_v47, 1  ;;  %v211_v59 = vrot.slane %v193_v51, 1  ;;  %v2916_v62 = vstv %s2861_s22  ;;  %s3016_s12 = sld [smem:[#allocation8 + $0x287]] }
  0x4a   :  { %4699 = vst [vmem:[#allocation15_spill] sm:$0xff] %v2902_v52  ;;  %4701 = vst [vmem:[#allocation17_spill] sm:$0xff] %v2911_v56  ;;  %v212_v60 = vrot.slane %v194_v54, 1  ;;  %v226_v61 = vadd.f32 %v4549_v55, %v180_v29  ;;  %v2919_v63 = vstv %s2867_s23  ;;  %v2923_v0 = vmax.f32 %v165_v48, 0.0  ;;  %s3024_s17 = sld [smem:[#allocation9 + $0x5]] }
  0x4b   :  { %v210_v1 = vsel %vm130_vm0, %v208_v57, %v209_v58  ;;  %v228_v8 = vadd.f32 %v209_v58, %v182_v35  ;;  %v254_v9 = vmul.f32 %v2919_v63, %v2795_v2  ;;  %v255_v20 = vmul.f32 %v2919_v63, %v2800_v3  ;;  %s3034_s2 = sld [smem:[#allocation8 + $0x100]] }
  0x4c   :  { %4702 = vst [vmem:[#allocation18_spill] sm:$0xff] %v2923_v0  ;;  %v213_v10 = vsel %vm130_vm0, %v211_v59, %v212_v60  ;;  %v227_v11 = vadd.f32 %v210_v1, %v181_v30  ;;  %v230_v12 = vadd.f32 %v212_v60, %v184_v50  ;;  %v236_v16 = vadd.f32 %v2916_v62, %v226_v61  ;;  %s3041_s1 = sld [smem:[#allocation8 + $0x101]] }
  0x4d   :  { %v229_v17 = vadd.f32 %v213_v10, %v183_v39  ;;  %v238_v18 = vadd.f32 %v2916_v62, %v228_v8  ;;  %v256_v25 = vmul.f32 %v2919_v63, %v2805_v4  ;;  %v257_v29 = vmul.f32 %v2919_v63, %v2810_v5  ;;  %s3046_s18 = sld [smem:[#allocation8 + $0x102]] }
  0x4e   :  { %v237_v26 = vadd.f32 %v2916_v62, %v227_v11  ;;  %v240_v27 = vadd.f32 %v2916_v62, %v230_v12  ;;  %v2939_v28 = vmax.f32 %v236_v16, 0.0  ;;  %v258_v33 = vmul.f32 %v2919_v63, %v2818_v7  ;;  %s3053_s19 = sld [smem:[#allocation8 + $0x103]] }
  0x4f   :  { %v239_v30 = vadd.f32 %v2916_v62, %v229_v17  ;;  %v2944_v32 = vmax.f32 %v238_v18, 0.0  ;;  %v2949_v34 = vstv %s2900_s24  ;;  %v2962_v38 = vstv %s2909_s25  ;;  %s3057_s20 = sld [smem:[#allocation8 + $0x104]] }
  0x50   :  { %4703 = vst [vmem:[#allocation19_spill] sm:$0xff] %v2939_v28  ;;  %v2953_v35 = vmax.f32 %v237_v26, 0.0  ;;  %v2957_v36 = vmul.f32 %v2949_v34, %v2795_v2  ;;  %v265_v37 = vmul.f32 %v2949_v34, %v2800_v3  ;;  %v2966_v39 = vmax.f32 %v240_v27, 0.0  ;;  %s3063_s21 = sld [smem:[#allocation8 + $0x105]] }
  0x51   :  { %4704 = vst [vmem:[#allocation20_spill] sm:$0xff] %v2944_v32  ;;  %v266_v40 = vmul.f32 %v2949_v34, %v2805_v4  ;;  %v267_v41 = vmul.f32 %v2949_v34, %v2810_v5  ;;  %v268_v42 = vmul.f32 %v2949_v34, %v2818_v7  ;;  %v2976_v44 = vmax.f32 %v239_v30, 0.0  ;;  %s3073_s22 = sld [smem:[#allocation8 + $0x106]] }
  0x52   :  { %4705 = vst [vmem:[#allocation21_spill] sm:$0xff] %v2953_v35  ;;  %4706 = vst [vmem:[#allocation22_spill] sm:$0xff] %v2966_v39  ;;  %v4547_v45 = vrot.slane %v2957_v36, 1  ;;  %v282_v46 = vrot.slane %v265_v37, 1  ;;  %v2980_v47 = vstv %s2921_s3  ;;  %v2985_v54 = vstv %s2928_s4  ;;  %s3080_s23 = sld [smem:[#allocation8 + $0x107]] }
  0x53   :  { %4707 = vst [vmem:[#allocation23_spill] sm:$0xff] %v2976_v44  ;;  %v283_v48 = vrot.slane %v266_v40, 1  ;;  %v285_v50 = vrot.slane %v267_v41, 1  ;;  %v286_v51 = vrot.slane %v268_v42, 1  ;;  %v328_v58 = vmul.f32 %v2980_v47, %v2795_v2  ;;  %s2343_s24 = sld [smem:[#allocation9 + $0x2]] }
  0x54   :  { %v300_v57 = vadd.f32 %v4547_v45, %v254_v9  ;;  %v329_v59 = vmul.f32 %v2980_v47, %v2800_v3  ;;  %v330_v60 = vmul.f32 %v2980_v47, %v2805_v4  ;;  %v331_v16 = vmul.f32 %v2980_v47, %v2810_v5  ;;  %s3196_s25 = sld [smem:[#allocation8 + $0x200]] }
  0x55   :  { %v284_v61 = vsel %vm130_vm0, %v282_v46, %v283_v48  ;;  %v287_v1 = vsel %vm130_vm0, %v285_v50, %v286_v51  ;;  %v302_v8 = vadd.f32 %v283_v48, %v256_v25  ;;  %v304_v10 = vadd.f32 %v286_v51, %v258_v33  ;;  %s3206_s3 = sld [smem:[#allocation8 + $0x201]] }
  0x56   :  { %v301_v9 = vadd.f32 %v284_v61, %v255_v20  ;;  %v303_v11 = vadd.f32 %v287_v1, %v257_v29  ;;  %v310_v12 = vadd.f32 %v2962_v38, %v300_v57  ;;  %v3012_v26 = vmul.f32 %v2985_v54, %v2795_v2  ;;  %s3214_s4 = sld [smem:[#allocation8 + $0x202]] }
  0x57   :  { %v312_v17 = vadd.f32 %v2962_v38, %v302_v8  ;;  %v314_v18 = vadd.f32 %v2962_v38, %v304_v10  ;;  %v339_v25 = vmul.f32 %v2985_v54, %v2800_v3  ;;  %v332_v29 = vmul.f32 %v2980_v47, %v2818_v7 }
  0x58   :  { %v311_v20 = vadd.f32 %v2962_v38, %v301_v9  ;;  %v313_v27 = vadd.f32 %v2962_v38, %v303_v11  ;;  %v340_v30 = vmul.f32 %v2985_v54, %v2805_v4  ;;  %v3026_v2 = vmax.f32 %v310_v12, 0.0 }
  0x59   :  { %v3028_v33 = vmax.f32 %v312_v17, 0.0  ;;  %v341_v3 = vmul.f32 %v2985_v54, %v2810_v5  ;;  %v342_v37 = vmul.f32 %v2985_v54, %v2818_v7  ;;  %v3038_v4 = vmax.f32 %v314_v18, 0.0 }
  0x5a   :  { %4708 = vst [vmem:[#allocation24_spill] sm:$0xff] %v3026_v2  ;;  %v3036_v40 = vmax.f32 %v311_v20, 0.0  ;;  %v4546_v41 = vrot.slane %v3012_v26, 1  ;;  %v356_v42 = vrot.slane %v339_v25, 1  ;;  %v357_v46 = vrot.slane %v340_v30, 1 }
  0x5b   :  { %4709 = vst [vmem:[#allocation25_spill] sm:$0xff] %v3028_v33  ;;  %4711 = vst [vmem:[#allocation27_spill] sm:$0xff] %v3038_v4  ;;  %v359_v48 = vrot.slane %v341_v3, 1  ;;  %v360_v50 = vrot.slane %v342_v37, 1  ;;  %v3044_v5 = vstv %s2951_s26  ;;  %v4543_v51 = vstv %s2964_s27  ;;  %s3220_s26 = sld [smem:[#allocation8 + $0x203]] }
  0x5c   :  { %4710 = vst [vmem:[#allocation26_spill] sm:$0xff] %v3036_v40  ;;  %v374_v7 = vadd.f32 %v4546_v41, %v328_v58  ;;  %v4550_v57 = vstv %s2974_s28  ;;  %v4542_v61 = vstv %s2982_s29  ;;  %v358_v1 = vsel %vm130_vm0, %v356_v42, %v357_v46 }
  0x5d   :  { %v361_v8 = vsel %vm130_vm0, %v359_v48, %v360_v50  ;;  %v376_v10 = vadd.f32 %v357_v46, %v330_v60  ;;  %v378_v9 = vadd.f32 %v360_v50, %v332_v29  ;;  %v375_v11 = vadd.f32 %v358_v1, %v329_v59 }
  0x5e   :  { %v377_v12 = vadd.f32 %v361_v8, %v331_v16  ;;  %v384_v58 = vadd.f32 %v3044_v5, %v374_v7  ;;  %v1260_v17 = vmul.f32 %v4543_v51, %v2894_v49  ;;  %v1264_v60 = vmul.f32 %v4550_v57, %v2904_v53 }
  0x5f   :  { %v386_v18 = vadd.f32 %v3044_v5, %v376_v10  ;;  %v388_v25 = vadd.f32 %v3044_v5, %v378_v9  ;;  %v1270_v59 = vmul.f32 %v4542_v61, %v2939_v28  ;;  %v385_v16 = vadd.f32 %v3044_v5, %v375_v11 }
  0x60   :  { %v387_v20 = vadd.f32 %v3044_v5, %v377_v12  ;;  %v3077_v29 = vmax.f32 %v384_v58, 0.0  ;;  %v4545_v30 = vstv %s2987_s30  ;;  %v3082_v3 = vmax.f32 %v313_v27, 0.0 }
  0x61   :  { %v3084_v37 = vmax.f32 %v386_v18, 0.0  ;;  %v1266_v42 = vadd.f32 %v1264_v60, %v1260_v17  ;;  %v1276_v46 = vmul.f32 %v4545_v30, %v2944_v32  ;;  %v3089_v48 = vmax.f32 %v385_v16, 0.0 }
  0x62   :  { %4712 = vst [vmem:[#allocation28_spill] sm:$0xff] %v3077_v29  ;;  %4713 = vst [vmem:[#allocation29_spill] sm:$0xff] %v3082_v3  ;;  %v3091_v50 = vmax.f32 %v388_v25, 0.0  ;;  %v4541_v7 = vstv %s2997_s14  ;;  %v4544_v1 = vstv %s3001_s15  ;;  %v3095_v8 = vmax.f32 %v387_v20, 0.0 }
  0x63   :  { %4714 = vst [vmem:[#allocation30_spill] sm:$0xff] %v3084_v37  ;;  %4715 = vst [vmem:[#allocation31_spill] sm:$0xff] %v3089_v48  ;;  %v1272_v27 = vadd.f32 %v1270_v59, %v1266_v42  ;;  %v1282_v10 = vmul.f32 %v4541_v7, %v3026_v2  ;;  %v4540_v9 = vstv %s3006_s16  ;;  %v1288_v11 = vmul.f32 %v4544_v1, %v3028_v33 }
  0x64   :  { %4716 = vst [vmem:[#allocation32_spill] sm:$0xff] %v3091_v50  ;;  %4717 = vst [vmem:[#allocation33_spill] sm:$0xff] %v3095_v8  ;;  %v1294_v12 = vmul.f32 %v4540_v9, %v3077_v29  ;;  %v4548_v58 = vstv %s3016_s12  ;;  %v3109_v17 = vstv %s3034_s2  ;;  %v3115_v59 = vstv %s3041_s1  ;;  %s3282_s2 = sld [smem:[#allocation8 + $0x381]] }
  0x65   :  { %4718 = vst [vmem:[#allocation34_spill] sm:$0xff] %v3109_v17  ;;  %v1278_v18 = vadd.f32 %v1276_v46, %v1272_v27  ;;  %v828_v60 = vmul.f32 %v3109_v17, %v2904_v53  ;;  %4719 = vst [vmem:[#allocation35_spill] sm:$0xff] %v3115_v59  ;;  %v832_v16 = vmul.f32 %v3115_v59, %v2911_v56  ;;  %v3120_v20 = vstv %s3046_s18  ;;  %s3289_s1 = sld [smem:[#allocation8 + $0x382]] }
  0x66   :  { %4720 = vst [vmem:[#allocation36_spill] sm:$0xff] %v3120_v20  ;;  %v3123_v42 = vstv %s3053_s19  ;;  %v3126_v9 = vstv %s3057_s20  ;;  %v1300_v46 = vmul.f32 %v4548_v58, %v3084_v37  ;;  %v838_v27 = vmul.f32 %v3120_v20, %v2944_v32  ;;  %s3298_s18 = sld [smem:[#allocation8 + $0x383]] }
  0x67   :  { %4721 = vst [vmem:[#allocation37_spill] sm:$0xff] %v3123_v42  ;;  %v1284_v7 = vadd.f32 %v1282_v10, %v1278_v18  ;;  %v844_v61 = vmul.f32 %v3123_v42, %v2966_v39  ;;  %v834_v51 = vadd.f32 %v832_v16, %v828_v60  ;;  %v3136_v1 = vstv %s3063_s21  ;;  %s3304_s19 = sld [smem:[#allocation8 + $0x384]] }
  0x68   :  { %v3139_v30 = vstv %s3073_s22  ;;  %v3142_v41 = vstv %s3080_s23  ;;  %v850_v10 = vmul.f32 %v3126_v9, %v3028_v33  ;;  %v856_v18 = vmul.f32 %v3136_v1, %v3038_v4  ;;  %s3313_s20 = sld [smem:[#allocation8 + $0x385]] }
  0x69   :  { %v1290_v45 = vadd.f32 %v1288_v11, %v1284_v7  ;;  %v862_v58 = vmul.f32 %v3139_v30, %v3084_v37  ;;  %v840_v55 = vadd.f32 %v838_v27, %v834_v51  ;;  %v868_v60 = vmul.f32 %v3142_v41, %v3091_v50  ;;  %s3320_s21 = sld [smem:[#allocation8 + $0x386]] }
  0x6a   :  { %v131_v16 = vrot.slane %v2871_v31, 1  ;;  %v179_v25 = vmul.f32 %v2852_v21, %v2848_v19  ;;  %v189_v11 = vmul.f32 %v2854_v22, %v2848_v19  ;;  %v253_v57 = vmul.f32 %v2919_v63, %v2848_v19  ;;  %s3331_s22 = sld [smem:[#allocation8 + $0x387]] }
  0x6b   :  { %v1296_v7 = vadd.f32 %v1294_v12, %v1290_v45  ;;  %v263_v51 = vmul.f32 %v2949_v34, %v2848_v19  ;;  %v846_v27 = vadd.f32 %v844_v61, %v840_v55  ;;  %v327_v37 = vmul.f32 %v2980_v47, %v2848_v19  ;;  %s4187_s23 = sld [smem:[#allocation8 + $0x280]] }
  0x6c   :  { %v133_v31 = vsel %vm130_vm0, %v131_v16, %v132_v24  ;;  %v337_v45 = vmul.f32 %v2985_v54, %v2848_v19  ;;  %v205_v33 = vrot.slane %v189_v11, 1  ;;  %v3169_v28 = vstv %s2343_s24  ;;  %s4194_s24 = sld [smem:[#allocation8 + $0x104]] }
  0x6d   :  { %v1302_v12 = vadd.f32 %v1300_v46, %v1296_v7  ;;  %v151_v29 = vadd.f32 %v133_v31, %v2858_v23  ;;  %v279_v2 = vrot.slane %v263_v51, 1  ;;  %v852_v32 = vadd.f32 %v850_v10, %v846_v27 }
  0x6e   :  { %v353_v55 = vrot.slane %v337_v45, 1  ;;  %v4722_v15 = vstv %s2974_s28  ;;  %v4723_v24 = vstv %s3024_s17  ;;  %v4724_v19 = vrot.slane %v2885_v43, 1  ;;  %s3548_s28 = sld [smem:[#allocation8 + $0x86]] }
  0x6f   :  { %v1263_v61 = vmul.f32 %v4722_v15, %v2902_v52  ;;  %v1306_v16 = vadd.f32 %v4723_v24, %v1302_v12  ;;  %v161_v53 = vadd.f32 %v2833_v14, %v151_v29  ;;  %v4725_v23 = vrot.slane %v2957_v36, 1 }
  0x70   :  { %v207_v46 = vsel %vm130_vm0, %v205_v33, %v4724_v19  ;;  %v858_v10 = vadd.f32 %v856_v18, %v852_v32  ;;  %v4726_v27 = vrot.slane %v3012_v26, 1  ;;  %v4728_v43 = vstv %s2987_s30  ;;  %s3237_s30 = sld [smem:[#allocation8 + $0x204]] }
  0x71   :  { %v281_v7 = vsel %vm130_vm0, %v279_v2, %v4725_v23  ;;  %v225_v11 = vadd.f32 %v207_v46, %v179_v25  ;;  %v1308_v45 = vmax.f32 %v1306_v16, 0.0  ;;  %v3186_v12 = vmax.f32 %v161_v53, 0.0 }
  0x72   :  { %v299_v51 = vadd.f32 %v281_v7, %v253_v57  ;;  %v355_v31 = vsel %vm130_vm0, %v353_v55, %v4726_v27  ;;  %v1275_v15 = vmul.f32 %v4728_v43, %v2953_v35  ;;  %v864_v33 = vadd.f32 %v862_v58, %v858_v10 }
  0x73   :  { %4727 = vst [vmem:[#allocation38_spill] sm:$0xff] %v3186_v12  ;;  %v373_v29 = vadd.f32 %v355_v31, %v327_v37  ;;  %v235_v36 = vadd.f32 %v2916_v62, %v225_v11  ;;  %v4729_v32 = vstv %s3001_s15  ;;  %1310 = vst [vmem:[#allocation2 + $0x140] sm:$0x7] %v1308_v45  ;;  %v4730_v53 = vstv %s2964_s27  ;;  %s3260_s15 = sld [smem:[#allocation8 + $0x207]] }
  0x74   :  { %v309_v2 = vadd.f32 %v2962_v38, %v299_v51  ;;  %v1287_v25 = vmul.f32 %v4729_v32, %v3036_v40  ;;  %v1259_v57 = vmul.f32 %v4730_v53, %v3186_v12  ;;  %v827_v37 = vmul.f32 %v3109_v17, %v2902_v52  ;;  %s3542_s27 = sld [smem:[#allocation8 + $0x85]] }
  0x75   :  { %v383_v26 = vadd.f32 %v3044_v5, %v373_v29  ;;  %v831_v58 = vmul.f32 %v3115_v59, %v2923_v0  ;;  %v870_v18 = vadd.f32 %v868_v60, %v864_v33  ;;  %v3208_v55 = vmax.f32 %v235_v36, 0.0 }
  0x76   :  { %v3210_v24 = vmax.f32 %v309_v2, 0.0  ;;  %v837_v16 = vmul.f32 %v3120_v20, %v2953_v35  ;;  %v1265_v46 = vadd.f32 %v1263_v61, %v1259_v57  ;;  %v843_v7 = vmul.f32 %v3123_v42, %v2976_v44  ;;  %v101_v61 = vld [vmem:[%s4526_s0 + $0x38] sm:$0xf] }
  0x77   :  { %4731 = vst [vmem:[#allocation39_spill] sm:$0xff] %v3208_v55  ;;  %v3216_v19 = vmax.f32 %v383_v26, 0.0  ;;  %v833_v23 = vadd.f32 %v831_v58, %v827_v37  ;;  %v874_v60 = vadd.f32 %v3169_v28, %v870_v18  ;;  %v4734_v10 = vstv %s2982_s29  ;;  %s3246_s29 = sld [smem:[#allocation8 + $0x205]] }
  0x78   :  { %4732 = vst [vmem:[#allocation40_spill] sm:$0xff] %v3210_v24  ;;  %v1269_v11 = vmul.f32 %v4734_v10, %v3208_v55  ;;  %v4735_v51 = vstv %s2997_s14  ;;  %v4736_v31 = vstv %s3016_s12  ;;  %v4737_v29 = vstv %s3006_s16  ;;  %s3251_s14 = sld [smem:[#allocation8 + $0x206]] }
  0x79   :  { %4733 = vst [vmem:[#allocation41_spill] sm:$0xff] %v3216_v19  ;;  %v1281_v27 = vmul.f32 %v4735_v51, %v3210_v24  ;;  %v3232_v45 = vmul.f32 %v4736_v31, %v3089_v48  ;;  %v1293_v43 = vmul.f32 %v4737_v29, %v3216_v19  ;;  %v839_v33 = vadd.f32 %v837_v16, %v833_v23  ;;  %s3267_s16 = sld [smem:[#allocation9 + $0x4]] }
  0x7a   :  { %v849_v36 = vmul.f32 %v3126_v9, %v3036_v40  ;;  %v855_v2 = vmul.f32 %v3136_v1, %v3082_v3  ;;  %v876_v32 = vmax.f32 %v874_v60, 0.0  ;;  %v1271_v26 = vadd.f32 %v1269_v11, %v1265_v46  ;;  %v1774_v23 = vld [vmem:[#allocation2 + $0x140] sm:$0xff]  ;;  %s3274_s12 = sld [smem:[#allocation8 + $0x380]] }
  0x7b   :  { %v861_v53 = vmul.f32 %v3139_v30, %v3089_v48  ;;  %v111_v57 = vmul.f32 %v2813_v6, %v101_v61  ;;  %v845_v37 = vadd.f32 %v843_v7, %v839_v33  ;;  %v3254_v58 = vmul.f32 %v2831_v13, %v101_v61  ;;  %2494 = vmatprep.subr.mxu0 %v1774_v23 }
  0x7c   :  { %v186_v18 = vmul.f32 %v2852_v21, %v101_v61  ;;  %v3258_v16 = vmul.f32 %v2854_v22, %v101_v61  ;;  %878 = vst [vmem:[#allocation2 + $0xd8] sm:$0x7] %v876_v32  ;;  %v1277_v46 = vadd.f32 %v1275_v15, %v1271_v26  ;;  %v260_v60 = vmul.f32 %v2919_v63, %v101_v61 }
  0x7d   :  { %v3264_v10 = vmul.f32 %v2949_v34, %v101_v61  ;;  %v334_v7 = vmul.f32 %v2980_v47, %v101_v61  ;;  %v851_v11 = vadd.f32 %v849_v36, %v845_v37  ;;  %v4570_v51 = vrot.slane %v3254_v58, 1 }
  0x7e   :  { %v4567_v31 = vrot.slane %v3258_v16, 1  ;;  %v3272_v29 = vmul.f32 %v2985_v54, %v101_v61  ;;  %v1283_v15 = vadd.f32 %v1281_v27, %v1277_v46  ;;  %v867_v33 = vmul.f32 %v3142_v41, %v3095_v8 }
  0x7f   :  { %v4568_v32 = vrot.slane %v3264_v10, 1  ;;  %v3280_v26 = vstv %s3196_s25  ;;  %v857_v36 = vadd.f32 %v855_v2, %v851_v11  ;;  %v158_v37 = vadd.f32 %v4570_v51, %v111_v57  ;;  %s3516_s25 = sld [smem:[#allocation8 + $0x81]] }
  0x80   :  { %v232_v61 = vadd.f32 %v4567_v31, %v186_v18  ;;  %v4569_v27 = vrot.slane %v3272_v29, 1  ;;  %v1289_v23 = vadd.f32 %v1287_v25, %v1283_v15  ;;  %v1206_v48 = vmul.f32 %v3280_v26, %v2911_v56 }
  0x81   :  { %v306_v46 = vadd.f32 %v4568_v32, %v260_v60  ;;  %v3296_v2 = vstv %s3206_s3  ;;  %v863_v57 = vadd.f32 %v861_v53, %v857_v36  ;;  %v168_v11 = vadd.f32 %v2833_v14, %v158_v37  ;;  %s3526_s3 = sld [smem:[#allocation8 + $0x82]] }
  0x82   :  { %v242_v18 = vadd.f32 %v2916_v62, %v232_v61  ;;  %v380_v31 = vadd.f32 %v4569_v27, %v334_v7  ;;  %v1295_v25 = vadd.f32 %v1293_v43, %v1289_v23  ;;  %v3308_v15 = vstv %s3214_s4  ;;  %s3532_s4 = sld [smem:[#allocation8 + $0x83]] }
  0x83   :  { %v316_v60 = vadd.f32 %v2962_v38, %v306_v46  ;;  %v3311_v32 = vstv %s3220_s26  ;;  %v1758_v53 = vld [vmem:[#allocation2 + $0xd8] sm:$0xff]  ;;  %v869_v36 = vadd.f32 %v867_v33, %v863_v57  ;;  %v3315_v37 = vmax.f32 %v168_v11, 0.0  ;;  %s3538_s26 = sld [smem:[#allocation8 + $0x84]] }
  0x84   :  { %4738 = vst [vmem:[#allocation42_spill] sm:$0xff] %v3311_v32  ;;  %v3317_v61 = vmax.f32 %v242_v18, 0.0  ;;  %v390_v7 = vadd.f32 %v3044_v5, %v380_v31  ;;  %2495 = vmatpush3.msra.mxu0 %v1758_v53  ;;  %v1301_v43 = vadd.f32 %v3232_v45, %v1295_v25  ;;  %v3326_v46 = vstv %s3237_s30  ;;  %s3553_s30 = sld [smem:[#allocation8 + $0x87]] }
  0x85   :  { %4739 = vst [vmem:[#allocation43_spill] sm:$0xff] %v3315_v37  ;;  %v3323_v23 = vmax.f32 %v316_v60, 0.0  ;;  %v3329_v27 = vstv %s3246_s29  ;;  %v873_v33 = vadd.f32 %v3169_v28, %v869_v36  ;;  %v1210_v31 = vmul.f32 %v3296_v2, %v3315_v37  ;;  %s3569_s29 = sld [smem:[#allocation9 + $0x1]] }
  0x86   :  { %4740 = vst [vmem:[#allocation44_spill] sm:$0xff] %v3317_v61  ;;  %4742 = vst [vmem:[#allocation46_spill] sm:$0xff] %v3329_v27  ;;  %v3334_v57 = vmax.f32 %v390_v7, 0.0  ;;  %v1216_v45 = vmul.f32 %v3308_v15, %v2966_v39  ;;  %v4744_v11 = vstv %s3024_s17  ;;  %v1222_v25 = vmul.f32 %v3311_v32, %v3317_v61  ;;  %s3354_s17 = sld [smem:[#allocation9 + $0x7]] }
  0x87   :  { %4741 = vst [vmem:[#allocation45_spill] sm:$0xff] %v3323_v23  ;;  %v1305_v18 = vadd.f32 %v4744_v11, %v1301_v43  ;;  %v1228_v60 = vmul.f32 %v3326_v46, %v3038_v4  ;;  %v3347_v53 = vstv %s3251_s14  ;;  %v875_v36 = vmax.f32 %v873_v33, 0.0  ;;  %s3714_s14 = sld [smem:[#allocation8 + $0x180]] }
  0x88   :  { %4743 = vst [vmem:[#allocation47_spill] sm:$0xff] %v3334_v57  ;;  %4745 = vst [vmem:[#allocation48_spill] sm:$0xff] %v3347_v53  ;;  %v1212_v7 = vadd.f32 %v1210_v31, %v1206_v48  ;;  %v1234_v51 = vmul.f32 %v3329_v27, %v3323_v23  ;;  %v3352_v19 = vstv %s3260_s15  ;;  %v1240_v11 = vmul.f32 %v3347_v53, %v3091_v50  ;;  %s3721_s15 = sld [smem:[#allocation8 + $0x181]] }
  0x89   :  { %4746 = vst [vmem:[#allocation49_spill] sm:$0xff] %v3352_v19  ;;  %v1307_v43 = vmax.f32 %v1305_v18, 0.0  ;;  %v1246_v40 = vmul.f32 %v3352_v19, %v3334_v57  ;;  %v3361_v33 = vstv %s3274_s12  ;;  %v3366_v24 = vstv %s3282_s2  ;;  %s3733_s12 = sld [smem:[#allocation8 + $0x183]] }
  0x8a   :  { %v1218_v48 = vadd.f32 %v1216_v45, %v1212_v7  ;;  %v1692_v31 = vmul.f32 %v3361_v33, %v2911_v56  ;;  %v3369_v35 = vstv %s3289_s1  ;;  %v1696_v18 = vmul.f32 %v3366_v24, %v3315_v37  ;;  %s3739_s2 = sld [smem:[#allocation8 + $0x184]] }
  0x8b   :  { %2496 = vmatprep.subr.mxu0 %v1307_v43  ;;  %v1702_v55 = vmul.f32 %v3369_v35, %v2966_v39  ;;  %v3376_v52 = vstv %s3298_s18  ;;  %v3379_v19 = vstv %s3304_s19  ;;  %v3382_v7 = vstv %s3267_s16  ;;  %s3727_s16 = sld [smem:[#allocation8 + $0x182]] }
  0x8c   :  { %4747 = vst [vmem:[#allocation50_spill] sm:$0xff] %v3376_v52  ;;  %4748 = vst [vmem:[#allocation51_spill] sm:$0xff] %v3379_v19  ;;  %2497 = vmatpush3.msra.mxu0 %v875_v36  ;;  %v1224_v45 = vadd.f32 %v1222_v25, %v1218_v48  ;;  %v1708_v56 = vmul.f32 %v3376_v52, %v3317_v61  ;;  %v3387_v12 = vstv %s3313_s20  ;;  %v3392_v27 = vstv %s3320_s21  ;;  %s3745_s1 = sld [smem:[#allocation8 + $0x185]] }
  0x8d   :  { %4749 = vst [vmem:[#allocation52_spill] sm:$0xff] %v3387_v12  ;;  %v1698_v43 = vadd.f32 %v1696_v18, %v1692_v31  ;;  %v1714_v37 = vmul.f32 %v3379_v19, %v3038_v4  ;;  %4750 = vst [vmem:[#allocation53_spill] sm:$0xff] %v3392_v27  ;;  %v3395_v39 = vstv %s3331_s22  ;;  %v1720_v25 = vmul.f32 %v3387_v12, %v3323_v23  ;;  %v4752_v18 = vld [vmem:[#allocation16_spill] sm:$0xff]  ;;  %v4753_v19 = vld [vmem:[#allocation19_spill] sm:$0xff]  ;;  %s3752_s18 = sld [smem:[#allocation8 + $0x186]] }
  0x8e   :  { %4751 = vst [vmem:[#allocation54_spill] sm:$0xff] %v3395_v39  ;;  %v1230_v32 = vadd.f32 %v1228_v60, %v1224_v45  ;;  %v1726_v36 = vmul.f32 %v3392_v27, %v3091_v50  ;;  %v1732_v48 = vmul.f32 %v3395_v39, %v3334_v57  ;;  %v774_v31 = vmul.f32 %v3109_v17, %v2894_v49  ;;  %v100_v60 = vld [vmem:[%s4526_s0 + $0x30] sm:$0xff]  ;;  %v4756_v27 = vld [vmem:[#allocation25_spill] sm:$0xff]  ;;  %v4758_v17 = vld [vmem:[#allocation30_spill] sm:$0xff]  ;;  %s3510_s0 = sld [smem:[#allocation8 + $0x80]] }
  0x8f   :  { %v1704_v61 = vadd.f32 %v1702_v55, %v1698_v43  ;;  %v778_v4 = vmul.f32 %v3115_v59, %v4752_v18  ;;  %v784_v52 = vmul.f32 %v3120_v20, %v4753_v19  ;;  %v3413_v23 = vstv %s3354_s17  ;;  %v4754_v50 = vld [vmem:[#allocation20_spill] sm:$0xff]  ;;  %s3758_s19 = sld [smem:[#allocation8 + $0x187]] }
  0x90   :  { %v1236_v45 = vadd.f32 %v1234_v51, %v1230_v32  ;;  %v790_v57 = vmul.f32 %v3123_v42, %v4754_v50  ;;  %v4755_v55 = vld [vmem:[#allocation24_spill] sm:$0xff]  ;;  %v802_v18 = vmul.f32 %v3136_v1, %v4756_v27  ;;  %v814_v51 = vmul.f32 %v3142_v41, %v4758_v17  ;;  %s3764_s20 = sld [smem:[#allocation8 + $0x300]] }
  0x91   :  { %v796_v43 = vmul.f32 %v3126_v9, %v4755_v55  ;;  %v1710_v49 = vadd.f32 %v1708_v56, %v1704_v61  ;;  %v780_v39 = vadd.f32 %v778_v4, %v774_v31  ;;  %v4757_v59 = vld [vmem:[#allocation28_spill] sm:$0xff]  ;;  %v110_v32 = vmul.f32 %v2813_v6, %v100_v60  ;;  %s3768_s21 = sld [smem:[#allocation8 + $0x301]] }
  0x92   :  { %v808_v19 = vmul.f32 %v3139_v30, %v4757_v59  ;;  %v1242_v20 = vadd.f32 %v1240_v11, %v1236_v45  ;;  %v120_v12 = vmul.f32 %v2831_v13, %v100_v60  ;;  %v185_v55 = vmul.f32 %v2852_v21, %v100_v60  ;;  %s3778_s22 = sld [smem:[#allocation8 + $0x302]] }
  0x93   :  { %v1716_v50 = vadd.f32 %v1714_v37, %v1710_v49  ;;  %v786_v42 = vadd.f32 %v784_v52, %v780_v39  ;;  %v195_v56 = vmul.f32 %v2854_v22, %v100_v60  ;;  %v259_v31 = vmul.f32 %v2919_v63, %v100_v60  ;;  %s3782_s17 = sld [smem:[#allocation8 + $0x303]] }
  0x94   :  { %v1248_v4 = vadd.f32 %v1246_v40, %v1242_v20  ;;  %v140_v61 = vrot.slane %v120_v12, 1  ;;  %v269_v59 = vmul.f32 %v2949_v34, %v100_v60  ;;  %v343_v17 = vmul.f32 %v2985_v54, %v100_v60 }
  0x95   :  { %v1722_v11 = vadd.f32 %v1720_v25, %v1716_v50  ;;  %v792_v45 = vadd.f32 %v790_v57, %v786_v42  ;;  %v214_v27 = vrot.slane %v195_v56, 1  ;;  %v4759_v13 = vrot.slane %v3254_v58, 1 }
  0x96   :  { %v1252_v6 = vadd.f32 %v3382_v7, %v1248_v4  ;;  %v288_v21 = vrot.slane %v269_v59, 1  ;;  %v333_v22 = vmul.f32 %v2980_v47, %v100_v60  ;;  %v4760_v63 = vrot.slane %v3258_v16, 1 }
  0x97   :  { %v142_v49 = vsel %vm130_vm0, %v140_v61, %v4759_v13  ;;  %v1728_v52 = vadd.f32 %v1726_v36, %v1722_v11  ;;  %v798_v39 = vadd.f32 %v796_v43, %v792_v45  ;;  %v4761_v54 = vrot.slane %v3264_v10, 1  ;;  %v4766_v11 = vld [vmem:[#allocation42_spill] sm:$0xff] }
  0x98   :  { %v157_v40 = vadd.f32 %v142_v49, %v110_v32  ;;  %v216_v34 = vsel %vm130_vm0, %v214_v27, %v4760_v63  ;;  %v1254_v50 = vmax.f32 %v1252_v6, 0.0  ;;  %v362_v12 = vrot.slane %v343_v17, 1  ;;  %v4767_v6 = vld [vmem:[#allocation46_spill] sm:$0xff] }
  0x99   :  { %v231_v20 = vadd.f32 %v216_v34, %v185_v55  ;;  %v290_v42 = vsel %vm130_vm0, %v288_v21, %v4761_v54  ;;  %v1734_v58 = vadd.f32 %v1732_v48, %v1728_v52  ;;  %v804_v37 = vadd.f32 %v802_v18, %v798_v39  ;;  %v4769_v21 = vld [vmem:[#allocation50_spill] sm:$0xff]  ;;  %v4770_v52 = vld [vmem:[#allocation51_spill] sm:$0xff] }
  0x9a   :  { %v167_v59 = vadd.f32 %v2833_v14, %v157_v40  ;;  %v305_v57 = vadd.f32 %v290_v42, %v259_v31  ;;  %1256 = vst [vmem:[#allocation2 + $0x170] sm:$0x7] %v1254_v50  ;;  %v4762_v25 = vrot.slane %v3272_v29, 1  ;;  %v1205_v27 = vmul.f32 %v3280_v26, %v2923_v0  ;;  %v4771_v50 = vld [vmem:[#allocation52_spill] sm:$0xff]  ;;  %v4772_v54 = vld [vmem:[#allocation38_spill] sm:$0xff] }
  0x9b   :  { %v241_v47 = vadd.f32 %v2916_v62, %v231_v20  ;;  %v1215_v10 = vmul.f32 %v3308_v15, %v2976_v44  ;;  %v1738_v17 = vadd.f32 %v3413_v23, %v1734_v58  ;;  %v810_v36 = vadd.f32 %v808_v19, %v804_v37  ;;  %v4773_v42 = vld [vmem:[#allocation34_spill] sm:$0xff]  ;;  %v4774_v58 = vld [vmem:[#allocation49_spill] sm:$0xff] }
  0x9c   :  { %v364_v16 = vsel %vm130_vm0, %v362_v12, %v4762_v25  ;;  %v3453_v48 = vmax.f32 %v167_v59, 0.0  ;;  %v315_v14 = vadd.f32 %v2962_v38, %v305_v57  ;;  %v1227_v29 = vmul.f32 %v3326_v46, %v3082_v3  ;;  %v4775_v57 = vld [vmem:[#allocation53_spill] sm:$0xff]  ;;  %v4776_v25 = vld [vmem:[#allocation15_spill] sm:$0xff] }
  0x9d   :  { %v3456_v18 = vmax.f32 %v241_v47, 0.0  ;;  %v379_v62 = vadd.f32 %v364_v16, %v333_v22  ;;  %v1691_v60 = vmul.f32 %v3361_v33, %v2923_v0  ;;  %v1740_v55 = vmax.f32 %v1738_v17, 0.0  ;;  %v4777_v16 = vld [vmem:[#allocation35_spill] sm:$0xff] }
  0x9e   :  { %4763 = vst [vmem:[#allocation55_spill] sm:$0xff] %v3453_v48  ;;  %v816_v43 = vadd.f32 %v814_v51, %v810_v36  ;;  %v3462_v32 = vmax.f32 %v315_v14, 0.0  ;;  %v1209_v19 = vmul.f32 %v3296_v2, %v3453_v48  ;;  %v1239_v38 = vmul.f32 %v3347_v53, %v3095_v8  ;;  %v4779_v14 = vld [vmem:[#allocation39_spill] sm:$0xff] }
  0x9f   :  { %4764 = vst [vmem:[#allocation56_spill] sm:$0xff] %v3456_v18  ;;  %v389_v56 = vadd.f32 %v3044_v5, %v379_v62  ;;  %v1695_v4 = vmul.f32 %v3366_v24, %v3453_v48  ;;  %v1701_v61 = vmul.f32 %v3369_v35, %v2976_v44  ;;  %1742 = vst [vmem:[#allocation2 + $0x150] sm:$0x7] %v1740_v55  ;;  %v4780_v62 = vld [vmem:[#allocation36_spill] sm:$0xff]  ;;  %v4781_v55 = vld [vmem:[#allocation21_spill] sm:$0xff] }
  0xa0   :  { %4765 = vst [vmem:[#allocation57_spill] sm:$0xff] %v3462_v32  ;;  %v820_v31 = vadd.f32 %v3169_v28, %v816_v43  ;;  %v1211_v51 = vadd.f32 %v1209_v19, %v1205_v27  ;;  %v1221_v45 = vmul.f32 %v4766_v11, %v3456_v18  ;;  %v1233_v13 = vmul.f32 %v4767_v6, %v3462_v32  ;;  %v4782_v43 = vld [vmem:[#allocation37_spill] sm:$0xff] }
  0xa1   :  { %v3478_v5 = vmax.f32 %v389_v56, 0.0  ;;  %v1697_v49 = vadd.f32 %v1695_v4, %v1691_v60  ;;  %v1707_v22 = vmul.f32 %v4769_v21, %v3456_v18  ;;  %v1713_v39 = vmul.f32 %v4770_v52, %v3082_v3  ;;  %v1772_v40 = vld [vmem:[#allocation2 + $0x170] sm:$0xff] }
  0xa2   :  { %v822_v63 = vmax.f32 %v820_v31, 0.0  ;;  %v1217_v34 = vadd.f32 %v1215_v10, %v1211_v51  ;;  %v1719_v20 = vmul.f32 %v4771_v50, %v3462_v32  ;;  %v773_v12 = vmul.f32 %v4773_v42, %v4772_v54  ;;  %2498 = vmatprep.subr.mxu0 %v1772_v40  ;;  %v4778_v10 = vld [vmem:[#allocation54_spill] sm:$0xff] }
  0xa3   :  { %4768 = vst [vmem:[#allocation42_spill] sm:$0xff] %v3478_v5  ;;  %v1245_v37 = vmul.f32 %v4774_v58, %v3478_v5  ;;  %v1703_v59 = vadd.f32 %v1701_v61, %v1697_v49  ;;  %v1725_v47 = vmul.f32 %v4775_v57, %v3095_v8  ;;  %v777_v27 = vmul.f32 %v4777_v16, %v4776_v25  ;;  %v4783_v61 = vld [vmem:[#allocation40_spill] sm:$0xff]  ;;  %v4784_v51 = vld [vmem:[#allocation26_spill] sm:$0xff]  ;;  %v4787_v16 = vld [vmem:[#allocation17_spill] sm:$0xff] }
  0xa4   :  { %824 = vst [vmem:[#allocation2 + $0x100] sm:$0x7] %v822_v63  ;;  %v1223_v17 = vadd.f32 %v1221_v45, %v1217_v34  ;;  %v1731_v36 = vmul.f32 %v4778_v10, %v3478_v5  ;;  %v783_v60 = vmul.f32 %v4780_v62, %v4779_v14  ;;  %v789_v19 = vmul.f32 %v4782_v43, %v4781_v55  ;;  %v4785_v63 = vld [vmem:[#allocation41_spill] sm:$0xff]  ;;  %v4786_v34 = vld [vmem:[#allocation16_spill] sm:$0xff] }
  0xa5   :  { %v1709_v56 = vadd.f32 %v1707_v22, %v1703_v59  ;;  %v779_v4 = vadd.f32 %v777_v27, %v773_v12  ;;  %v795_v31 = vmul.f32 %v3126_v9, %v4783_v61  ;;  %v801_v49 = vmul.f32 %v3136_v1, %v4784_v51  ;;  %v4788_v27 = vld [vmem:[#allocation31_spill] sm:$0xff]  ;;  %v4789_v43 = vld [vmem:[#allocation20_spill] sm:$0xff]  ;;  %v4791_v61 = vld [vmem:[#allocation25_spill] sm:$0xff] }
  0xa6   :  { %v1229_v40 = vadd.f32 %v1227_v29, %v1223_v17  ;;  %v807_v45 = vmul.f32 %v3139_v30, %v4785_v63  ;;  %v1152_v42 = vmul.f32 %v3280_v26, %v4786_v34  ;;  %v1156_v62 = vmul.f32 %v3296_v2, %v4787_v16  ;;  %v1790_v22 = vld [vmem:[#allocation2 + $0x150] sm:$0xff]  ;;  %v4790_v17 = vld [vmem:[#allocation22_spill] sm:$0xff] }
  0xa7   :  { %v1715_v12 = vadd.f32 %v1713_v39, %v1709_v56  ;;  %v785_v59 = vadd.f32 %v783_v60, %v779_v4  ;;  %v813_v9 = vmul.f32 %v3142_v41, %v4788_v27  ;;  %v1162_v1 = vmul.f32 %v3308_v15, %v4789_v43  ;;  %2572 = vmatprep.subr.mxu1 %v1790_v22  ;;  %v4792_v56 = vld [vmem:[#allocation27_spill] sm:$0xff]  ;;  %v4793_v4 = vld [vmem:[#allocation30_spill] sm:$0xff] }
  0xa8   :  { %v1235_v30 = vadd.f32 %v1233_v13, %v1229_v40  ;;  %v1158_v29 = vadd.f32 %v1156_v62, %v1152_v42  ;;  %v1168_v63 = vmul.f32 %v4766_v11, %v4790_v17  ;;  %v1174_v14 = vmul.f32 %v3326_v46, %v4791_v61  ;;  %2573 = vmatpush3.msra.mxu1 %v1790_v22  ;;  %v4794_v22 = vld [vmem:[#allocation32_spill] sm:$0xff] }
  0xa9   :  { %v1721_v39 = vadd.f32 %v1719_v20, %v1715_v12  ;;  %v791_v60 = vadd.f32 %v789_v19, %v785_v59  ;;  %v1180_v41 = vmul.f32 %v4767_v6, %v4792_v56  ;;  %v1186_v54 = vmul.f32 %v3347_v53, %v4793_v4 }
  0xaa   :  { %v1241_v5 = vadd.f32 %v1239_v38, %v1235_v30  ;;  %v1164_v13 = vadd.f32 %v1162_v1, %v1158_v29  ;;  %v1638_v40 = vmul.f32 %v3361_v33, %v4786_v34  ;;  %v1642_v42 = vmul.f32 %v3366_v24, %v4787_v16 }
  0xab   :  { %v1756_v20 = vld [vmem:[#allocation2 + $0x100] sm:$0xff]  ;;  %v1727_v19 = vadd.f32 %v1725_v47, %v1721_v39  ;;  %v797_v62 = vadd.f32 %v795_v31, %v791_v60  ;;  %v1192_v12 = vmul.f32 %v4774_v58, %v4794_v22  ;;  %v1648_v59 = vmul.f32 %v3369_v35, %v4789_v43 }
  0xac   :  { %2499 = vmatpush3.msra.mxu0 %v1756_v20  ;;  %v1247_v38 = vadd.f32 %v1245_v37, %v1241_v5  ;;  %v1170_v1 = vadd.f32 %v1168_v63, %v1164_v13  ;;  %v1644_v30 = vadd.f32 %v1642_v42, %v1638_v40  ;;  %v1654_v29 = vmul.f32 %v4769_v21, %v4790_v17 }
  0xad   :  { %v1733_v47 = vadd.f32 %v1731_v36, %v1727_v19  ;;  %v803_v31 = vadd.f32 %v801_v49, %v797_v62  ;;  %v1660_v39 = vmul.f32 %v4770_v52, %v4791_v61  ;;  %v1666_v60 = vmul.f32 %v4771_v50, %v4792_v56 }
  0xae   :  { %v1251_v5 = vadd.f32 %v3382_v7, %v1247_v38  ;;  %v1176_v37 = vadd.f32 %v1174_v14, %v1170_v1  ;;  %v1650_v63 = vadd.f32 %v1648_v59, %v1644_v30  ;;  %v1672_v13 = vmul.f32 %v4775_v57, %v4793_v4  ;;  %v4795_v1 = vld [vmem:[#allocation43_spill] sm:$0xff] }
  0xaf   :  { %v1737_v36 = vadd.f32 %v3413_v23, %v1733_v47  ;;  %v809_v49 = vadd.f32 %v807_v45, %v803_v31  ;;  %v3557_v40 = vstv %s3510_s0  ;;  %v3560_v42 = vstv %s3516_s25  ;;  %s3796_s0 = sld [smem:[#allocation8 + $0x304]] }
  0xb0   :  { %v1253_v20 = vmax.f32 %v1251_v5, 0.0  ;;  %v1182_v19 = vadd.f32 %v1180_v41, %v1176_v37  ;;  %v1656_v62 = vadd.f32 %v1654_v29, %v1650_v63  ;;  %v720_v14 = vmul.f32 %v3557_v40, %v4787_v16  ;;  %v4796_v5 = vld [vmem:[#allocation44_spill] sm:$0xff]  ;;  %s3800_s25 = sld [smem:[#allocation9 + $0x3]] }
  0xb1   :  { %v1739_v59 = vmax.f32 %v1737_v36, 0.0  ;;  %v815_v38 = vadd.f32 %v813_v9, %v809_v49  ;;  %v724_v30 = vmul.f32 %v3560_v42, %v4795_v1  ;;  %v3567_v4 = vstv %s3526_s3  ;;  %s3812_s3 = sld [smem:[#allocation8 + $0x305]] }
  0xb2   :  { %2500 = vmatprep.subr.mxu0 %v1253_v20  ;;  %v1188_v45 = vadd.f32 %v1186_v54, %v1182_v19  ;;  %v1662_v47 = vadd.f32 %v1660_v39, %v1656_v62  ;;  %v730_v41 = vmul.f32 %v3567_v4, %v4790_v17  ;;  %v3574_v29 = vstv %s3532_s4  ;;  %s3815_s4 = sld [smem:[#allocation8 + $0x306]] }
  0xb3   :  { %2574 = vmatprep.subr.mxu1 %v1739_v59  ;;  %v819_v9 = vadd.f32 %v3169_v28, %v815_v38  ;;  %v726_v31 = vadd.f32 %v724_v30, %v720_v14  ;;  %v736_v37 = vmul.f32 %v3574_v29, %v4796_v5  ;;  %v3580_v63 = vstv %s3538_s26  ;;  %v4797_v30 = vld [vmem:[#allocation45_spill] sm:$0xff]  ;;  %s3827_s26 = sld [smem:[#allocation8 + $0x307]] }
  0xb4   :  { %2575 = vmatpush3.msra.mxu1 %v1739_v59  ;;  %v1194_v36 = vadd.f32 %v1192_v12, %v1188_v45  ;;  %v1668_v54 = vadd.f32 %v1666_v60, %v1662_v47  ;;  %v1678_v39 = vmul.f32 %v4778_v10, %v4794_v22  ;;  %v3585_v49 = vstv %s3542_s27  ;;  %v4798_v47 = vld [vmem:[#allocation47_spill] sm:$0xff]  ;;  %s3829_s27 = sld [smem:[#allocation9 + $0x6]] }
  0xb5   :  { %v821_v20 = vmax.f32 %v819_v9, 0.0  ;;  %v732_v19 = vadd.f32 %v730_v41, %v726_v31  ;;  %v742_v28 = vmul.f32 %v3580_v63, %v4792_v56  ;;  %v3590_v62 = vstv %s3548_s28  ;;  %s4234_s28 = sld [smem:[#allocation8 + $0x284]] }
  0xb6   :  { %v1198_v14 = vadd.f32 %v3382_v7, %v1194_v36  ;;  %v1674_v38 = vadd.f32 %v1672_v13, %v1668_v54  ;;  %v748_v12 = vmul.f32 %v3585_v49, %v4797_v30  ;;  %v3596_v60 = vstv %s3553_s30  ;;  %s4242_s30 = sld [smem:[#allocation8 + $0x285]] }
  0xb7   :  { %2501 = vmatpush3.msra.mxu0 %v821_v20  ;;  %v738_v59 = vadd.f32 %v736_v37, %v732_v19  ;;  %v754_v45 = vmul.f32 %v3590_v62, %v4794_v22  ;;  %v760_v41 = vmul.f32 %v3596_v60, %v4798_v47  ;;  %v1151_v9 = vmul.f32 %v3280_v26, %v4776_v25 }
  0xb8   :  { %v1200_v31 = vmax.f32 %v1198_v14, 0.0  ;;  %v1680_v5 = vadd.f32 %v1678_v39, %v1674_v38  ;;  %v1155_v13 = vmul.f32 %v3296_v2, %v2923_v0  ;;  %v1161_v36 = vmul.f32 %v3308_v15, %v4781_v55 }
  0xb9   :  { %v744_v54 = vadd.f32 %v742_v28, %v738_v59  ;;  %v3609_v20 = vstv %s3569_s29  ;;  %v1167_v37 = vmul.f32 %v4766_v11, %v2976_v44  ;;  %v1173_v19 = vmul.f32 %v3326_v46, %v4784_v51  ;;  %s3952_s29 = sld [smem:[#allocation8]] }
  0xba   :  { %4799 = vst [vmem:[#allocation46_spill] sm:$0xff] %v3609_v20  ;;  %1202 = vst [vmem:[#allocation2 + $0x88] sm:$0x7] %v1200_v31  ;;  %v1684_v47 = vadd.f32 %v3413_v23, %v1680_v5  ;;  %v1157_v14 = vadd.f32 %v1155_v13, %v1151_v9  ;;  %v1179_v39 = vmul.f32 %v4767_v6, %v3082_v3 }
  0xbb   :  { %v1185_v38 = vmul.f32 %v3347_v53, %v4788_v27  ;;  %v750_v30 = vadd.f32 %v748_v12, %v744_v54  ;;  %v1637_v28 = vmul.f32 %v3361_v33, %v4776_v25  ;;  %v1641_v59 = vmul.f32 %v3366_v24, %v2923_v0 }
  0xbc   :  { %v1647_v1 = vmul.f32 %v3369_v35, %v4781_v55  ;;  %v1686_v31 = vmax.f32 %v1684_v47, 0.0  ;;  %v1163_v22 = vadd.f32 %v1161_v36, %v1157_v14  ;;  %v1191_v5 = vmul.f32 %v4774_v58, %v3095_v8 }
  0xbd   :  { %v1653_v9 = vmul.f32 %v4769_v21, %v2976_v44  ;;  %v756_v13 = vadd.f32 %v754_v45, %v750_v30  ;;  %v1643_v56 = vadd.f32 %v1641_v59, %v1637_v28  ;;  %v1659_v12 = vmul.f32 %v4770_v52, %v4784_v51 }
  0xbe   :  { %v1665_v54 = vmul.f32 %v4771_v50, %v3082_v3  ;;  %1688 = vst [vmem:[#allocation2 + $0x30] sm:$0x7] %v1686_v31  ;;  %v1169_v25 = vadd.f32 %v1167_v37, %v1163_v22  ;;  %v1671_v47 = vmul.f32 %v4775_v57, %v4788_v27  ;;  %v719_v36 = vmul.f32 %v3557_v40, %v2923_v0 }
  0xbf   :  { %v723_v14 = vmul.f32 %v3560_v42, %v3453_v48  ;;  %v762_v55 = vadd.f32 %v760_v41, %v756_v13  ;;  %v1649_v30 = vadd.f32 %v1647_v1, %v1643_v56  ;;  %v1677_v45 = vmul.f32 %v4778_v10, %v3095_v8 }
  0xc0   :  { %v729_v28 = vmul.f32 %v3567_v4, %v2976_v44  ;;  %v1175_v59 = vadd.f32 %v1173_v19, %v1169_v25  ;;  %v735_v22 = vmul.f32 %v3574_v29, %v3456_v18  ;;  %v741_v37 = vmul.f32 %v3580_v63, %v3082_v3  ;;  %v4800_v19 = vld [vmem:[#allocation14_spill] sm:$0xff] }
  0xc1   :  { %v725_v31 = vadd.f32 %v723_v14, %v719_v36  ;;  %v1770_v0 = vld [vmem:[#allocation2 + $0x88] sm:$0xff]  ;;  %v766_v27 = vadd.f32 %v3609_v20, %v762_v55  ;;  %v1655_v48 = vadd.f32 %v1653_v9, %v1649_v30  ;;  %v747_v56 = vmul.f32 %v3585_v49, %v3462_v32 }
  0xc2   :  { %v753_v1 = vmul.f32 %v3590_v62, %v3095_v8  ;;  %2502 = vmatprep.subr.mxu0 %v1770_v0  ;;  %v1181_v41 = vadd.f32 %v1179_v39, %v1175_v59  ;;  %v1098_v13 = vmul.f32 %v3280_v26, %v4800_v19  ;;  %v1102_v36 = vmul.f32 %v3296_v2, %v4786_v34  ;;  %v4801_v3 = vld [vmem:[#allocation42_spill] sm:$0xff]  ;;  %v4802_v9 = vld [vmem:[#allocation19_spill] sm:$0xff]  ;;  %v4803_v59 = vld [vmem:[#allocation24_spill] sm:$0xff] }
  0xc3   :  { %v731_v25 = vadd.f32 %v729_v28, %v725_v31  ;;  %v768_v14 = vmax.f32 %v766_v27, 0.0  ;;  %v1661_v18 = vadd.f32 %v1659_v12, %v1655_v48  ;;  %v759_v55 = vmul.f32 %v3596_v60, %v4801_v3  ;;  %v4804_v27 = vld [vmem:[#allocation28_spill] sm:$0xff] }
  0xc4   :  { %v1108_v30 = vmul.f32 %v3308_v15, %v4802_v9  ;;  %v1187_v32 = vadd.f32 %v1185_v38, %v1181_v41  ;;  %v1104_v8 = vadd.f32 %v1102_v36, %v1098_v13  ;;  %v1114_v0 = vmul.f32 %v4766_v11, %v4789_v43  ;;  %v4805_v13 = vld [vmem:[#allocation30_spill] sm:$0xff] }
  0xc5   :  { %v737_v44 = vadd.f32 %v735_v22, %v731_v25  ;;  %v1788_v39 = vld [vmem:[#allocation2 + $0x30] sm:$0xff]  ;;  %770 = vst [vmem:[#allocation2 + $0x118] sm:$0x7] %v768_v14  ;;  %v1667_v28 = vadd.f32 %v1665_v54, %v1661_v18  ;;  %v1120_v31 = vmul.f32 %v3326_v46, %v4803_v59  ;;  %v1126_v48 = vmul.f32 %v4767_v6, %v4791_v61 }
  0xc6   :  { %v1132_v12 = vmul.f32 %v3347_v53, %v4804_v27  ;;  %2576 = vmatprep.subr.mxu1 %v1788_v39  ;;  %v1193_v3 = vadd.f32 %v1191_v5, %v1187_v32  ;;  %v1110_v22 = vadd.f32 %v1108_v30, %v1104_v8  ;;  %v1584_v41 = vmul.f32 %v3361_v33, %v4800_v19 }
  0xc7   :  { %v743_v38 = vadd.f32 %v741_v37, %v737_v44  ;;  %2577 = vmatpush3.msra.mxu1 %v1788_v39  ;;  %v1673_v25 = vadd.f32 %v1671_v47, %v1667_v28  ;;  %v1138_v18 = vmul.f32 %v4774_v58, %v4805_v13  ;;  %v1588_v54 = vmul.f32 %v3366_v24, %v4786_v34 }
  0xc8   :  { %v1594_v36 = vmul.f32 %v3369_v35, %v4802_v9  ;;  %v1197_v14 = vadd.f32 %v3382_v7, %v1193_v3  ;;  %v1116_v32 = vadd.f32 %v1114_v0, %v1110_v22  ;;  %v1600_v44 = vmul.f32 %v4769_v21, %v4789_v43 }
  0xc9   :  { %v749_v53 = vadd.f32 %v747_v56, %v743_v38  ;;  %v1679_v8 = vadd.f32 %v1677_v45, %v1673_v25  ;;  %v1590_v5 = vadd.f32 %v1588_v54, %v1584_v41  ;;  %v1606_v47 = vmul.f32 %v4770_v52, %v4803_v59 }
  0xca   :  { %v1612_v37 = vmul.f32 %v4771_v50, %v4791_v61  ;;  %v1199_v30 = vmax.f32 %v1197_v14, 0.0  ;;  %v1122_v28 = vadd.f32 %v1120_v31, %v1116_v32  ;;  %v1618_v9 = vmul.f32 %v4775_v57, %v4804_v27  ;;  %v4810_v27 = vld [vmem:[#allocation32_spill] sm:$0xff] }
  0xcb   :  { %v755_v39 = vadd.f32 %v753_v1, %v749_v53  ;;  %v1683_v3 = vadd.f32 %v3413_v23, %v1679_v8  ;;  %v1596_v56 = vadd.f32 %v1594_v36, %v1590_v5  ;;  %v666_v0 = vmul.f32 %v3557_v40, %v4786_v34 }
  0xcc   :  { %v670_v45 = vmul.f32 %v3560_v42, %v4787_v16  ;;  %v1754_v38 = vld [vmem:[#allocation2 + $0x118] sm:$0xff]  ;;  %v1128_v41 = vadd.f32 %v1126_v48, %v1122_v28  ;;  %v1624_v25 = vmul.f32 %v4778_v10, %v4805_v13  ;;  %v676_v53 = vmul.f32 %v3567_v4, %v4789_v43  ;;  %v4806_v48 = vld [vmem:[#allocation27_spill] sm:$0xff]  ;;  %v4807_v28 = vld [vmem:[#allocation38_spill] sm:$0xff] }
  0xcd   :  { %v761_v22 = vadd.f32 %v759_v55, %v755_v39  ;;  %2503 = vmatpush3.msra.mxu0 %v1754_v38  ;;  %v1685_v1 = vmax.f32 %v1683_v3, 0.0  ;;  %v1602_v31 = vadd.f32 %v1600_v44, %v1596_v56  ;;  %v682_v36 = vmul.f32 %v3574_v29, %v4790_v17 }
  0xce   :  { %v672_v54 = vadd.f32 %v670_v45, %v666_v0  ;;  %2504 = vmatprep.subr.mxu0 %v1199_v30  ;;  %v1134_v32 = vadd.f32 %v1132_v12, %v1128_v41  ;;  %v688_v55 = vmul.f32 %v3580_v63, %v4791_v61  ;;  %v694_v8 = vmul.f32 %v3585_v49, %v4806_v48  ;;  %v4808_v0 = vld [vmem:[#allocation15_spill] sm:$0xff] }
  0xcf   :  { %v765_v14 = vadd.f32 %v3609_v20, %v761_v22  ;;  %2578 = vmatprep.subr.mxu1 %v1685_v1  ;;  %v1608_v5 = vadd.f32 %v1606_v47, %v1602_v31  ;;  %v700_v44 = vmul.f32 %v3590_v62, %v4805_v13  ;;  %v1097_v3 = vmul.f32 %v3280_v26, %v4807_v28  ;;  %v4809_v45 = vld [vmem:[#allocation39_spill] sm:$0xff] }
  0xd0   :  { %v678_v39 = vadd.f32 %v676_v53, %v672_v54  ;;  %2579 = vmatpush3.msra.mxu1 %v1685_v1  ;;  %v1140_v30 = vadd.f32 %v1138_v18, %v1134_v32  ;;  %v1101_v12 = vmul.f32 %v3296_v2, %v4808_v0  ;;  %v1107_v38 = vmul.f32 %v3308_v15, %v4809_v45  ;;  %v4811_v53 = vld [vmem:[#allocation21_spill] sm:$0xff]  ;;  %v4812_v1 = vld [vmem:[#allocation40_spill] sm:$0xff] }
  0xd1   :  { %v767_v56 = vmax.f32 %v765_v14, 0.0  ;;  %v1614_v22 = vadd.f32 %v1612_v37, %v1608_v5  ;;  %v706_v47 = vmul.f32 %v3596_v60, %v4810_v27  ;;  %v1113_v31 = vmul.f32 %v4766_v11, %v4811_v53  ;;  %v4814_v14 = vld [vmem:[#allocation48_spill] sm:$0xff] }
  0xd2   :  { %v684_v41 = vadd.f32 %v682_v36, %v678_v39  ;;  %v1144_v26 = vadd.f32 %v3382_v7, %v1140_v30  ;;  %v1103_v18 = vadd.f32 %v1101_v12, %v1097_v3  ;;  %v1119_v2 = vmul.f32 %v3326_v46, %v4812_v1  ;;  %v4813_v36 = vld [vmem:[#allocation41_spill] sm:$0xff]  ;;  %v4815_v3 = vld [vmem:[#allocation31_spill] sm:$0xff] }
  0xd3   :  { %2505 = vmatpush3.msra.mxu0 %v767_v56  ;;  %v1125_v15 = vmul.f32 %v4767_v6, %v4784_v51  ;;  %v1620_v37 = vadd.f32 %v1618_v9, %v1614_v22  ;;  %v1131_v32 = vmul.f32 %v4814_v14, %v4813_v36  ;;  %v1583_v11 = vmul.f32 %v3361_v33, %v4807_v28 }
  0xd4   :  { %v690_v54 = vadd.f32 %v688_v55, %v684_v41  ;;  %v1146_v5 = vmax.f32 %v1144_v26, 0.0  ;;  %v1109_v39 = vadd.f32 %v1107_v38, %v1103_v18  ;;  %v1587_v46 = vmul.f32 %v3366_v24, %v4808_v0  ;;  %v4816_v41 = vld [vmem:[#allocation18_spill] sm:$0xff]  ;;  %v4817_v26 = vld [vmem:[#allocation23_spill] sm:$0xff] }
  0xd5   :  { %v1593_v6 = vmul.f32 %v3369_v35, %v4809_v45  ;;  %v1626_v9 = vadd.f32 %v1624_v25, %v1620_v37  ;;  %v1137_v56 = vmul.f32 %v4774_v58, %v4815_v3  ;;  %v1599_v33 = vmul.f32 %v4769_v21, %v4811_v53 }
  0xd6   :  { %v696_v55 = vadd.f32 %v694_v8, %v690_v54  ;;  %1148 = vst [vmem:[#allocation2 + $0xf8] sm:$0x7] %v1146_v5  ;;  %v1115_v30 = vadd.f32 %v1113_v31, %v1109_v39  ;;  %v1589_v12 = vadd.f32 %v1587_v46, %v1583_v11  ;;  %v1605_v24 = vmul.f32 %v4770_v52, %v4812_v1 }
  0xd7   :  { %v1611_v35 = vmul.f32 %v4771_v50, %v4784_v51  ;;  %v1630_v25 = vadd.f32 %v3413_v23, %v1626_v9  ;;  %v1617_v58 = vmul.f32 %v4775_v57, %v4813_v36  ;;  %v665_v21 = vmul.f32 %v3557_v40, %v4808_v0 }
  0xd8   :  { %v702_v8 = vadd.f32 %v700_v44, %v696_v55  ;;  %v1121_v38 = vadd.f32 %v1119_v2, %v1115_v30  ;;  %v1595_v22 = vadd.f32 %v1593_v6, %v1589_v12  ;;  %v669_v52 = vmul.f32 %v3560_v42, %v4816_v41  ;;  %v1792_v55 = vld [vmem:[%s4531_s5 + $0x8] sm:$0xff] }
  0xd9   :  { %v675_v50 = vmul.f32 %v3567_v4, %v4811_v53  ;;  %v1632_v44 = vmax.f32 %v1630_v25, 0.0  ;;  %v1623_v57 = vmul.f32 %v4778_v10, %v4815_v3  ;;  %v681_v18 = vmul.f32 %v3574_v29, %v4817_v26  ;;  %v4818_v10 = vld [vmem:[#allocation29_spill] sm:$0xff]  ;;  %1891 = vmatprep.mubr.f32.mxu0 %v1792_v55 }
  0xda   :  { %v708_v31 = vadd.f32 %v706_v47, %v702_v8  ;;  %v1127_v2 = vadd.f32 %v1125_v15, %v1121_v38  ;;  %v1601_v37 = vadd.f32 %v1599_v33, %v1595_v22  ;;  %v671_v54 = vadd.f32 %v669_v52, %v665_v21  ;;  %v4821_v38 = vld [vmem:[#allocation43_spill] sm:$0xff] }
  0xdb   :  { %v687_v14 = vmul.f32 %v3580_v63, %v4784_v51  ;;  %1634 = vst [vmem:[#allocation2 + $0x68] sm:$0x7] %v1632_v44  ;;  %v693_v11 = vmul.f32 %v3585_v49, %v4818_v10  ;;  %v699_v5 = vmul.f32 %v3590_v62, %v4815_v3  ;;  %v3776_v15 = vstv %s3714_s14  ;;  %s3960_s14 = sld [smem:[#allocation8 + $0x1]] }
  0xdc   :  { %v712_v47 = vadd.f32 %v3609_v20, %v708_v31  ;;  %4819 = vst [vmem:[#allocation50_spill] sm:$0xff] %v3776_v15  ;;  %v1133_v39 = vadd.f32 %v1131_v32, %v1127_v2  ;;  %v1607_v46 = vadd.f32 %v1605_v24, %v1601_v37  ;;  %v677_v6 = vadd.f32 %v675_v50, %v671_v54  ;;  %v4822_v50 = vld [vmem:[#allocation44_spill] sm:$0xff]  ;;  %v4824_v54 = vld [vmem:[#allocation33_spill] sm:$0xff] }
  0xdd   :  { %v1044_v9 = vmul.f32 %v3776_v15, %v4787_v16  ;;  %v1768_v33 = vld [vmem:[#allocation2 + $0xf8] sm:$0xff]  ;;  %v3788_v12 = vstv %s3721_s15  ;;  %v3791_v25 = vstv %s3727_s16  ;;  %v3794_v32 = vstv %s3733_s12  ;;  %s3965_s15 = sld [smem:[#allocation8 + $0x2]] }
  0xde   :  { %v714_v30 = vmax.f32 %v712_v47, 0.0  ;;  %4820 = vst [vmem:[#allocation51_spill] sm:$0xff] %v3794_v32  ;;  %2506 = vmatprep.subr.mxu0 %v1768_v33  ;;  %v1139_v24 = vadd.f32 %v1137_v56, %v1133_v39  ;;  %v1613_v8 = vadd.f32 %v1611_v35, %v1607_v46  ;;  %v683_v21 = vadd.f32 %v681_v18, %v677_v6  ;;  %v4825_v33 = vld [vmem:[#allocation45_spill] sm:$0xff]  ;;  %s3971_s16 = sld [smem:[#allocation8 + $0x3]] }
  0xdf   :  { %v1048_v22 = vmul.f32 %v3788_v12, %v4821_v38  ;;  %v1054_v52 = vmul.f32 %v3791_v25, %v4790_v17  ;;  %v1060_v44 = vmul.f32 %v3794_v32, %v4822_v50  ;;  %v3807_v31 = vstv %s3739_s2  ;;  %s3975_s12 = sld [smem:[#allocation8 + $0x4]] }
  0xe0   :  { %716 = vst [vmem:[#allocation2 + $0x110] sm:$0x7] %v714_v30  ;;  %4823 = vst [vmem:[#allocation52_spill] sm:$0xff] %v3807_v31  ;;  %v3810_v2 = vstv %s3745_s1  ;;  %v1143_v56 = vadd.f32 %v3382_v7, %v1139_v24  ;;  %v1619_v35 = vadd.f32 %v1617_v58, %v1613_v8  ;;  %v689_v18 = vadd.f32 %v687_v14, %v683_v21  ;;  %v4826_v8 = vld [vmem:[#allocation47_spill] sm:$0xff]  ;;  %s3982_s2 = sld [smem:[#allocation8 + $0x5]] }
  0xe1   :  { %v1050_v37 = vadd.f32 %v1048_v22, %v1044_v9  ;;  %v705_v47 = vmul.f32 %v3596_v60, %v4824_v54  ;;  %v1066_v39 = vmul.f32 %v3807_v31, %v4806_v48  ;;  %v3822_v46 = vstv %s3752_s18  ;;  %s3988_s1 = sld [smem:[#allocation8 + $0x6]] }
  0xe2   :  { %v3825_v6 = vstv %s3758_s19  ;;  %v1786_v55 = vld [vmem:[#allocation2 + $0x68] sm:$0xff]  ;;  %v1145_v7 = vmax.f32 %v1143_v56, 0.0  ;;  %v1625_v58 = vadd.f32 %v1623_v57, %v1619_v35  ;;  %v695_v14 = vadd.f32 %v693_v11, %v689_v18  ;;  %s3994_s18 = sld [smem:[#allocation8 + $0x7]] }
  0xe3   :  { %v1056_v9 = vadd.f32 %v1054_v52, %v1050_v37  ;;  %2580 = vmatprep.subr.mxu1 %v1786_v55  ;;  %v1072_v30 = vmul.f32 %v3810_v2, %v4825_v33  ;;  %v1078_v24 = vmul.f32 %v3822_v46, %v4810_v27  ;;  %v1084_v21 = vmul.f32 %v3825_v6, %v4826_v8  ;;  %s4008_s19 = sld [smem:[#allocation9]] }
  0xe4   :  { %v3838_v22 = vstv %s3764_s20  ;;  %2581 = vmatpush3.msra.mxu1 %v1786_v55  ;;  %v1629_v57 = vadd.f32 %v3413_v23, %v1625_v58  ;;  %v701_v11 = vadd.f32 %v699_v5, %v695_v14  ;;  %v3844_v35 = vstv %s3768_s21  ;;  %s4136_s20 = sld [smem:[#allocation8 + $0x100]] }
  0xe5   :  { %v1062_v52 = vadd.f32 %v1060_v44, %v1056_v9  ;;  %v1530_v56 = vmul.f32 %v3838_v22, %v4787_v16  ;;  %v3847_v18 = vstv %s3778_s22  ;;  %v3850_v37 = vstv %s3782_s17  ;;  %s4169_s21 = sld [smem:[#allocation8 + $0x101]] }
  0xe6   :  { %v3853_v3 = vstv %s3796_s0  ;;  %v1631_v51 = vmax.f32 %v1629_v57, 0.0  ;;  %v707_v55 = vadd.f32 %v705_v47, %v701_v11  ;;  %v1534_v23 = vmul.f32 %v3844_v35, %v4821_v38  ;;  %s4173_s22 = sld [smem:[#allocation8 + $0x102]] }
  0xe7   :  { %v1752_v36 = vld [vmem:[#allocation2 + $0x110] sm:$0xff]  ;;  %v1068_v1 = vadd.f32 %v1066_v39, %v1062_v52  ;;  %v3858_v5 = vstv %s3800_s25  ;;  %v1540_v44 = vmul.f32 %v3847_v18, %v4790_v17  ;;  %v1546_v58 = vmul.f32 %v3850_v37, %v4822_v50  ;;  %s4181_s17 = sld [smem:[#allocation8 + $0x103]] }
  0xe8   :  { %2507 = vmatpush3.msra.mxu0 %v1752_v36  ;;  %4827 = vst [vmem:[#allocation34_spill] sm:$0xff] %v3858_v5  ;;  %v3865_v14 = vstv %s3812_s3  ;;  %2582 = vmatprep.subr.mxu1 %v1631_v51  ;;  %v711_v47 = vadd.f32 %v3609_v20, %v707_v55  ;;  %v1536_v9 = vadd.f32 %v1534_v23, %v1530_v56  ;;  %v3869_v57 = vstv %s3815_s4  ;;  %v4828_v56 = vld [vmem:[#allocation19_spill] sm:$0xff]  ;;  %s4200_s0 = sld [smem:[#allocation8 + $0x105]] }
  0xe9   :  { %2508 = vmatprep.subr.mxu0 %v1145_v7  ;;  %v1074_v39 = vadd.f32 %v1072_v30, %v1068_v1  ;;  %2583 = vmatpush3.msra.mxu1 %v1631_v51  ;;  %v1552_v36 = vmul.f32 %v3853_v3, %v4806_v48  ;;  %v1558_v11 = vmul.f32 %v3865_v14, %v4825_v33  ;;  %v3878_v50 = vstv %s3827_s26  ;;  %v4829_v33 = vld [vmem:[#allocation28_spill] sm:$0xff]  ;;  %s4206_s25 = sld [smem:[#allocation8 + $0x106]] }
  0xea   :  { %v1564_v52 = vmul.f32 %v3869_v57, %v4810_v27  ;;  %v713_v7 = vmax.f32 %v711_v47, 0.0  ;;  %v1542_v17 = vadd.f32 %v1540_v44, %v1536_v9  ;;  %v3881_v55 = vstv %s3829_s27  ;;  %v1793_v47 = vld [vmem:[%s4531_s5 + $0x10] sm:$0xff]  ;;  %s4210_s3 = sld [smem:[#allocation8 + $0x281]] }
  0xeb   :  { %v1080_v38 = vadd.f32 %v1078_v24, %v1074_v39  ;;  %v1570_v1 = vmul.f32 %v3878_v50, %v4826_v8  ;;  %v612_v51 = vmul.f32 %v3557_v40, %v4800_v19  ;;  %v616_v30 = vmul.f32 %v3560_v42, %v4786_v34  ;;  %2604 = vmatprep.mubr.f32.mxu1 %v1793_v47  ;;  %s4218_s4 = sld [smem:[#allocation8 + $0x107]] }
  0xec   :  { %v622_v23 = vmul.f32 %v3567_v4, %v4828_v56  ;;  %2509 = vmatpush3.msra.mxu0 %v713_v7  ;;  %v1548_v44 = vadd.f32 %v1546_v58, %v1542_v17  ;;  %v628_v39 = vmul.f32 %v3574_v29, %v4789_v43  ;;  %v634_v9 = vmul.f32 %v3580_v63, %v4803_v59  ;;  %v4831_v59 = vld [vmem:[#allocation56_spill] sm:$0xff]  ;;  %s4224_s26 = sld [smem:[#allocation8 + $0x282]] }
  0xed   :  { %v1086_v24 = vadd.f32 %v1084_v21, %v1080_v38  ;;  %v618_v19 = vadd.f32 %v616_v30, %v612_v51  ;;  %v640_v8 = vmul.f32 %v3585_v49, %v4791_v61  ;;  %v646_v56 = vmul.f32 %v3590_v62, %v4829_v33  ;;  %v4830_v21 = vld [vmem:[#allocation55_spill] sm:$0xff]  ;;  %s4229_s27 = sld [smem:[#allocation8 + $0x283]] }
  0xee   :  { %v1043_v27 = vmul.f32 %v3776_v15, %v4816_v41  ;;  %v1554_v17 = vadd.f32 %v1552_v36, %v1548_v44  ;;  %v1047_v58 = vmul.f32 %v3788_v12, %v4830_v21  ;;  %v1053_v7 = vmul.f32 %v3791_v25, %v4817_v26  ;;  %v4832_v36 = vld [vmem:[#allocation57_spill] sm:$0xff] }
  0xef   :  { %v1090_v38 = vadd.f32 %v3858_v5, %v1086_v24  ;;  %v624_v51 = vadd.f32 %v622_v23, %v618_v19  ;;  %v652_v30 = vmul.f32 %v3596_v60, %v4805_v13  ;;  %v1059_v33 = vmul.f32 %v3794_v32, %v4831_v59 }
  0xf0   :  { %v1065_v48 = vmul.f32 %v3807_v31, %v4818_v10  ;;  %v1560_v61 = vadd.f32 %v1558_v11, %v1554_v17  ;;  %v1049_v24 = vadd.f32 %v1047_v58, %v1043_v27  ;;  %v1071_v44 = vmul.f32 %v3810_v2, %v4832_v36  ;;  %v4833_v31 = vld [vmem:[#allocation42_spill] sm:$0xff] }
  0xf1   :  { %v1092_v47 = vmax.f32 %v1090_v38, 0.0  ;;  %v630_v5 = vadd.f32 %v628_v39, %v624_v51  ;;  %v1077_v20 = vmul.f32 %v3822_v46, %v4824_v54  ;;  %v1529_v19 = vmul.f32 %v3838_v22, %v4816_v41 }
  0xf2   :  { %v1533_v23 = vmul.f32 %v3844_v35, %v4830_v21  ;;  %v1566_v13 = vadd.f32 %v1564_v52, %v1560_v61  ;;  %v1055_v32 = vadd.f32 %v1053_v7, %v1049_v24  ;;  %v1083_v11 = vmul.f32 %v3825_v6, %v4833_v31 }
  0xf3   :  { %1094 = vst [vmem:[#allocation2 + $0x168] sm:$0x7] %v1092_v47  ;;  %v1539_v27 = vmul.f32 %v3847_v18, %v4817_v26  ;;  %v636_v38 = vadd.f32 %v634_v9, %v630_v5  ;;  %v1545_v17 = vmul.f32 %v3850_v37, %v4831_v59  ;;  %v1551_v58 = vmul.f32 %v3853_v3, %v4818_v10 }
  0xf4   :  { %v1535_v39 = vadd.f32 %v1533_v23, %v1529_v19  ;;  %v1572_v51 = vadd.f32 %v1570_v1, %v1566_v13  ;;  %v1061_v41 = vadd.f32 %v1059_v33, %v1055_v32  ;;  %v1557_v61 = vmul.f32 %v3865_v14, %v4832_v36  ;;  %v4836_v36 = vld [vmem:[#allocation41_spill] sm:$0xff] }
  0xf5   :  { %v1563_v52 = vmul.f32 %v3869_v57, %v4824_v54  ;;  %v642_v7 = vadd.f32 %v640_v8, %v636_v38  ;;  %v611_v5 = vmul.f32 %v3557_v40, %v4807_v28  ;;  %v615_v9 = vmul.f32 %v3560_v42, %v4808_v0  ;;  %v4834_v38 = vld [vmem:[#allocation40_spill] sm:$0xff] }
  0xf6   :  { %v1541_v47 = vadd.f32 %v1539_v27, %v1535_v39  ;;  %v1576_v24 = vadd.f32 %v3881_v55, %v1572_v51  ;;  %v1067_v19 = vadd.f32 %v1065_v48, %v1061_v41  ;;  %v1569_v13 = vmul.f32 %v3878_v50, %v4833_v31  ;;  %v4835_v39 = vld [vmem:[#allocation26_spill] sm:$0xff] }
  0xf7   :  { %v621_v32 = vmul.f32 %v3567_v4, %v4809_v45  ;;  %v648_v33 = vadd.f32 %v646_v56, %v642_v7  ;;  %v617_v23 = vadd.f32 %v615_v9, %v611_v5  ;;  %v627_v8 = vmul.f32 %v3574_v29, %v4811_v53  ;;  %v4839_v5 = vld [vmem:[#allocation22_spill] sm:$0xff]  ;;  %v4840_v9 = vld [vmem:[#allocation51_spill] sm:$0xff] }
  0xf8   :  { %v1547_v1 = vadd.f32 %v1545_v17, %v1541_v47  ;;  %v1578_v27 = vmax.f32 %v1576_v24, 0.0  ;;  %v1073_v40 = vadd.f32 %v1071_v44, %v1067_v19  ;;  %v633_v42 = vmul.f32 %v3580_v63, %v4834_v38  ;;  %v4841_v19 = vld [vmem:[#allocation25_spill] sm:$0xff] }
  0xf9   :  { %v639_v48 = vmul.f32 %v3585_v49, %v4835_v39  ;;  %v654_v51 = vadd.f32 %v652_v30, %v648_v33  ;;  %v623_v31 = vadd.f32 %v621_v32, %v617_v23  ;;  %v645_v4 = vmul.f32 %v3590_v62, %v4836_v36  ;;  %v4837_v30 = vld [vmem:[#allocation46_spill] sm:$0xff]  ;;  %v4842_v32 = vld [vmem:[#allocation52_spill] sm:$0xff] }
  0xfa   :  { %v1766_v41 = vld [vmem:[#allocation2 + $0x168] sm:$0xff]  ;;  %v1553_v28 = vadd.f32 %v1551_v58, %v1547_v1  ;;  %1580 = vst [vmem:[#allocation2 + $0x78] sm:$0x7] %v1578_v27  ;;  %v1079_v29 = vadd.f32 %v1077_v20, %v1073_v40  ;;  %v990_v56 = vmul.f32 %v3776_v15, %v4786_v34  ;;  %v994_v63 = vmul.f32 %v3788_v12, %v4787_v16 }
  0xfb   :  { %2510 = vmatprep.subr.mxu0 %v1766_v41  ;;  %v1000_v49 = vmul.f32 %v3791_v25, %v4789_v43  ;;  %v658_v44 = vadd.f32 %v4837_v30, %v654_v51  ;;  %v629_v62 = vadd.f32 %v627_v8, %v623_v31  ;;  %v4838_v58 = vld [vmem:[#allocation31_spill] sm:$0xff]  ;;  %v1006_v24 = vmul.f32 %v4840_v9, %v4839_v5  ;;  %v4845_v8 = vld [vmem:[#allocation30_spill] sm:$0xff] }
  0xfc   :  { %v1559_v17 = vadd.f32 %v1557_v61, %v1553_v28  ;;  %v651_v7 = vmul.f32 %v3596_v60, %v4838_v58  ;;  %v1085_v20 = vadd.f32 %v1083_v11, %v1079_v29  ;;  %v996_v47 = vadd.f32 %v994_v63, %v990_v56  ;;  %v4843_v28 = vld [vmem:[#allocation27_spill] sm:$0xff]  ;;  %v4844_v60 = vld [vmem:[#allocation34_spill] sm:$0xff] }
  0xfd   :  { %v1012_v33 = vmul.f32 %v4842_v32, %v4841_v19  ;;  %v660_v1 = vmax.f32 %v658_v44, 0.0  ;;  %v635_v27 = vadd.f32 %v633_v42, %v629_v62  ;;  %v1018_v31 = vmul.f32 %v3810_v2, %v4843_v28 }
  0xfe   :  { %v1565_v23 = vadd.f32 %v1563_v52, %v1559_v17  ;;  %v1089_v61 = vadd.f32 %v4844_v60, %v1085_v20  ;;  %v1002_v11 = vadd.f32 %v1000_v49, %v996_v47  ;;  %v1024_v40 = vmul.f32 %v3822_v46, %v4845_v8  ;;  %v4846_v49 = vld [vmem:[#allocation32_spill] sm:$0xff] }
  0xff   :  { %v1476_v41 = vmul.f32 %v3838_v22, %v4786_v34  ;;  %662 = vst [vmem:[#allocation2 + $0x178] sm:$0x7] %v660_v1  ;;  %v641_v52 = vadd.f32 %v639_v48, %v635_v27  ;;  %v1480_v42 = vmul.f32 %v3844_v35, %v4787_v16  ;;  %v1486_v29 = vmul.f32 %v3847_v18, %v4789_v43 }
 0x100   :  { %v1571_v51 = vadd.f32 %v1569_v13, %v1565_v23  ;;  %v1091_v56 = vmax.f32 %v1089_v61, 0.0  ;;  %v1008_v63 = vadd.f32 %v1006_v24, %v1002_v11  ;;  %v1030_v44 = vmul.f32 %v3825_v6, %v4846_v49 }
 0x101   :  { %v1492_v17 = vmul.f32 %v3850_v37, %v4839_v5  ;;  %v1784_v13 = vld [vmem:[#allocation2 + $0x78] sm:$0xff]  ;;  %v647_v62 = vadd.f32 %v645_v4, %v641_v52  ;;  %v1482_v20 = vadd.f32 %v1480_v42, %v1476_v41  ;;  %v1498_v47 = vmul.f32 %v3853_v3, %v4841_v19 }
 0x102   :  { %v1575_v48 = vadd.f32 %v3881_v55, %v1571_v51  ;;  %2584 = vmatprep.subr.mxu1 %v1784_v13  ;;  %v1014_v24 = vadd.f32 %v1012_v33, %v1008_v63  ;;  %v1504_v1 = vmul.f32 %v3865_v14, %v4843_v28  ;;  %v1510_v23 = vmul.f32 %v3869_v57, %v4845_v8 }
 0x103   :  { %v4004_v27 = vstv %s3952_s29  ;;  %2585 = vmatpush3.msra.mxu1 %v1784_v13  ;;  %v653_v11 = vadd.f32 %v651_v7, %v647_v62  ;;  %v1488_v4 = vadd.f32 %v1486_v29, %v1482_v20  ;;  %v4011_v51 = vstv %s3960_s14  ;;  %v4847_v7 = vld [vmem:[#allocation43_spill] sm:$0xff]  ;;  %s4248_s29 = sld [smem:[#allocation8 + $0x286]] }
 0x104   :  { %v1577_v61 = vmax.f32 %v1575_v48, 0.0  ;;  %v558_v41 = vmul.f32 %v4004_v27, %v4787_v16  ;;  %v1020_v33 = vadd.f32 %v1018_v31, %v1014_v24  ;;  %v4014_v52 = vstv %s3965_s15  ;;  %s4254_s14 = sld [smem:[#allocation8 + $0x287]] }
 0x105   :  { %v4017_v42 = vstv %s3971_s16  ;;  %v657_v63 = vadd.f32 %v4837_v30, %v653_v11  ;;  %v1494_v13 = vadd.f32 %v1492_v17, %v1488_v4  ;;  %v562_v29 = vmul.f32 %v4011_v51, %v4847_v7  ;;  %v4848_v4 = vld [vmem:[#allocation44_spill] sm:$0xff]  ;;  %s4259_s15 = sld [smem:[#allocation9 + $0x2]] }
 0x106   :  { %2586 = vmatprep.subr.mxu1 %v1577_v61  ;;  %v568_v48 = vmul.f32 %v4014_v52, %v4839_v5  ;;  %v1750_v62 = vld [vmem:[#allocation2 + $0x178] sm:$0xff]  ;;  %v1026_v31 = vadd.f32 %v1024_v40, %v1020_v33  ;;  %v1516_v20 = vmul.f32 %v3878_v50, %v4846_v49  ;;  %v4027_v24 = vstv %s3975_s12  ;;  %s4282_s16 = sld [smem:[#allocation9 + $0x5]] }
 0x107   :  { %2587 = vmatpush3.msra.mxu1 %v1577_v61  ;;  %v4030_v36 = vstv %s3982_s2  ;;  %2511 = vmatpush3.msra.mxu0 %v1750_v62  ;;  %v659_v30 = vmax.f32 %v657_v63, 0.0  ;;  %v1500_v17 = vadd.f32 %v1498_v47, %v1494_v13  ;;  %v564_v11 = vadd.f32 %v562_v29, %v558_v41  ;;  %v4849_v62 = vld [vmem:[#allocation45_spill] sm:$0xff]  ;;  %v4850_v63 = vld [vmem:[#allocation47_spill] sm:$0xff]  ;;  %v4851_v29 = vld [vmem:[#allocation18_spill] sm:$0xff] }
 0x108   :  { %v574_v7 = vmul.f32 %v4017_v42, %v4848_v4  ;;  %2512 = vmatprep.subr.mxu0 %v1091_v56  ;;  %v1032_v38 = vadd.f32 %v1030_v44, %v1026_v31  ;;  %v580_v40 = vmul.f32 %v4027_v24, %v4843_v28  ;;  %v4037_v61 = vstv %s3988_s1 }
 0x109   :  { %v4040_v33 = vstv %s3994_s18  ;;  %2513 = vmatpush3.msra.mxu0 %v659_v30  ;;  %v1506_v45 = vadd.f32 %v1504_v1, %v1500_v17  ;;  %v570_v5 = vadd.f32 %v568_v48, %v564_v11  ;;  %v586_v47 = vmul.f32 %v4030_v36, %v4849_v62 }
 0x10a   :  { %v592_v41 = vmul.f32 %v4037_v61, %v4846_v49  ;;  %v1036_v56 = vadd.f32 %v4844_v60, %v1032_v38  ;;  %v598_v44 = vmul.f32 %v4040_v33, %v4850_v63  ;;  %v989_v13 = vmul.f32 %v3776_v15, %v4808_v0 }
 0x10b   :  { %v993_v31 = vmul.f32 %v3788_v12, %v4851_v29  ;;  %v1512_v30 = vadd.f32 %v1510_v23, %v1506_v45  ;;  %v576_v1 = vadd.f32 %v574_v7, %v570_v5  ;;  %v4054_v48 = vstv %s4008_s19 }
 0x10c   :  { %v999_v17 = vmul.f32 %v3791_v25, %v4811_v53  ;;  %v1038_v11 = vmax.f32 %v1036_v56, 0.0  ;;  %v1005_v38 = vmul.f32 %v4840_v9, %v4817_v26  ;;  %v1011_v63 = vmul.f32 %v4842_v32, %v4835_v39 }
 0x10d   :  { %v995_v62 = vadd.f32 %v993_v31, %v989_v13  ;;  %v1518_v4 = vadd.f32 %v1516_v20, %v1512_v30  ;;  %v582_v49 = vadd.f32 %v580_v40, %v576_v1  ;;  %v1017_v28 = vmul.f32 %v3810_v2, %v4818_v10 }
 0x10e   :  { %v1023_v45 = vmul.f32 %v3822_v46, %v4838_v58  ;;  %1040 = vst [vmem:[#allocation2 + $0xa8] sm:$0x7] %v1038_v11  ;;  %v1475_v23 = vmul.f32 %v3838_v22, %v4808_v0  ;;  %v1479_v7 = vmul.f32 %v3844_v35, %v4851_v29  ;;  %v1485_v56 = vmul.f32 %v3847_v18, %v4811_v53 }
 0x10f   :  { %v1001_v5 = vadd.f32 %v999_v17, %v995_v62  ;;  %v1522_v20 = vadd.f32 %v3881_v55, %v1518_v4  ;;  %v588_v40 = vadd.f32 %v586_v47, %v582_v49  ;;  %v1029_v13 = vmul.f32 %v3825_v6, %v4824_v54 }
 0x110   :  { %v1491_v31 = vmul.f32 %v3850_v37, %v4817_v26  ;;  %v1481_v62 = vadd.f32 %v1479_v7, %v1475_v23  ;;  %v1497_v1 = vmul.f32 %v3853_v3, %v4835_v39  ;;  %v1503_v17 = vmul.f32 %v3865_v14, %v4818_v10 }
 0x111   :  { %v1007_v30 = vadd.f32 %v1005_v38, %v1001_v5  ;;  %v1524_v11 = vmax.f32 %v1522_v20, 0.0  ;;  %v594_v0 = vadd.f32 %v592_v41, %v588_v40  ;;  %v1509_v4 = vmul.f32 %v3869_v57, %v4838_v58 }
 0x112   :  { %v557_v49 = vmul.f32 %v4004_v27, %v4851_v29  ;;  %v1487_v53 = vadd.f32 %v1485_v56, %v1481_v62  ;;  %v561_v38 = vmul.f32 %v4011_v51, %v4830_v21  ;;  %v567_v5 = vmul.f32 %v4014_v52, %v4817_v26 }
 0x113   :  { %v1013_v47 = vadd.f32 %v1011_v63, %v1007_v30  ;;  %1526 = vst [vmem:[#allocation2 + $0x8] sm:$0x7] %v1524_v11  ;;  %v600_v23 = vadd.f32 %v598_v44, %v594_v0  ;;  %v1515_v7 = vmul.f32 %v3878_v50, %v4824_v54  ;;  %v573_v41 = vmul.f32 %v4017_v42, %v4831_v59  ;;  %v4852_v30 = vld [vmem:[#allocation57_spill] sm:$0xff]  ;;  %v4853_v44 = vld [vmem:[#allocation14_spill] sm:$0xff] }
 0x114   :  { %v579_v20 = vmul.f32 %v4027_v24, %v4818_v10  ;;  %v1493_v63 = vadd.f32 %v1491_v31, %v1487_v53  ;;  %v563_v56 = vadd.f32 %v561_v38, %v557_v49  ;;  %v585_v62 = vmul.f32 %v4030_v36, %v4852_v30  ;;  %v4854_v31 = vld [vmem:[#allocation19_spill] sm:$0xff]  ;;  %v4855_v38 = vld [vmem:[#allocation42_spill] sm:$0xff] }
 0x115   :  { %v1019_v40 = vadd.f32 %v1017_v28, %v1013_v47  ;;  %v1764_v21 = vld [vmem:[#allocation2 + $0xa8] sm:$0xff]  ;;  %v604_v26 = vadd.f32 %v4054_v48, %v600_v23  ;;  %v591_v0 = vmul.f32 %v4037_v61, %v4824_v54  ;;  %v936_v11 = vmul.f32 %v3776_v15, %v4853_v44  ;;  %v4856_v15 = vld [vmem:[#allocation24_spill] sm:$0xff] }
 0x116   :  { %v940_v59 = vmul.f32 %v3788_v12, %v4786_v34  ;;  %2514 = vmatprep.subr.mxu0 %v1764_v21  ;;  %v1499_v28 = vadd.f32 %v1497_v1, %v1493_v63  ;;  %v569_v53 = vadd.f32 %v567_v5, %v563_v56  ;;  %v946_v49 = vmul.f32 %v3791_v25, %v4854_v31  ;;  %v4857_v5 = vld [vmem:[#allocation28_spill] sm:$0xff] }
 0x117   :  { %v1025_v10 = vadd.f32 %v1023_v45, %v1019_v40  ;;  %v606_v47 = vmax.f32 %v604_v26, 0.0  ;;  %v597_v23 = vmul.f32 %v4040_v33, %v4855_v38  ;;  %v952_v54 = vmul.f32 %v4840_v9, %v4789_v43 }
 0x118   :  { %v942_v30 = vadd.f32 %v940_v59, %v936_v11  ;;  %v1505_v58 = vadd.f32 %v1503_v17, %v1499_v28  ;;  %v575_v39 = vadd.f32 %v573_v41, %v569_v53  ;;  %v958_v21 = vmul.f32 %v4842_v32, %v4856_v15 }
 0x119   :  { %v1031_v29 = vadd.f32 %v1029_v13, %v1025_v10  ;;  %608 = vst [vmem:[#allocation2 + $0x128] sm:$0x7] %v606_v47  ;;  %v964_v1 = vmul.f32 %v3810_v2, %v4841_v19  ;;  %v970_v26 = vmul.f32 %v3822_v46, %v4857_v5  ;;  %v1422_v59 = vmul.f32 %v3838_v22, %v4853_v44 }
 0x11a   :  { %v948_v45 = vadd.f32 %v946_v49, %v942_v30  ;;  %v1782_v40 = vld [vmem:[#allocation2 + $0x8] sm:$0xff]  ;;  %v1511_v10 = vadd.f32 %v1509_v4, %v1505_v58  ;;  %v581_v13 = vadd.f32 %v579_v20, %v575_v39  ;;  %v1426_v17 = vmul.f32 %v3844_v35, %v4786_v34 }
 0x11b   :  { %v1035_v63 = vadd.f32 %v4844_v60, %v1031_v29  ;;  %2588 = vmatprep.subr.mxu1 %v1782_v40  ;;  %v976_v56 = vmul.f32 %v3825_v6, %v4845_v8  ;;  %v1432_v30 = vmul.f32 %v3847_v18, %v4854_v31  ;;  %v1438_v11 = vmul.f32 %v3850_v37, %v4789_v43 }
 0x11c   :  { %v954_v41 = vadd.f32 %v952_v54, %v948_v45  ;;  %2589 = vmatpush3.msra.mxu1 %v1782_v40  ;;  %v1517_v53 = vadd.f32 %v1515_v7, %v1511_v10  ;;  %v587_v29 = vadd.f32 %v585_v62, %v581_v13  ;;  %v1428_v58 = vadd.f32 %v1426_v17, %v1422_v59  ;;  %v4858_v17 = vld [vmem:[#allocation22_spill] sm:$0xff] }
 0x11d   :  { %v1037_v28 = vmax.f32 %v1035_v63, 0.0  ;;  %v1444_v4 = vmul.f32 %v3853_v3, %v4856_v15  ;;  %v1450_v54 = vmul.f32 %v3865_v14, %v4841_v19  ;;  %v1456_v20 = vmul.f32 %v3869_v57, %v4857_v5 }
 0x11e   :  { %v960_v39 = vadd.f32 %v958_v21, %v954_v41  ;;  %v1521_v49 = vadd.f32 %v3881_v55, %v1517_v53  ;;  %v593_v47 = vadd.f32 %v591_v0, %v587_v29  ;;  %v1434_v45 = vadd.f32 %v1432_v30, %v1428_v58  ;;  %v4859_v29 = vld [vmem:[#allocation27_spill] sm:$0xff] }
 0x11f   :  { %v504_v40 = vmul.f32 %v4004_v27, %v4786_v34  ;;  %v1462_v62 = vmul.f32 %v3878_v50, %v4845_v8  ;;  %v508_v21 = vmul.f32 %v4011_v51, %v4787_v16  ;;  %v514_v59 = vmul.f32 %v4014_v52, %v4789_v43 }
 0x120   :  { %v966_v7 = vadd.f32 %v964_v1, %v960_v39  ;;  %v1748_v63 = vld [vmem:[#allocation2 + $0x128] sm:$0xff]  ;;  %v1523_v10 = vmax.f32 %v1521_v49, 0.0  ;;  %v599_v13 = vadd.f32 %v597_v23, %v593_v47  ;;  %v1440_v0 = vadd.f32 %v1438_v11, %v1434_v45 }
 0x121   :  { %v520_v41 = vmul.f32 %v4017_v42, %v4858_v17  ;;  %2515 = vmatpush3.msra.mxu0 %v1748_v63  ;;  %v510_v53 = vadd.f32 %v508_v21, %v504_v40  ;;  %v526_v1 = vmul.f32 %v4027_v24, %v4841_v19  ;;  %v532_v58 = vmul.f32 %v4030_v36, %v4859_v29  ;;  %v4861_v47 = vld [vmem:[#allocation50_spill] sm:$0xff]  ;;  %v4862_v40 = vld [vmem:[#allocation15_spill] sm:$0xff] }
 0x122   :  { %v972_v30 = vadd.f32 %v970_v26, %v966_v7  ;;  %2516 = vmatprep.subr.mxu0 %v1037_v28  ;;  %2590 = vmatprep.subr.mxu1 %v1523_v10  ;;  %v603_v39 = vadd.f32 %v4054_v48, %v599_v13  ;;  %v1446_v38 = vadd.f32 %v1444_v4, %v1440_v0  ;;  %v4860_v26 = vld [vmem:[#allocation38_spill] sm:$0xff]  ;;  %v4863_v28 = vld [vmem:[#allocation32_spill] sm:$0xff]  ;;  %v4864_v13 = vld [vmem:[#allocation39_spill] sm:$0xff] }
 0x123   :  { %v538_v23 = vmul.f32 %v4037_v61, %v4845_v8  ;;  %2591 = vmatpush3.msra.mxu1 %v1523_v10  ;;  %v516_v49 = vadd.f32 %v514_v59, %v510_v53  ;;  %v935_v45 = vmul.f32 %v4861_v47, %v4860_v26  ;;  %v939_v7 = vmul.f32 %v3788_v12, %v4862_v40  ;;  %v4866_v47 = vld [vmem:[#allocation40_spill] sm:$0xff] }
 0x124   :  { %v978_v11 = vadd.f32 %v976_v56, %v972_v30  ;;  %v605_v21 = vmax.f32 %v603_v39, 0.0  ;;  %v1452_v63 = vadd.f32 %v1450_v54, %v1446_v38  ;;  %v544_v5 = vmul.f32 %v4040_v33, %v4863_v28  ;;  %v4865_v30 = vld [vmem:[#allocation21_spill] sm:$0xff]  ;;  %v4867_v39 = vld [vmem:[#allocation26_spill] sm:$0xff] }
 0x125   :  { %v945_v4 = vmul.f32 %v3791_v25, %v4864_v13  ;;  %v522_v10 = vadd.f32 %v520_v41, %v516_v49  ;;  %v941_v56 = vadd.f32 %v939_v7, %v935_v45  ;;  %v951_v59 = vmul.f32 %v4840_v9, %v4865_v30  ;;  %v4869_v45 = vld [vmem:[#allocation31_spill] sm:$0xff] }
 0x126   :  { %v982_v0 = vadd.f32 %v4844_v60, %v978_v11  ;;  %2517 = vmatpush3.msra.mxu0 %v605_v21  ;;  %v1458_v53 = vadd.f32 %v1456_v20, %v1452_v63  ;;  %v957_v12 = vmul.f32 %v4842_v32, %v4866_v47  ;;  %v963_v38 = vmul.f32 %v3810_v2, %v4867_v39  ;;  %v4868_v11 = vld [vmem:[#allocation41_spill] sm:$0xff] }
 0x127   :  { %v880_v54 = vstv %s4136_s20  ;;  %v528_v25 = vadd.f32 %v526_v1, %v522_v10  ;;  %v947_v19 = vadd.f32 %v945_v4, %v941_v56  ;;  %v1421_v41 = vmul.f32 %v3838_v22, %v4860_v26  ;;  %v4871_v10 = vld [vmem:[#allocation23_spill] sm:$0xff] }
 0x128   :  { %v984_v8 = vmax.f32 %v982_v0, 0.0  ;;  %v1464_v9 = vadd.f32 %v1462_v62, %v1458_v53  ;;  %v969_v20 = vmul.f32 %v3822_v46, %v4868_v11  ;;  %v1425_v32 = vmul.f32 %v3844_v35, %v4862_v40 }
 0x129   :  { %v1431_v2 = vmul.f32 %v3847_v18, %v4864_v13  ;;  %v534_v1 = vadd.f32 %v532_v58, %v528_v25  ;;  %v953_v49 = vadd.f32 %v951_v59, %v947_v19  ;;  %v975_v22 = vmul.f32 %v3825_v6, %v4869_v45  ;;  %v4870_v58 = vld [vmem:[#allocation18_spill] sm:$0xff] }
 0x12a   :  { %986 = vst [vmem:[#allocation2 + $0x120] sm:$0x7] %v984_v8  ;;  %v1437_v62 = vmul.f32 %v3850_v37, %v4865_v30  ;;  %v1468_v46 = vadd.f32 %v3881_v55, %v1464_v9  ;;  %v1427_v7 = vadd.f32 %v1425_v32, %v1421_v41  ;;  %v1443_v35 = vmul.f32 %v3853_v3, %v4866_v47 }
 0x12b   :  { %v1449_v18 = vmul.f32 %v3865_v14, %v4867_v39  ;;  %v540_v19 = vadd.f32 %v538_v23, %v534_v1  ;;  %v959_v8 = vadd.f32 %v957_v12, %v953_v49  ;;  %v503_v6 = vmul.f32 %v4004_v27, %v4862_v40  ;;  %v4872_v12 = vld [vmem:[#allocation29_spill] sm:$0xff] }
 0x12c   :  { %v507_v37 = vmul.f32 %v4011_v51, %v4870_v58  ;;  %v1470_v21 = vmax.f32 %v1468_v46, 0.0  ;;  %v1433_v63 = vadd.f32 %v1431_v2, %v1427_v7  ;;  %v1455_v3 = vmul.f32 %v3869_v57, %v4868_v11  ;;  %v4873_v7 = vld [vmem:[#allocation43_spill] sm:$0xff] }
 0x12d   :  { %v513_v14 = vmul.f32 %v4014_v52, %v4865_v30  ;;  %v546_v23 = vadd.f32 %v544_v5, %v540_v19  ;;  %v965_v4 = vadd.f32 %v963_v38, %v959_v8  ;;  %v519_v56 = vmul.f32 %v4017_v42, %v4871_v10 }
 0x12e   :  { %v509_v0 = vadd.f32 %v507_v37, %v503_v6  ;;  %1472 = vst [vmem:[#allocation2 + $0x18] sm:$0x7] %v1470_v21  ;;  %v1439_v59 = vadd.f32 %v1437_v62, %v1433_v63  ;;  %v1461_v57 = vmul.f32 %v3878_v50, %v4869_v45  ;;  %v525_v53 = vmul.f32 %v4027_v24, %v4867_v39 }
 0x12f   :  { %v531_v5 = vmul.f32 %v4030_v36, %v4872_v12  ;;  %v550_v38 = vadd.f32 %v4054_v48, %v546_v23  ;;  %v971_v25 = vadd.f32 %v969_v20, %v965_v4  ;;  %v882_v9 = vmul.f32 %v880_v54, %v4787_v16  ;;  %v4875_v4 = vld [vmem:[#allocation33_spill] sm:$0xff] }
 0x130   :  { %v515_v41 = vadd.f32 %v513_v14, %v509_v0  ;;  %v1445_v32 = vadd.f32 %v1443_v35, %v1439_v59  ;;  %v884_v2 = vstv %s4169_s21  ;;  %v890_v1 = vstv %s4173_s22  ;;  %v4874_v14 = vld [vmem:[#allocation44_spill] sm:$0xff] }
 0x131   :  { %v1762_v50 = vld [vmem:[#allocation2 + $0x120] sm:$0xff]  ;;  %v896_v49 = vstv %s4181_s17  ;;  %v552_v62 = vmax.f32 %v550_v38, 0.0  ;;  %v977_v46 = vadd.f32 %v975_v22, %v971_v25  ;;  %v886_v19 = vmul.f32 %v884_v2, %v4873_v7 }
 0x132   :  { %2518 = vmatprep.subr.mxu0 %v1762_v50  ;;  %v521_v20 = vadd.f32 %v519_v56, %v515_v41  ;;  %v1451_v8 = vadd.f32 %v1449_v18, %v1445_v32  ;;  %v537_v35 = vmul.f32 %v4037_v61, %v4869_v45  ;;  %v892_v6 = vmul.f32 %v890_v1, %v4858_v17 }
 0x133   :  { %v902_v37 = vstv %s4194_s24  ;;  %554 = vst [vmem:[#allocation2 + $0x48] sm:$0x7] %v552_v62  ;;  %v981_v22 = vadd.f32 %v4844_v60, %v977_v46  ;;  %v888_v63 = vadd.f32 %v886_v19, %v882_v9  ;;  %v898_v23 = vmul.f32 %v896_v49, %v4874_v14  ;;  %v4876_v9 = vld [vmem:[#allocation45_spill] sm:$0xff] }
 0x134   :  { %v527_v21 = vadd.f32 %v525_v53, %v521_v20  ;;  %v1457_v18 = vadd.f32 %v1455_v3, %v1451_v8  ;;  %v543_v0 = vmul.f32 %v4040_v33, %v4875_v4  ;;  %v908_v56 = vstv %s4200_s0 }
 0x135   :  { %v4695_v59 = vstv %s4206_s25  ;;  %v1780_v60 = vld [vmem:[#allocation2 + $0x18] sm:$0xff]  ;;  %v983_v53 = vmax.f32 %v981_v22, 0.0  ;;  %v894_v25 = vadd.f32 %v892_v6, %v888_v63  ;;  %v904_v41 = vmul.f32 %v902_v37, %v4859_v29 }
 0x136   :  { %v533_v38 = vadd.f32 %v531_v5, %v527_v21  ;;  %2592 = vmatprep.subr.mxu1 %v1780_v60  ;;  %v1463_v3 = vadd.f32 %v1461_v57, %v1457_v18  ;;  %v910_v50 = vmul.f32 %v908_v56, %v4876_v9  ;;  %v916_v32 = vmul.f32 %v4695_v59, %v4863_v28  ;;  %v4881_v59 = vld [vmem:[#allocation56_spill] sm:$0xff] }
 0x137   :  { %v4693_v62 = vstv %s4218_s4  ;;  %2593 = vmatpush3.msra.mxu1 %v1780_v60  ;;  %v900_v5 = vadd.f32 %v898_v23, %v894_v25  ;;  %v4269_v20 = vstv %s4187_s23  ;;  %v4272_v19 = vstv %s4210_s3 }
 0x138   :  { %v539_v46 = vadd.f32 %v537_v35, %v533_v38  ;;  %v1467_v8 = vadd.f32 %v3881_v55, %v1463_v3  ;;  %v1368_v57 = vmul.f32 %v4269_v20, %v4787_v16  ;;  %v1372_v6 = vmul.f32 %v4272_v19, %v4873_v7 }
 0x139   :  { %v4280_v22 = vstv %s4224_s26  ;;  %v906_v21 = vadd.f32 %v904_v41, %v900_v5  ;;  %v4287_v23 = vstv %s4229_s27  ;;  %v4292_v38 = vstv %s4234_s28  ;;  %v4877_v41 = vld [vmem:[#allocation47_spill] sm:$0xff] }
 0x13a   :  { %v545_v35 = vadd.f32 %v543_v0, %v539_v46  ;;  %v1378_v63 = vmul.f32 %v4280_v22, %v4858_v17  ;;  %v1746_v55 = vld [vmem:[#allocation2 + $0x48] sm:$0xff]  ;;  %v1469_v18 = vmax.f32 %v1467_v8, 0.0  ;;  %v1374_v60 = vadd.f32 %v1372_v6, %v1368_v57 }
 0x13b   :  { %v1384_v7 = vmul.f32 %v4287_v23, %v4874_v14  ;;  %2519 = vmatpush3.msra.mxu0 %v1746_v55  ;;  %v912_v25 = vadd.f32 %v910_v50, %v906_v21  ;;  %v922_v3 = vmul.f32 %v4693_v62, %v4877_v41  ;;  %v4299_v46 = vstv %s4242_s30 }
 0x13c   :  { %v549_v0 = vadd.f32 %v4054_v48, %v545_v35  ;;  %2520 = vmatprep.subr.mxu0 %v983_v53  ;;  %2594 = vmatprep.subr.mxu1 %v1469_v18  ;;  %v1380_v5 = vadd.f32 %v1378_v63, %v1374_v60  ;;  %v1390_v8 = vmul.f32 %v4292_v38, %v4859_v29  ;;  %v4304_v57 = vstv %s4248_s29 }
 0x13d   :  { %v4307_v14 = vstv %s4254_s14  ;;  %2595 = vmatpush3.msra.mxu1 %v1469_v18  ;;  %v918_v50 = vadd.f32 %v916_v32, %v912_v25  ;;  %v4694_v35 = vstv %s4259_s15  ;;  %v1396_v53 = vmul.f32 %v4299_v46, %v4876_v9 }
 0x13e   :  { %v551_v6 = vmax.f32 %v549_v0, 0.0  ;;  %v1386_v21 = vadd.f32 %v1384_v7, %v1380_v5  ;;  %v450_v63 = vmul.f32 %v4004_v27, %v4853_v44  ;;  %v454_v55 = vmul.f32 %v4011_v51, %v4786_v34 }
 0x13f   :  { %v924_v60 = vadd.f32 %v922_v3, %v918_v50  ;;  %v1402_v18 = vmul.f32 %v4304_v57, %v4863_v28  ;;  %v1408_v32 = vmul.f32 %v4307_v14, %v4877_v41  ;;  %v460_v7 = vmul.f32 %v4014_v52, %v4854_v31 }
 0x140   :  { %2521 = vmatpush3.msra.mxu0 %v551_v6  ;;  %v1392_v9 = vadd.f32 %v1390_v8, %v1386_v21  ;;  %v4323_v0 = vstv %s4282_s16  ;;  %v456_v44 = vadd.f32 %v454_v55, %v450_v63  ;;  %v466_v25 = vmul.f32 %v4017_v42, %v4789_v43  ;;  %v4878_v6 = vld [vmem:[#allocation55_spill] sm:$0xff]  ;;  %v4879_v21 = vld [vmem:[#allocation25_spill] sm:$0xff] }
 0x141   :  { %v928_v3 = vadd.f32 %v4694_v35, %v924_v60  ;;  %v472_v5 = vmul.f32 %v4027_v24, %v4856_v15  ;;  %v881_v41 = vmul.f32 %v880_v54, %v4870_v58  ;;  %v885_v31 = vmul.f32 %v884_v2, %v4878_v6  ;;  %v4880_v60 = vld [vmem:[#allocation28_spill] sm:$0xff] }
 0x142   :  { %v1398_v50 = vadd.f32 %v1396_v53, %v1392_v9  ;;  %v462_v8 = vadd.f32 %v460_v7, %v456_v44  ;;  %v478_v63 = vmul.f32 %v4030_v36, %v4879_v21  ;;  %v891_v55 = vmul.f32 %v890_v1, %v4871_v10  ;;  %v4882_v7 = vld [vmem:[#allocation30_spill] sm:$0xff] }
 0x143   :  { %v930_v62 = vmax.f32 %v928_v3, 0.0  ;;  %v484_v15 = vmul.f32 %v4037_v61, %v4880_v60  ;;  %v887_v35 = vadd.f32 %v885_v31, %v881_v41  ;;  %v897_v54 = vmul.f32 %v896_v49, %v4881_v59 }
 0x144   :  { %v1404_v2 = vadd.f32 %v1402_v18, %v1398_v50  ;;  %v468_v53 = vadd.f32 %v466_v25, %v462_v8  ;;  %v490_v9 = vmul.f32 %v4040_v33, %v4882_v7  ;;  %v903_v44 = vmul.f32 %v902_v37, %v4872_v12  ;;  %v4883_v25 = vld [vmem:[#allocation57_spill] sm:$0xff] }
 0x145   :  { %932 = vst [vmem:[#allocation2 + $0x130] sm:$0x7] %v930_v62  ;;  %v893_v1 = vadd.f32 %v891_v55, %v887_v35  ;;  %v1367_v3 = vmul.f32 %v4269_v20, %v4870_v58  ;;  %v1371_v41 = vmul.f32 %v4272_v19, %v4878_v6  ;;  %v1377_v31 = vmul.f32 %v4280_v22, %v4871_v10  ;;  %v4885_v62 = vld [vmem:[#allocation42_spill] sm:$0xff] }
 0x146   :  { %v1410_v49 = vadd.f32 %v1408_v32, %v1404_v2  ;;  %v474_v18 = vadd.f32 %v472_v5, %v468_v53  ;;  %v909_v50 = vmul.f32 %v908_v56, %v4883_v25  ;;  %v4884_v8 = vstv %s4206_s25 }
 0x147   :  { %v915_v60 = vmul.f32 %v4884_v8, %v4875_v4  ;;  %v899_v37 = vadd.f32 %v897_v54, %v893_v1  ;;  %v4886_v35 = vstv %s4218_s4  ;;  %v1373_v28 = vadd.f32 %v1371_v41, %v1367_v3 }
 0x148   :  { %v921_v55 = vmul.f32 %v4886_v35, %v4885_v62  ;;  %v1383_v7 = vmul.f32 %v4287_v23, %v4881_v59  ;;  %v1414_v6 = vadd.f32 %v4323_v0, %v1410_v49  ;;  %v480_v58 = vadd.f32 %v478_v63, %v474_v18 }
 0x149   :  { %v1389_v32 = vmul.f32 %v4292_v38, %v4872_v12  ;;  %v449_v56 = vmul.f32 %v4004_v27, %v4860_v26  ;;  %v905_v5 = vadd.f32 %v903_v44, %v899_v37  ;;  %v1379_v2 = vadd.f32 %v1377_v31, %v1373_v28 }
 0x14a   :  { %v453_v54 = vmul.f32 %v4011_v51, %v4862_v40  ;;  %v459_v53 = vmul.f32 %v4014_v52, %v4864_v13  ;;  %v1416_v1 = vmax.f32 %v1414_v6, 0.0  ;;  %v486_v3 = vadd.f32 %v484_v15, %v480_v58 }
 0x14b   :  { %v1395_v59 = vmul.f32 %v4299_v46, %v4883_v25  ;;  %v1401_v63 = vmul.f32 %v4304_v57, %v4875_v4  ;;  %v911_v41 = vadd.f32 %v909_v50, %v905_v5  ;;  %v1385_v49 = vadd.f32 %v1383_v7, %v1379_v2 }
 0x14c   :  { %v455_v18 = vadd.f32 %v453_v54, %v449_v56  ;;  %v465_v27 = vmul.f32 %v4017_v42, %v4865_v30  ;;  %v1760_v26 = vld [vmem:[#allocation2 + $0x130] sm:$0xff]  ;;  %1418 = vst [vmem:[#allocation2 + $0x38] sm:$0x7] %v1416_v1  ;;  %v492_v51 = vadd.f32 %v490_v9, %v486_v3  ;;  %v1407_v52 = vmul.f32 %v4307_v14, %v4885_v62  ;;  %v4889_v1 = vld [vmem:[#allocation30_spill] sm:$0xff] }
 0x14d   :  { %v471_v28 = vmul.f32 %v4027_v24, %v4866_v47  ;;  %v1314_v13 = vmul.f32 %v4269_v20, %v4786_v34  ;;  %2522 = vmatprep.subr.mxu0 %v1760_v26  ;;  %v917_v58 = vadd.f32 %v915_v60, %v911_v41  ;;  %v1391_v15 = vadd.f32 %v1389_v32, %v1385_v49  ;;  %v4888_v32 = vld [vmem:[#allocation18_spill] sm:$0xff]  ;;  %v4890_v41 = vld [vmem:[#allocation32_spill] sm:$0xff] }
 0x14e   :  { %v461_v7 = vadd.f32 %v459_v53, %v455_v18  ;;  %v1318_v42 = vmul.f32 %v4272_v19, %v4787_v16  ;;  %v496_v44 = vadd.f32 %v4054_v48, %v492_v51  ;;  %v477_v9 = vmul.f32 %v4030_v36, %v4867_v39 }
 0x14f   :  { %v1324_v31 = vmul.f32 %v4280_v22, %v4789_v43  ;;  %v1330_v24 = vmul.f32 %v4287_v23, %v4858_v17  ;;  %v923_v34 = vadd.f32 %v921_v55, %v917_v58  ;;  %v1397_v47 = vadd.f32 %v1395_v59, %v1391_v15 }
 0x150   :  { %v467_v25 = vadd.f32 %v465_v27, %v461_v7  ;;  %v1320_v50 = vadd.f32 %v1318_v42, %v1314_v13  ;;  %v498_v8 = vmax.f32 %v496_v44, 0.0  ;;  %v483_v60 = vmul.f32 %v4037_v61, %v4868_v11  ;;  %v1795_v42 = vld [vmem:[%s4531_s5 + $0x20] sm:$0xff]  ;;  %v2007_v44 = vld [vmem:[%s4534_s8 + $0x10] sm:$0xff] }
 0x151   :  { %v489_v16 = vmul.f32 %v4040_v33, %v4869_v45  ;;  %v1336_v36 = vmul.f32 %v4292_v38, %v4879_v21  ;;  %v4887_v37 = vstv %s4259_s15  ;;  %v1403_v43 = vadd.f32 %v1401_v63, %v1397_v47  ;;  %v2005_v47 = vld [vmem:[%s4534_s8] sm:$0xff] }
 0x152   :  { %v927_v62 = vadd.f32 %v4887_v37, %v923_v34  ;;  %v473_v35 = vadd.f32 %v471_v28, %v467_v25  ;;  %v1326_v6 = vadd.f32 %v1324_v31, %v1320_v50  ;;  %500 = vst [vmem:[#allocation2 + $0xd0] sm:$0x7] %v498_v8  ;;  %v1342_v17 = vmul.f32 %v4299_v46, %v4859_v29  ;;  %v1803_v28 = vld [vmem:[%s4532_s6] sm:$0xff]  ;;  %v2006_v34 = vld [vmem:[%s4534_s8 + $0x8] sm:$0xff]  ;;  %v1797_v50 = vld [vmem:[%s4531_s5 + $0x30] sm:$0xff] }
 0x153   :  { %v1313_v55 = vmul.f32 %v4269_v20, %v4862_v40  ;;  %v1317_v61 = vmul.f32 %v4272_v19, %v4888_v32  ;;  %v1323_v33 = vmul.f32 %v4280_v22, %v4865_v30  ;;  %v1778_v11 = vld [vmem:[#allocation2 + $0x38] sm:$0xff]  ;;  %v1409_v56 = vadd.f32 %v1407_v52, %v1403_v43  ;;  %v1804_v22 = vld [vmem:[%s4532_s6 + $0x8] sm:$0xff]  ;;  %v2001_v32 = vld [vmem:[%s4533_s7] sm:$0xff] }
 0x154   :  { %v929_v21 = vmax.f32 %v927_v62, 0.0  ;;  %v479_v5 = vadd.f32 %v477_v9, %v473_v35  ;;  %v1332_v2 = vadd.f32 %v1330_v24, %v1326_v6  ;;  %2596 = vmatprep.subr.mxu1 %v1778_v11  ;;  %v1329_v53 = vmul.f32 %v4287_v23, %v4871_v10  ;;  %v1806_v30 = vld [vmem:[%s4532_s6 + $0x18] sm:$0xff]  ;;  %v2228_v62 = vld [vmem:[%s4537_s11] sm:$0xff]  ;;  %v1796_v43 = vld [vmem:[%s4531_s5 + $0x28] sm:$0xff] }
 0x155   :  { %v1319_v54 = vadd.f32 %v1317_v61, %v1313_v55  ;;  %2597 = vmatpush3.msra.mxu1 %v1778_v11  ;;  %v1413_v29 = vadd.f32 %v4323_v0, %v1409_v56  ;;  %v1348_v19 = vmul.f32 %v4304_v57, %v4889_v1  ;;  %v1335_v10 = vmul.f32 %v4292_v38, %v4867_v39  ;;  %v1805_v38 = vld [vmem:[%s4532_s6 + $0x10] sm:$0xff]  ;;  %v1798_v24 = vld [vmem:[%s4531_s5 + $0x38] sm:$0xff]  ;;  %v2229_v35 = vld [vmem:[%s4537_s11 + $0x8] sm:$0xff] }
 0x156   :  { %v485_v40 = vadd.f32 %v483_v60, %v479_v5  ;;  %v1338_v20 = vadd.f32 %v1336_v36, %v1332_v2  ;;  %v1354_v49 = vmul.f32 %v4307_v14, %v4890_v41  ;;  %v2702_v18 = vmov 0   ;;  %v1801_v60 = vld [vmem:[%s4531_s5 + $0x50] sm:$0xff]  ;;  %v1800_v36 = vld [vmem:[%s4531_s5 + $0x48] sm:$0xff]  ;;  %v1799_v6 = vld [vmem:[%s4531_s5 + $0x40] sm:$0xff] }
 0x157   :  { %v1325_v3 = vadd.f32 %v1323_v33, %v1319_v54  ;;  %v1415_v23 = vmax.f32 %v1413_v29, 0.0  ;;  %2641 = vset.pattern.permute.xlu0 %v2702_v18  ;;  %2642 = vset.pattern.permute.xlu1 %v2702_v18  ;;  %v1341_v26 = vmul.f32 %v4299_v46, %v4872_v12  ;;  %v1347_v12 = vmul.f32 %v4304_v57, %v4869_v45  ;;  %v2008_v57 = vld [vmem:[%s4534_s8 + $0x18] sm:$0xff] }
 0x158   :  { %v491_v59 = vadd.f32 %v489_v16, %v485_v40  ;;  %v1344_v63 = vadd.f32 %v1342_v17, %v1338_v20  ;;  %1824 = vperm.xlu0 %2641, %v1806_v30   ;;  %1814 = vperm.xlu1 %2642, %v1804_v22   ;;  %v1353_v7 = vmul.f32 %v4307_v14, %v4875_v4  ;;  %v1794_v14 = vld [vmem:[%s4531_s5 + $0x18] sm:$0xff]  ;;  %v2133_v16 = vld [vmem:[%s4536_s10] sm:$0xff] }
 0x159   :  { %v1331_v27 = vadd.f32 %v1329_v53, %v1325_v3  ;;  %v1744_v51 = vld [vmem:[#allocation2 + $0xd0] sm:$0xff]  ;;  %2598 = vmatprep.subr.mxu1 %v1415_v23  ;;  %v2249_v17 = vld [vmem:[#allocation3] sm:$0x1]  ;;  %v1802_v55 = vld [vmem:[%s4531_s5 + $0x58] sm:$0xff] }
 0x15a   :  { %v495_v52 = vadd.f32 %v4054_v48, %v491_v59  ;;  %v1350_v39 = vadd.f32 %v1348_v19, %v1344_v63  ;;  %2523 = vmatpush3.msra.mxu0 %v1744_v51  ;;  %2599 = vmatpush3.msra.mxu1 %v1415_v23  ;;  %v1791_v48 = vld [vmem:[%s4531_s5] sm:$0xff] }
 0x15b   :  { %v1337_v13 = vadd.f32 %v1335_v10, %v1331_v27  ;;  %2524 = vmatprep.subr.mxu0 %v929_v21 }
 0x15c   :  { %v497_v46 = vmax.f32 %v495_v52, 0.0  ;;  %v1356_v58 = vadd.f32 %v1354_v49, %v1350_v39  ;;  %1819 = vperm.xlu0 %2641, %v1805_v38   ;;  %1809 = vperm.xlu1 %2642, %v1803_v28  }
 0x15d   :  { %v1343_v15 = vadd.f32 %v1341_v26, %v1337_v13 }
 0x15e   :  { %2525 = vmatpush3.msra.mxu0 %v497_v46  ;;  %v1360_v45 = vadd.f32 %v4323_v0, %v1356_v58  ;;  %v2003_v46 = vld [vmem:[%s4533_s7 + $0x10] sm:$0xff]  ;;  %v2131_v58 = vld [vmem:[%s4535_s9] sm:$0xff] }
 0x15f   :  { %1892 = vmatmul.mubr.f32.vlgmr.msra.gmra.mxu0 %v1791_v48  ;;  %v1349_v9 = vadd.f32 %v1347_v12, %v1343_v15  ;;  %v2002_v12 = vld [vmem:[%s4533_s7 + $0x8] sm:$0xff]  ;;  %v2004_v48 = vld [vmem:[%s4533_s7 + $0x18] sm:$0xff] }
 0x160   :  { %v1362_v4 = vmax.f32 %v1360_v45, 0.0  ;;  %1896 = vmatprep.mubr.f32.mxu0 %v1795_v42  ;;  %2026 = vperm.xlu0 %2641, %v2008_v57  }
 0x161   :  { %v1355_v31 = vadd.f32 %v1353_v7, %v1349_v9  ;;  %2021 = vperm.xlu1 %2642, %v2007_v44  }
 0x162   :  { %1364 = vst [vmem:[#allocation2 + $0xc8] sm:$0x7] %v1362_v4 }
 0x163   :  { %v1359_v25 = vadd.f32 %v4323_v0, %v1355_v31  ;;  %1897 = vmatmul.mubr.f32.gmra.mxu0 %v1794_v14  ;;  %v2134_v0 = vld [vmem:[%s4536_s10 + $0x8] sm:$0xff] }
 0x164   :  { %1901 = vmatprep.mubr.f32.mxu0 %v1798_v24  ;;  %2016 = vperm.xlu0 %2641, %v2006_v34  }
 0x165   :  { %v1361_v8 = vmax.f32 %v1359_v25, 0.0  ;;  %2011 = vperm.xlu1 %2642, %v2005_v47  }
 0x167   :  { %1902 = vmatmul.mubr.f32.gmra.mxu0 %v1797_v50 }
 0x168   :  { %1906 = vmatprep.mubr.f32.mxu0 %v1801_v60  ;;  %2137 = vperm.xlu0 %2641, %v2133_v16   ;;  %v2132_v60 = vld [vmem:[%s4535_s9 + $0x8] sm:$0xff] }
 0x169   :  { %v1776_v37 = vld [vmem:[#allocation2 + $0xc8] sm:$0xff]  ;;  %2142 = vperm.xlu1 %2642, %v2134_v0  }
 0x16a   :  { %2600 = vmatprep.subr.mxu1 %v1776_v37 }
 0x16b   :  { %2601 = vmatpush3.msra.mxu1 %v1776_v37  ;;  %1907 = vmatmul.mubr.f32.gmra.mxu0 %v1800_v36 }
 0x16c   :  { %2602 = vmatprep.subr.mxu1 %v1361_v8  ;;  %2232 = vperm.xlu0 %2641, %v2228_v62  }
 0x16d   :  { %2603 = vmatpush3.msra.mxu1 %v1361_v8  ;;  %2237 = vperm.xlu1 %2642, %v2229_v35  }
 0x16e   :  { %2605 = vmatmul.mubr.f32.vlgmr.msra.gmra.mxu1 %v1796_v43  ;;  %2632 = vmatprep.mubr.msk.f32.mxu0 %vm2029_vm1, %v2131_v58 }
 0x16f   :  { %2607 = vmatprep.mubr.f32.mxu1 %v1799_v6 }
 0x170   :  { %2252 = vperm.xlu0 %2641, %v2249_v17  }
 0x172   :  { %2608 = vmatmul.mubr.f32.gmra.mxu1 %v1802_v55 }
 0x173   :  { %2618 = vmatprep.mubr.msk.f32.mxu1 %vm2029_vm1, %v2001_v32 }
 0x1d3   :  { %v1825_v2 = vpop.permute.xlu0 %1824  ;;  %v1815_v53 = vpop.permute.xlu1 %1814 }
 0x1d7   :  { %v1820_v22 = vpop.permute.xlu0 %1819  ;;  %v1810_v63 = vpop.permute.xlu1 %1809 }
 0x1db   :  { %v2027_v15 = vpop.permute.xlu0 %2026 }
 0x1dc   :  { %v2022_v42 = vpop.permute.xlu1 %2021 }
 0x1df   :  { %v2017_v9 = vpop.permute.xlu0 %2016 }
 0x1e0   :  { %v2012_v34 = vpop.permute.xlu1 %2011 }
 0x1e3   :  { %v2138_v16 = vpop.permute.xlu0 %2137 }
 0x1e4   :  { %v2143_v0 = vpop.permute.xlu1 %2142 }
 0x1e7   :  { %v2233_v17 = vpop.permute.xlu0 %2232 }
 0x1e8   :  { %v2238_v55 = vpop.permute.xlu1 %2237 }
 0x21f   :  { %v2526_v61 = vpop.f32.mrf.mxu0 }
 0x221   :  { %v2527_v33 = vpop.f32.mrf.mxu0 }
 0x222   :  { %v2528_v30 = vadd.f32 %v2527_v33, %v2526_v61  ;;  %v2255_v33 = vlaneseq }
 0x223   :  { %v2529_v11 = vpop.f32.mrf.mxu0 }
 0x224   :  { %v1894_v49 = vadd.f32 %v2528_v30, %v1810_v63 }
 0x225   :  { %v2530_v21 = vpop.f32.mrf.mxu0 }
 0x226   :  { %v2531_v29 = vadd.f32 %v2530_v21, %v2529_v11 }
 0x227   :  { %v2532_v56 = vpop.f32.mrf.mxu0 }
 0x228   :  { %v1899_v23 = vadd.f32 %v2531_v29, %v1815_v53  ;;  %v2253_v29 = vpop.permute.xlu0 %2252 }
 0x229   :  { %v2533_v5 = vpop.f32.mrf.mxu0 }
 0x22a   :  { %v2534_v40 = vadd.f32 %v2533_v5, %v2532_v56  ;;  %v2256_v56 = vshrl.u32 %v2255_v33, 7 }
 0x22b   :  { %v2535_v54 = vpop.f32.mrf.mxu0 }
 0x22c   :  { %v1904_v59 = vadd.f32 %v2534_v40, %v1820_v22 }
 0x22d   :  { %v2536_v20 = vpop.f32.mrf.mxu0 }
 0x22e   :  { %v2606_v1 = vpop.f32.mrf.mxu1  ;;  %v2537_v19 = vadd.f32 %v2536_v20, %v2535_v54  ;;  %v2257_v54 = vsub.s32 0, %v2256_v56 }
 0x22f   :  { %v1984_v52 = vadd.f32 %v2606_v1, %v1899_v23 }
 0x230   :  { %v1978_v3 = vpop.f32.mrf.mxu1  ;;  %v1909_v10 = vadd.f32 %v2537_v19, %v1825_v2  ;;  %v2258_v20 = vrot.slane %v2253_v29, %v2257_v54 }
 0x231   :  { %v1979_v39 = vadd.f32 %v1978_v3, %v1894_v49  ;;  %v1998_v28 = vmax.f32 %v1984_v52, 0.0 }
 0x232   :  { %v2609_v41 = vpop.f32.mrf.mxu1 }
 0x233   :  { %v1994_v18 = vadd.f32 %v2609_v41, %v1909_v10  ;;  %v1997_v13 = vmax.f32 %v1979_v39, 0.0 }
 0x234   :  { %v1988_v27 = vpop.f32.mrf.mxu1 }
 0x235   :  { %v1989_v26 = vadd.f32 %v1988_v27, %v1904_v59  ;;  %v2000_v51 = vmax.f32 %v1994_v18, 0.0 }
 0x237   :  { %v1999_v38 = vmax.f32 %v1989_v26, 0.0  ;;  %2610 = vmatprep.subr.mxu1 %v2000_v51 }
 0x238   :  { %2611 = vmatpush3.msra.mxu1 %v2000_v51 }
 0x239   :  { %2612 = vmatprep.subr.mxu1 %v1999_v38 }
 0x23a   :  { %2613 = vmatpush3.msra.mxu1 %v1999_v38 }
 0x23b   :  { %2614 = vmatprep.subr.mxu1 %v1998_v28 }
 0x23c   :  { %2615 = vmatpush3.msra.mxu1 %v1998_v28 }
 0x23d   :  { %2616 = vmatprep.subr.mxu1 %v1997_v13 }
 0x23e   :  { %2617 = vmatpush3.msra.mxu1 %v1997_v13 }
 0x23f   :  { %2619 = vmatmul.mubr.msk.f32.vlgmr.msra.gmra.mxu1 %vm2029_vm1, %v2002_v12 }
 0x240   :  { %2621 = vmatprep.mubr.msk.f32.mxu1 %vm2029_vm1, %v2003_v46 }
 0x243   :  { %2622 = vmatmul.mubr.msk.f32.gmra.mxu1 %vm2029_vm1, %v2004_v48 }
 0x2ff   :  { %v2620_v7 = vpop.f32.mrf.mxu1 }
 0x300   :  { %v2114_v14 = vadd.f32 %v2620_v7, %v2017_v9 }
 0x301   :  { %v2108_v45 = vpop.f32.mrf.mxu1 }
 0x302   :  { %v2109_v47 = vadd.f32 %v2108_v45, %v2012_v34  ;;  %v2128_v50 = vmax.f32 %v2114_v14, 0.0 }
 0x303   :  { %v2623_v57 = vpop.f32.mrf.mxu1 }
 0x304   :  { %v2124_v44 = vadd.f32 %v2623_v57, %v2027_v15  ;;  %v2127_v8 = vmax.f32 %v2109_v47, 0.0 }
 0x305   :  { %v2118_v4 = vpop.f32.mrf.mxu1 }
 0x306   :  { %v2130_v31 = vmax.f32 %v2124_v44, 0.0  ;;  %v2119_v24 = vadd.f32 %v2118_v4, %v2022_v42 }
 0x308   :  { %v2129_v25 = vmax.f32 %v2119_v24, 0.0  ;;  %2624 = vmatprep.subr.mxu0 %v2130_v31 }
 0x309   :  { %2625 = vmatpush3.msra.mxu0 %v2130_v31 }
 0x30a   :  { %2626 = vmatprep.subr.mxu0 %v2129_v25 }
 0x30b   :  { %2627 = vmatpush3.msra.mxu0 %v2129_v25 }
 0x30c   :  { %2628 = vmatprep.subr.mxu0 %v2128_v50 }
 0x30d   :  { %2629 = vmatpush3.msra.mxu0 %v2128_v50 }
 0x30e   :  { %2630 = vmatprep.subr.mxu0 %v2127_v8 }
 0x30f   :  { %2631 = vmatpush3.msra.mxu0 %v2127_v8 }
 0x310   :  { %2633 = vmatmul.mubr.msk.f32.vlgmr.msra.gmra.mxu0 %vm2029_vm1, %v2132_v60 }
 0x3d0   :  { %v2634_v36 = vpop.f32.mrf.mxu0 }
 0x3d1   :  { %v2223_v37 = vadd.f32 %v2634_v36, %v2143_v0 }
 0x3d2   :  { %v2217_v62 = vpop.f32.mrf.mxu0 }
 0x3d3   :  { %v2227_v43 = vmax.f32 %v2223_v37, 0.0  ;;  %v2218_v35 = vadd.f32 %v2217_v62, %v2138_v16 }
 0x3d5   :  { %v2226_v6 = vmax.f32 %v2218_v35, 0.0  ;;  %v2241_v32 = vmul.f32 %v2238_v55, %v2227_v43 }
 0x3d7   :  { %v2240_v61 = vmul.f32 %v2233_v17, %v2226_v6 }
 0x3d9   :  { %v2242_v11 = vadd.f32 %v2241_v32, %v2240_v61 }
 0x3db   :  { %v2243_v21 = vrot.slane %v2242_v11, 4 }
 0x3dd   :  { %v2244_v5 = vadd.f32 %v2243_v21, %v2242_v11 }
 0x3df   :  { %v2245_v2 = vrot.slane %v2244_v5, 2 }
 0x3e1   :  { %v2246_v53 = vadd.f32 %v2245_v2, %v2244_v5 }
 0x3e3   :  { %v2247_v40 = vrot.slane %v2246_v53, 1 }
 0x3e5   :  { %v2248_v1 = vadd.f32 %v2247_v40, %v2246_v53 }
 0x3e7   :  { %v2259_v19 = vadd.f32 %v2258_v20, %v2248_v1 }
 0x3e9   :  { %2260 = vst [vmem:[%s4539_s13] sm:$0x1] %v2259_v19 }
 0x3ea   :  { %2265 = vsyncpa [#allocation5], 1 }
 0x3eb   :  { %2266 = vsyncpa [#allocation7], 1 }
 0x3ec   :  { %2267 = vsyncpa [#allocation10], 1 }

</bundles_post_ra>
